<compile_context>
chip_gen: v7x
topology: tpu7x:2x2x1
jax: 0.10.0
libtpu: 0.0.40
codegen_flags: <defaults>
</compile_context>

<pallas_src>
import jax
import jax.numpy as jnp
from jax.experimental import pallas as pl
from jax.experimental.pallas import tpu as pltpu

LEVELS = (3, 2, 1)  # SPP pyramid levels -> 64 * (9 + 4 + 1) = 896 FC input features


# ------------------------------ helpers ------------------------------------ #

def _adaptive_bins(size, n):
    # F.adaptive_max_pool2d bin boundaries: [floor(i*size/n), ceil((i+1)*size/n))
    return [((i * size) // n, -(-((i + 1) * size) // n)) for i in range(n)]


def _vmem_limit_bytes(H, W, C_in, OH, OW, K, C_out, F, nc):
    est = 0
    est += 2 * H * W * C_in * 4            # input block, double-buffered, f32
    est += 2 * (K * C_out * 2 + C_out * 4)  # conv weight (bf16) + bias
    est += 2 * (F * nc * 4 + nc * 4)        # fc weight + bias
    est += 2 * OH * OW * K * 4              # patch matrix (+ concat temporaries)
    est += 2 * OH * OW * C_out * 4          # conv/ReLU intermediate (+ slack)
    est += 2 * nc * 4                       # output block
    est = int(est * 1.5) + (1 << 20)
    # keep at least the conservative default, never ask for more than is safe on v7x (64 MiB)
    return int(min(max(est, 16 * (1 << 20)), 48 * (1 << 20)))


# ------------------------------ fused kernel -------------------------------- #

def make_fused_kernel(OH, OW, C_in, C_out, KH, KW, bins_l3, bins_l2):
    """conv(3x3, valid) + bias + ReLU + SPP(3,2,1) max-pool + FC, for one image per grid step."""
    n_slice_bins = len(bins_l3) + len(bins_l2)
    n_bins = n_slice_bins + 1  # + the 1x1 level

    def kernel(x_ref, w_ref, b_ref, wfc_ref, bfc_ref, o_ref):
        # ---- conv as an in-kernel im2col matmul (MXU, bf16 in / f32 acc) ----
        x = x_ref[0]                                           # (H, W, Cin) f32
        cols = []
        for i in range(KH):                                    # static unroll: 9 shifted slices
            for j in range(KW):
                cols.append(x[i:i + OH, j:j + OW, :])          # (OH, OW, Cin)
        pat = jnp.concatenate(cols, axis=-1)                   # (OH, OW, KH*KW*Cin)
        p = pat.reshape(OH * OW, KH * KW * C_in).astype(jnp.bfloat16)       # (M, 27)
        acc = jnp.dot(p, w_ref[...], preferred_element_type=jnp.float32)    # (M, 64) f32
        fm = jnp.maximum(acc + b_ref[...], 0.0).reshape(OH, OW, C_out)      # bias + ReLU

        # ---- SPP: per-bin max over static rectangular windows ----
        pooled = [None] * n_bins
        for b, (h0, h1, w0, w1) in enumerate(list(bins_l3) + list(bins_l2)):
            r = jnp.max(fm[h0:h1, w0:w1, :], axis=0)           # (ww, 64)
            pooled[b] = jnp.max(r, axis=0, keepdims=True)      # (1, 64)
        # 1x1 level: the level-2 bins always cover the whole map -> max-of-maxes is exact.
        g = pooled[len(bins_l3)]
        for b in range(len(bins_l3) + 1, n_slice_bins):
            g = jnp.maximum(g, pooled[b])
        pooled[n_bins - 1] = g

        # ---- FC: accumulate 14 small matmuls against 64-aligned weight row slices ----
        out = bfc_ref[...]                                     # (1, num_classes) f32
        for b in range(n_bins):
            w_b = wfc_ref[b * C_out:(b + 1) * C_out, :]        # (64, num_classes)
            out = out + jnp.dot(pooled[b], w_b, preferred_element_type=jnp.float32)
        o_ref[0] = out

    return kernel


# --------------------------- parameter preparation -------------------------- #

def prepare_params(conv_w, conv_b, fc_w, fc_b):
    """One-time weight relayouts (hoisted out of the per-call path)."""
    C_out, C_in, KH, KW = conv_w.shape
    num_classes = fc_w.shape[0]

    # Conv weight (Cout, Cin, KH, KW) -> (KH*KW*Cin, Cout), matching the in-kernel patch
    # feature order (kh, kw, c_in). bf16 for the MXU.
    w_mat = (jnp.transpose(conv_w, (2, 3, 1, 0))
             .reshape(KH * KW * C_in, C_out).astype(jnp.bfloat16))
    b_row = conv_b.reshape(1, C_out).astype(jnp.float32)

    # PyTorch SPP flattens each level channel-major (c*n*n + s); the kernel produces features
    # bin-major (bin*C + c).  Permute FC weight columns once so results match exactly.
    perm = []
    off = 0
    for lvl in LEVELS:
        nn = lvl * lvl
        for s in range(nn):
            for c in range(C_out):
                perm.append(off + c * nn + s)
        off += C_out * nn
    perm = jnp.asarray(perm, dtype=jnp.int32)
    w_fc_k = fc_w[:, perm].T.astype(jnp.float32)               # (896, num_classes)
    b_fc_row = fc_b.reshape(1, num_classes).astype(jnp.float32)
    return w_mat, b_row, w_fc_k, b_fc_row


# ------------------------------- forward pass ------------------------------- #

def custom_conv_forward(x_nchw, w_mat, b_row, w_fc_k, b_fc_row):
    # x_nchw: (N, 3, H, W) float32 (PyTorch layout); weights from prepare_params().
    N, C_in, H, W = x_nchw.shape
    KH = KW = 3                                   # module spec: Conv2d(3, 64, kernel_size=3)
    OH, OW = H - KH + 1, W - KW + 1
    C_out = w_mat.shape[1]
    F, num_classes = w_fc_k.shape
    K = KH * KW * C_in

    x_nhwc = jnp.transpose(x_nchw, (0, 2, 3, 1))  # channels-last for the kernel

    # Static SPP bins (adaptive max-pool semantics), levels 3 and 2; level 1 is derived
    # in-kernel from the level-2 maxes.
    bins_l3 = tuple((h0, h1, w0, w1)
                    for (h0, h1) in _adaptive_bins(OH, 3)
                    for (w0, w1) in _adaptive_bins(OW, 3))
    bins_l2 = tuple((h0, h1, w0, w1)
                    for (h0, h1) in _adaptive_bins(OH, 2)
                    for (w0, w1) in _adaptive_bins(OW, 2))

    kernel = make_fused_kernel(OH, OW, C_in, C_out, KH, KW, bins_l3, bins_l2)

    out3 = pl.pallas_call(
        kernel,
        out_shape=jax.ShapeDtypeStruct((N, 1, num_classes), jnp.float32),
        grid=(N,),
        in_specs=[
            pl.BlockSpec((1, H, W, C_in), lambda n: (n, 0, 0, 0)),   # one image per step
            pl.BlockSpec((K, C_out), lambda n: (0, 0)),              # conv weight (resident)
            pl.BlockSpec((1, C_out), lambda n: (0, 0)),              # conv bias
            pl.BlockSpec((F, num_classes), lambda n: (0, 0)),        # permuted FC weight
            pl.BlockSpec((1, num_classes), lambda n: (0, 0)),        # FC bias
        ],
        out_specs=pl.BlockSpec((1, 1, num_classes), lambda n: (n, 0, 0)),
        compiler_params=pltpu.CompilerParams(
            dimension_semantics=("parallel",),                       # pipeline + v7x 2-TC shard
            vmem_limit_bytes=_vmem_limit_bytes(H, W, C_in, OH, OW, K, C_out, F, num_classes),
        ),
    )(x_nhwc, w_mat, b_row, w_fc_k, b_fc_row)

    return out3.reshape(N, num_classes)


# ------------------------------ pure-JAX reference --------------------------- #

def reference_forward(x_nchw, conv_w, conv_b, fc_w, fc_b):
    y = jax.lax.conv_general_dilated(x_nchw, conv_w, (1, 1), "VALID",
                                     dimension_numbers=("NCHW", "OIHW", "NCHW"))
    y = jnp.maximum(y + conv_b[None, :, None, None], 0.0)
    N, C, OH, OW = y.shape
    feats = []
    for lvl in LEVELS:
        hb, wb = _adaptive_bins(OH, lvl), _adaptive_bins(OW, lvl)
        pooled = jnp.stack([jnp.max(y[:, :, h0:h1, w0:w1], axis=(2, 3))
                            for (h0, h1) in hb for (w0, w1) in wb], axis=-1)  # (N, C, lvl*lvl)
        feats.append(pooled.reshape(N, C * lvl * lvl))
    feat = jnp.concatenate(feats, axis=1)                      # (N, 896) channel-major per level
    return feat @ fc_w.T + fc_b


# ---------------------------------- main ------------------------------------ #

if __name__ == "__main__":
    key = jax.random.PRNGKey(0)
    k1, k2, k3, k4, k5 = jax.random.split(key, 5)

    num_classes = 10
    N, C_in, H, W = 2, 3, 16, 16
    C_out = 64

    x = jax.random.normal(k1, (N, C_in, H, W), dtype=jnp.float32)
    conv_w = jax.random.normal(k2, (C_out, C_in, 3, 3), dtype=jnp.float32) * 0.1
    conv_b = jax.random.normal(k3, (C_out,), dtype=jnp.float32) * 0.1
    fc_w = jax.random.normal(k4, (num_classes, 896), dtype=jnp.float32) * 0.05
    fc_b = jax.random.normal(k5, (num_classes,), dtype=jnp.float32) * 0.05

    params = prepare_params(conv_w, conv_b, fc_w, fc_b)
    fwd = jax.jit(custom_conv_forward)
    out = fwd(x, *params)
    jax.block_until_ready(out)
    assert out.shape == (N, num_classes) and out.dtype == jnp.float32

    ref = reference_forward(x, conv_w, conv_b, fc_w, fc_b)
    err = float(jnp.max(jnp.abs(out - ref)))
    assert err < 1e-1, f"max abs err vs f32 reference too large: {err}"

    print("KERNEL_OK")
</pallas_src>

<mosaic_0001>
module attributes {stable_mosaic.version = 11 : i64} {
  func.func @kernel(%arg0: i32, %arg1: memref<1x16x16x3xf32, #tpu.memory_space<vmem>>, %arg2: memref<27x64xbf16, #tpu.memory_space<vmem>>, %arg3: memref<1x64xf32, #tpu.memory_space<vmem>>, %arg4: memref<896x10xf32, #tpu.memory_space<vmem>>, %arg5: memref<1x10xf32, #tpu.memory_space<vmem>>, %arg6: memref<1x1x10xf32, #tpu.memory_space<vmem>>) attributes {dimension_semantics = [#tpu.dimension_semantics<parallel>], iteration_bounds = array<i64: 2>, scalar_prefetch = 0 : i64, scratch_operands = 0 : i64, tpu.core_type = #tpu.core_type<tc>, window_params = [{transform_indices = @transform_0, window_bounds = array<i64: 1, 16, 16, 3>}, {pipeline_mode = #tpu.pipeline_mode<synchronous>, transform_indices = @transform_1, window_bounds = array<i64: 27, 64>}, {pipeline_mode = #tpu.pipeline_mode<synchronous>, transform_indices = @transform_2, window_bounds = array<i64: 1, 64>}, {pipeline_mode = #tpu.pipeline_mode<synchronous>, transform_indices = @transform_3, window_bounds = array<i64: 896, 10>}, {pipeline_mode = #tpu.pipeline_mode<synchronous>, transform_indices = @transform_4, window_bounds = array<i64: 1, 10>}, {transform_indices = @transform_5, window_bounds = array<i64: 1, 1, 10>}]} {
    %c0 = arith.constant 0 : index
    %c0_0 = arith.constant 0 : index
    %c0_1 = arith.constant 0 : index
    %c0_2 = arith.constant 0 : index
    %0 = vector.load %arg1[%c0, %c0_0, %c0_1, %c0_2] : memref<1x16x16x3xf32, #tpu.memory_space<vmem>>, vector<1x16x16x3xf32>
    %1 = vector.shape_cast %0 : vector<1x16x16x3xf32> to vector<16x16x3xf32>
    %2 = vector.extract_strided_slice %1 {offsets = [0, 0, 0], sizes = [14, 14, 3], strides = [1, 1, 1]} : vector<16x16x3xf32> to vector<14x14x3xf32>
    %3 = vector.extract_strided_slice %1 {offsets = [0, 1, 0], sizes = [14, 14, 3], strides = [1, 1, 1]} : vector<16x16x3xf32> to vector<14x14x3xf32>
    %4 = vector.extract_strided_slice %1 {offsets = [0, 2, 0], sizes = [14, 14, 3], strides = [1, 1, 1]} : vector<16x16x3xf32> to vector<14x14x3xf32>
    %5 = vector.extract_strided_slice %1 {offsets = [1, 0, 0], sizes = [14, 14, 3], strides = [1, 1, 1]} : vector<16x16x3xf32> to vector<14x14x3xf32>
    %6 = vector.extract_strided_slice %1 {offsets = [1, 1, 0], sizes = [14, 14, 3], strides = [1, 1, 1]} : vector<16x16x3xf32> to vector<14x14x3xf32>
    %7 = vector.extract_strided_slice %1 {offsets = [1, 2, 0], sizes = [14, 14, 3], strides = [1, 1, 1]} : vector<16x16x3xf32> to vector<14x14x3xf32>
    %8 = vector.extract_strided_slice %1 {offsets = [2, 0, 0], sizes = [14, 14, 3], strides = [1, 1, 1]} : vector<16x16x3xf32> to vector<14x14x3xf32>
    %9 = vector.extract_strided_slice %1 {offsets = [2, 1, 0], sizes = [14, 14, 3], strides = [1, 1, 1]} : vector<16x16x3xf32> to vector<14x14x3xf32>
    %10 = vector.extract_strided_slice %1 {offsets = [2, 2, 0], sizes = [14, 14, 3], strides = [1, 1, 1]} : vector<16x16x3xf32> to vector<14x14x3xf32>
    %11 = tpu.concatenate %2, %3, %4, %5, %6, %7, %8, %9, %10 in 2 : vector<14x14x3xf32>, vector<14x14x3xf32>, vector<14x14x3xf32>, vector<14x14x3xf32>, vector<14x14x3xf32>, vector<14x14x3xf32>, vector<14x14x3xf32>, vector<14x14x3xf32>, vector<14x14x3xf32> -> vector<14x14x27xf32>
    %12 = vector.shape_cast %11 : vector<14x14x27xf32> to vector<196x27xf32>
    %13 = arith.truncf %12 : vector<196x27xf32> to vector<196x27xbf16>
    %c0_3 = arith.constant 0 : index
    %c0_4 = arith.constant 0 : index
    %14 = vector.load %arg2[%c0_3, %c0_4] : memref<27x64xbf16, #tpu.memory_space<vmem>>, vector<27x64xbf16>
    %cst = arith.constant dense<0.000000e+00> : vector<196x64xf32>
    %15 = tpu.matmul %13, %14, %cst {dimension_numbers = #tpu.dot_dimension_numbers<[1], [0], [0], [1], [0, 0, 1, 1], [], []>} : vector<196x27xbf16>, vector<27x64xbf16>, vector<196x64xf32> -> vector<196x64xf32>
    %c0_5 = arith.constant 0 : index
    %c0_6 = arith.constant 0 : index
    %16 = vector.load %arg3[%c0_5, %c0_6] : memref<1x64xf32, #tpu.memory_space<vmem>>, vector<1x64xf32>
    %17 = vector.broadcast %16 : vector<1x64xf32> to vector<196x64xf32>
    %18 = arith.addf %15, %17 : vector<196x64xf32>
    %cst_7 = arith.constant 0.000000e+00 : f32
    %19 = vector.broadcast %cst_7 : f32 to vector<196x64xf32>
    %20 = arith.maximumf %18, %19 : vector<196x64xf32>
    %21 = vector.shape_cast %20 : vector<196x64xf32> to vector<14x14x64xf32>
    %22 = vector.extract_strided_slice %21 {offsets = [0, 0, 0], sizes = [5, 5, 64], strides = [1, 1, 1]} : vector<14x14x64xf32> to vector<5x5x64xf32>
    %cst_8 = arith.constant dense<0xFF800000> : vector<5x64xf32>
    %23 = vector.multi_reduction <maximumf>, %22, %cst_8 [0] : vector<5x5x64xf32> to vector<5x64xf32>
    %cst_9 = arith.constant dense<0xFF800000> : vector<64xf32>
    %24 = vector.multi_reduction <maximumf>, %23, %cst_9 [0] : vector<5x64xf32> to vector<64xf32>
    %25 = vector.shape_cast %24 : vector<64xf32> to vector<1x64xf32>
    %26 = vector.extract_strided_slice %21 {offsets = [0, 4, 0], sizes = [5, 6, 64], strides = [1, 1, 1]} : vector<14x14x64xf32> to vector<5x6x64xf32>
    %cst_10 = arith.constant dense<0xFF800000> : vector<6x64xf32>
    %27 = vector.multi_reduction <maximumf>, %26, %cst_10 [0] : vector<5x6x64xf32> to vector<6x64xf32>
    %cst_11 = arith.constant dense<0xFF800000> : vector<64xf32>
    %28 = vector.multi_reduction <maximumf>, %27, %cst_11 [0] : vector<6x64xf32> to vector<64xf32>
    %29 = vector.shape_cast %28 : vector<64xf32> to vector<1x64xf32>
    %30 = vector.extract_strided_slice %21 {offsets = [0, 9, 0], sizes = [5, 5, 64], strides = [1, 1, 1]} : vector<14x14x64xf32> to vector<5x5x64xf32>
    %cst_12 = arith.constant dense<0xFF800000> : vector<5x64xf32>
    %31 = vector.multi_reduction <maximumf>, %30, %cst_12 [0] : vector<5x5x64xf32> to vector<5x64xf32>
    %cst_13 = arith.constant dense<0xFF800000> : vector<64xf32>
    %32 = vector.multi_reduction <maximumf>, %31, %cst_13 [0] : vector<5x64xf32> to vector<64xf32>
    %33 = vector.shape_cast %32 : vector<64xf32> to vector<1x64xf32>
    %34 = vector.extract_strided_slice %21 {offsets = [4, 0, 0], sizes = [6, 5, 64], strides = [1, 1, 1]} : vector<14x14x64xf32> to vector<6x5x64xf32>
    %cst_14 = arith.constant dense<0xFF800000> : vector<5x64xf32>
    %35 = vector.multi_reduction <maximumf>, %34, %cst_14 [0] : vector<6x5x64xf32> to vector<5x64xf32>
    %cst_15 = arith.constant dense<0xFF800000> : vector<64xf32>
    %36 = vector.multi_reduction <maximumf>, %35, %cst_15 [0] : vector<5x64xf32> to vector<64xf32>
    %37 = vector.shape_cast %36 : vector<64xf32> to vector<1x64xf32>
    %38 = vector.extract_strided_slice %21 {offsets = [4, 4, 0], sizes = [6, 6, 64], strides = [1, 1, 1]} : vector<14x14x64xf32> to vector<6x6x64xf32>
    %cst_16 = arith.constant dense<0xFF800000> : vector<6x64xf32>
    %39 = vector.multi_reduction <maximumf>, %38, %cst_16 [0] : vector<6x6x64xf32> to vector<6x64xf32>
    %cst_17 = arith.constant dense<0xFF800000> : vector<64xf32>
    %40 = vector.multi_reduction <maximumf>, %39, %cst_17 [0] : vector<6x64xf32> to vector<64xf32>
    %41 = vector.shape_cast %40 : vector<64xf32> to vector<1x64xf32>
    %42 = vector.extract_strided_slice %21 {offsets = [4, 9, 0], sizes = [6, 5, 64], strides = [1, 1, 1]} : vector<14x14x64xf32> to vector<6x5x64xf32>
    %cst_18 = arith.constant dense<0xFF800000> : vector<5x64xf32>
    %43 = vector.multi_reduction <maximumf>, %42, %cst_18 [0] : vector<6x5x64xf32> to vector<5x64xf32>
    %cst_19 = arith.constant dense<0xFF800000> : vector<64xf32>
    %44 = vector.multi_reduction <maximumf>, %43, %cst_19 [0] : vector<5x64xf32> to vector<64xf32>
    %45 = vector.shape_cast %44 : vector<64xf32> to vector<1x64xf32>
    %46 = vector.extract_strided_slice %21 {offsets = [9, 0, 0], sizes = [5, 5, 64], strides = [1, 1, 1]} : vector<14x14x64xf32> to vector<5x5x64xf32>
    %cst_20 = arith.constant dense<0xFF800000> : vector<5x64xf32>
    %47 = vector.multi_reduction <maximumf>, %46, %cst_20 [0] : vector<5x5x64xf32> to vector<5x64xf32>
    %cst_21 = arith.constant dense<0xFF800000> : vector<64xf32>
    %48 = vector.multi_reduction <maximumf>, %47, %cst_21 [0] : vector<5x64xf32> to vector<64xf32>
    %49 = vector.shape_cast %48 : vector<64xf32> to vector<1x64xf32>
    %50 = vector.extract_strided_slice %21 {offsets = [9, 4, 0], sizes = [5, 6, 64], strides = [1, 1, 1]} : vector<14x14x64xf32> to vector<5x6x64xf32>
    %cst_22 = arith.constant dense<0xFF800000> : vector<6x64xf32>
    %51 = vector.multi_reduction <maximumf>, %50, %cst_22 [0] : vector<5x6x64xf32> to vector<6x64xf32>
    %cst_23 = arith.constant dense<0xFF800000> : vector<64xf32>
    %52 = vector.multi_reduction <maximumf>, %51, %cst_23 [0] : vector<6x64xf32> to vector<64xf32>
    %53 = vector.shape_cast %52 : vector<64xf32> to vector<1x64xf32>
    %54 = vector.extract_strided_slice %21 {offsets = [9, 9, 0], sizes = [5, 5, 64], strides = [1, 1, 1]} : vector<14x14x64xf32> to vector<5x5x64xf32>
    %cst_24 = arith.constant dense<0xFF800000> : vector<5x64xf32>
    %55 = vector.multi_reduction <maximumf>, %54, %cst_24 [0] : vector<5x5x64xf32> to vector<5x64xf32>
    %cst_25 = arith.constant dense<0xFF800000> : vector<64xf32>
    %56 = vector.multi_reduction <maximumf>, %55, %cst_25 [0] : vector<5x64xf32> to vector<64xf32>
    %57 = vector.shape_cast %56 : vector<64xf32> to vector<1x64xf32>
    %58 = vector.extract_strided_slice %21 {offsets = [0, 0, 0], sizes = [7, 7, 64], strides = [1, 1, 1]} : vector<14x14x64xf32> to vector<7x7x64xf32>
    %cst_26 = arith.constant dense<0xFF800000> : vector<7x64xf32>
    %59 = vector.multi_reduction <maximumf>, %58, %cst_26 [0] : vector<7x7x64xf32> to vector<7x64xf32>
    %cst_27 = arith.constant dense<0xFF800000> : vector<64xf32>
    %60 = vector.multi_reduction <maximumf>, %59, %cst_27 [0] : vector<7x64xf32> to vector<64xf32>
    %61 = vector.shape_cast %60 : vector<64xf32> to vector<1x64xf32>
    %62 = vector.extract_strided_slice %21 {offsets = [0, 7, 0], sizes = [7, 7, 64], strides = [1, 1, 1]} : vector<14x14x64xf32> to vector<7x7x64xf32>
    %cst_28 = arith.constant dense<0xFF800000> : vector<7x64xf32>
    %63 = vector.multi_reduction <maximumf>, %62, %cst_28 [0] : vector<7x7x64xf32> to vector<7x64xf32>
    %cst_29 = arith.constant dense<0xFF800000> : vector<64xf32>
    %64 = vector.multi_reduction <maximumf>, %63, %cst_29 [0] : vector<7x64xf32> to vector<64xf32>
    %65 = vector.shape_cast %64 : vector<64xf32> to vector<1x64xf32>
    %66 = vector.extract_strided_slice %21 {offsets = [7, 0, 0], sizes = [7, 7, 64], strides = [1, 1, 1]} : vector<14x14x64xf32> to vector<7x7x64xf32>
    %cst_30 = arith.constant dense<0xFF800000> : vector<7x64xf32>
    %67 = vector.multi_reduction <maximumf>, %66, %cst_30 [0] : vector<7x7x64xf32> to vector<7x64xf32>
    %cst_31 = arith.constant dense<0xFF800000> : vector<64xf32>
    %68 = vector.multi_reduction <maximumf>, %67, %cst_31 [0] : vector<7x64xf32> to vector<64xf32>
    %69 = vector.shape_cast %68 : vector<64xf32> to vector<1x64xf32>
    %70 = vector.extract_strided_slice %21 {offsets = [7, 7, 0], sizes = [7, 7, 64], strides = [1, 1, 1]} : vector<14x14x64xf32> to vector<7x7x64xf32>
    %cst_32 = arith.constant dense<0xFF800000> : vector<7x64xf32>
    %71 = vector.multi_reduction <maximumf>, %70, %cst_32 [0] : vector<7x7x64xf32> to vector<7x64xf32>
    %cst_33 = arith.constant dense<0xFF800000> : vector<64xf32>
    %72 = vector.multi_reduction <maximumf>, %71, %cst_33 [0] : vector<7x64xf32> to vector<64xf32>
    %73 = vector.shape_cast %72 : vector<64xf32> to vector<1x64xf32>
    %74 = arith.maximumf %61, %65 : vector<1x64xf32>
    %75 = arith.maximumf %74, %69 : vector<1x64xf32>
    %76 = arith.maximumf %75, %73 : vector<1x64xf32>
    %c0_34 = arith.constant 0 : index
    %c0_35 = arith.constant 0 : index
    %77 = vector.load %arg5[%c0_34, %c0_35] : memref<1x10xf32, #tpu.memory_space<vmem>>, vector<1x10xf32>
    %c0_36 = arith.constant 0 : index
    %c0_37 = arith.constant 0 : index
    %78 = vector.load %arg4[%c0_36, %c0_37] : memref<896x10xf32, #tpu.memory_space<vmem>>, vector<64x10xf32>
    %cst_38 = arith.constant dense<0.000000e+00> : vector<1x10xf32>
    %79 = tpu.matmul %25, %78, %cst_38 {dimension_numbers = #tpu.dot_dimension_numbers<[1], [0], [0], [1], [0, 0, 1, 1], [], []>} : vector<1x64xf32>, vector<64x10xf32>, vector<1x10xf32> -> vector<1x10xf32>
    %80 = arith.addf %77, %79 : vector<1x10xf32>
    %c64 = arith.constant 64 : index
    %c0_39 = arith.constant 0 : index
    %81 = vector.load %arg4[%c64, %c0_39] : memref<896x10xf32, #tpu.memory_space<vmem>>, vector<64x10xf32>
    %cst_40 = arith.constant dense<0.000000e+00> : vector<1x10xf32>
    %82 = tpu.matmul %29, %81, %cst_40 {dimension_numbers = #tpu.dot_dimension_numbers<[1], [0], [0], [1], [0, 0, 1, 1], [], []>} : vector<1x64xf32>, vector<64x10xf32>, vector<1x10xf32> -> vector<1x10xf32>
    %83 = arith.addf %80, %82 : vector<1x10xf32>
    %c128 = arith.constant 128 : index
    %c0_41 = arith.constant 0 : index
    %84 = vector.load %arg4[%c128, %c0_41] : memref<896x10xf32, #tpu.memory_space<vmem>>, vector<64x10xf32>
    %cst_42 = arith.constant dense<0.000000e+00> : vector<1x10xf32>
    %85 = tpu.matmul %33, %84, %cst_42 {dimension_numbers = #tpu.dot_dimension_numbers<[1], [0], [0], [1], [0, 0, 1, 1], [], []>} : vector<1x64xf32>, vector<64x10xf32>, vector<1x10xf32> -> vector<1x10xf32>
    %86 = arith.addf %83, %85 : vector<1x10xf32>
    %c192 = arith.constant 192 : index
    %c0_43 = arith.constant 0 : index
    %87 = vector.load %arg4[%c192, %c0_43] : memref<896x10xf32, #tpu.memory_space<vmem>>, vector<64x10xf32>
    %cst_44 = arith.constant dense<0.000000e+00> : vector<1x10xf32>
    %88 = tpu.matmul %37, %87, %cst_44 {dimension_numbers = #tpu.dot_dimension_numbers<[1], [0], [0], [1], [0, 0, 1, 1], [], []>} : vector<1x64xf32>, vector<64x10xf32>, vector<1x10xf32> -> vector<1x10xf32>
    %89 = arith.addf %86, %88 : vector<1x10xf32>
    %c256 = arith.constant 256 : index
    %c0_45 = arith.constant 0 : index
    %90 = vector.load %arg4[%c256, %c0_45] : memref<896x10xf32, #tpu.memory_space<vmem>>, vector<64x10xf32>
    %cst_46 = arith.constant dense<0.000000e+00> : vector<1x10xf32>
    %91 = tpu.matmul %41, %90, %cst_46 {dimension_numbers = #tpu.dot_dimension_numbers<[1], [0], [0], [1], [0, 0, 1, 1], [], []>} : vector<1x64xf32>, vector<64x10xf32>, vector<1x10xf32> -> vector<1x10xf32>
    %92 = arith.addf %89, %91 : vector<1x10xf32>
    %c320 = arith.constant 320 : index
    %c0_47 = arith.constant 0 : index
    %93 = vector.load %arg4[%c320, %c0_47] : memref<896x10xf32, #tpu.memory_space<vmem>>, vector<64x10xf32>
    %cst_48 = arith.constant dense<0.000000e+00> : vector<1x10xf32>
    %94 = tpu.matmul %45, %93, %cst_48 {dimension_numbers = #tpu.dot_dimension_numbers<[1], [0], [0], [1], [0, 0, 1, 1], [], []>} : vector<1x64xf32>, vector<64x10xf32>, vector<1x10xf32> -> vector<1x10xf32>
    %95 = arith.addf %92, %94 : vector<1x10xf32>
    %c384 = arith.constant 384 : index
    %c0_49 = arith.constant 0 : index
    %96 = vector.load %arg4[%c384, %c0_49] : memref<896x10xf32, #tpu.memory_space<vmem>>, vector<64x10xf32>
    %cst_50 = arith.constant dense<0.000000e+00> : vector<1x10xf32>
    %97 = tpu.matmul %49, %96, %cst_50 {dimension_numbers = #tpu.dot_dimension_numbers<[1], [0], [0], [1], [0, 0, 1, 1], [], []>} : vector<1x64xf32>, vector<64x10xf32>, vector<1x10xf32> -> vector<1x10xf32>
    %98 = arith.addf %95, %97 : vector<1x10xf32>
    %c448 = arith.constant 448 : index
    %c0_51 = arith.constant 0 : index
    %99 = vector.load %arg4[%c448, %c0_51] : memref<896x10xf32, #tpu.memory_space<vmem>>, vector<64x10xf32>
    %cst_52 = arith.constant dense<0.000000e+00> : vector<1x10xf32>
    %100 = tpu.matmul %53, %99, %cst_52 {dimension_numbers = #tpu.dot_dimension_numbers<[1], [0], [0], [1], [0, 0, 1, 1], [], []>} : vector<1x64xf32>, vector<64x10xf32>, vector<1x10xf32> -> vector<1x10xf32>
    %101 = arith.addf %98, %100 : vector<1x10xf32>
    %c512 = arith.constant 512 : index
    %c0_53 = arith.constant 0 : index
    %102 = vector.load %arg4[%c512, %c0_53] : memref<896x10xf32, #tpu.memory_space<vmem>>, vector<64x10xf32>
    %cst_54 = arith.constant dense<0.000000e+00> : vector<1x10xf32>
    %103 = tpu.matmul %57, %102, %cst_54 {dimension_numbers = #tpu.dot_dimension_numbers<[1], [0], [0], [1], [0, 0, 1, 1], [], []>} : vector<1x64xf32>, vector<64x10xf32>, vector<1x10xf32> -> vector<1x10xf32>
    %104 = arith.addf %101, %103 : vector<1x10xf32>
    %c576 = arith.constant 576 : index
    %c0_55 = arith.constant 0 : index
    %105 = vector.load %arg4[%c576, %c0_55] : memref<896x10xf32, #tpu.memory_space<vmem>>, vector<64x10xf32>
    %cst_56 = arith.constant dense<0.000000e+00> : vector<1x10xf32>
    %106 = tpu.matmul %61, %105, %cst_56 {dimension_numbers = #tpu.dot_dimension_numbers<[1], [0], [0], [1], [0, 0, 1, 1], [], []>} : vector<1x64xf32>, vector<64x10xf32>, vector<1x10xf32> -> vector<1x10xf32>
    %107 = arith.addf %104, %106 : vector<1x10xf32>
    %c640 = arith.constant 640 : index
    %c0_57 = arith.constant 0 : index
    %108 = vector.load %arg4[%c640, %c0_57] : memref<896x10xf32, #tpu.memory_space<vmem>>, vector<64x10xf32>
    %cst_58 = arith.constant dense<0.000000e+00> : vector<1x10xf32>
    %109 = tpu.matmul %65, %108, %cst_58 {dimension_numbers = #tpu.dot_dimension_numbers<[1], [0], [0], [1], [0, 0, 1, 1], [], []>} : vector<1x64xf32>, vector<64x10xf32>, vector<1x10xf32> -> vector<1x10xf32>
    %110 = arith.addf %107, %109 : vector<1x10xf32>
    %c704 = arith.constant 704 : index
    %c0_59 = arith.constant 0 : index
    %111 = vector.load %arg4[%c704, %c0_59] : memref<896x10xf32, #tpu.memory_space<vmem>>, vector<64x10xf32>
    %cst_60 = arith.constant dense<0.000000e+00> : vector<1x10xf32>
    %112 = tpu.matmul %69, %111, %cst_60 {dimension_numbers = #tpu.dot_dimension_numbers<[1], [0], [0], [1], [0, 0, 1, 1], [], []>} : vector<1x64xf32>, vector<64x10xf32>, vector<1x10xf32> -> vector<1x10xf32>
    %113 = arith.addf %110, %112 : vector<1x10xf32>
    %c768 = arith.constant 768 : index
    %c0_61 = arith.constant 0 : index
    %114 = vector.load %arg4[%c768, %c0_61] : memref<896x10xf32, #tpu.memory_space<vmem>>, vector<64x10xf32>
    %cst_62 = arith.constant dense<0.000000e+00> : vector<1x10xf32>
    %115 = tpu.matmul %73, %114, %cst_62 {dimension_numbers = #tpu.dot_dimension_numbers<[1], [0], [0], [1], [0, 0, 1, 1], [], []>} : vector<1x64xf32>, vector<64x10xf32>, vector<1x10xf32> -> vector<1x10xf32>
    %116 = arith.addf %113, %115 : vector<1x10xf32>
    %c832 = arith.constant 832 : index
    %c0_63 = arith.constant 0 : index
    %117 = vector.load %arg4[%c832, %c0_63] : memref<896x10xf32, #tpu.memory_space<vmem>>, vector<64x10xf32>
    %cst_64 = arith.constant dense<0.000000e+00> : vector<1x10xf32>
    %118 = tpu.matmul %76, %117, %cst_64 {dimension_numbers = #tpu.dot_dimension_numbers<[1], [0], [0], [1], [0, 0, 1, 1], [], []>} : vector<1x64xf32>, vector<64x10xf32>, vector<1x10xf32> -> vector<1x10xf32>
    %119 = arith.addf %116, %118 : vector<1x10xf32>
    %c0_65 = arith.constant 0 : index
    %c0_66 = arith.constant 0 : index
    %c0_67 = arith.constant 0 : index
    %120 = vector.load %arg6[%c0_65, %c0_66, %c0_67] : memref<1x1x10xf32, #tpu.memory_space<vmem>>, vector<1x1x10xf32>
    %121 = vector.shape_cast %120 : vector<1x1x10xf32> to vector<1x10xf32>
    %122 = vector.shape_cast %119 : vector<1x10xf32> to vector<1x1x10xf32>
    tpu.vector_store %arg6[%c0_65, %c0_66, %c0_67], %122 {strides = array<i32>} : memref<1x1x10xf32, #tpu.memory_space<vmem>>, vector<1x1x10xf32>,
    return
  }
  func.func @transform_0(%arg0: i32) -> (i32, i32, i32, i32) {
    %c0_i32 = arith.constant 0 : i32
    %c0_i32_0 = arith.constant 0 : i32
    %c0_i32_1 = arith.constant 0 : i32
    %c0_i32_2 = arith.constant 0 : i32
    return %arg0, %c0_i32, %c0_i32_0, %c0_i32_1 : i32, i32, i32, i32
  }
  func.func @transform_1(%arg0: i32) -> (i32, i32) {
    %c0_i32 = arith.constant 0 : i32
    %c0_i32_0 = arith.constant 0 : i32
    %c0_i32_1 = arith.constant 0 : i32
    return %c0_i32, %c0_i32_0 : i32, i32
  }
  func.func @transform_2(%arg0: i32) -> (i32, i32) {
    %c0_i32 = arith.constant 0 : i32
    %c0_i32_0 = arith.constant 0 : i32
    %c0_i32_1 = arith.constant 0 : i32
    return %c0_i32, %c0_i32_0 : i32, i32
  }
  func.func @transform_3(%arg0: i32) -> (i32, i32) {
    %c0_i32 = arith.constant 0 : i32
    %c0_i32_0 = arith.constant 0 : i32
    %c0_i32_1 = arith.constant 0 : i32
    return %c0_i32, %c0_i32_0 : i32, i32
  }
  func.func @transform_4(%arg0: i32) -> (i32, i32) {
    %c0_i32 = arith.constant 0 : i32
    %c0_i32_0 = arith.constant 0 : i32
    %c0_i32_1 = arith.constant 0 : i32
    return %c0_i32, %c0_i32_0 : i32, i32
  }
  func.func @transform_5(%arg0: i32) -> (i32, i32, i32) {
    %c0_i32 = arith.constant 0 : i32
    %c0_i32_0 = arith.constant 0 : i32
    %c0_i32_1 = arith.constant 0 : i32
    return %arg0, %c0_i32, %c0_i32_0 : i32, i32, i32
  }
}

</mosaic_0001>

<bundles_post_ra>
// kernel: custom_conv_forward.1
= control target key start
LH: loop header
LB: loop body
LE: loop exit
PB: predicated region body
PF: predicated region fallthrough
CT: control target
= control target key end

     0   :  { %10 = vsyncpa [#allocation3], 0  ;;  %s8792_s0 = inlined_call_operand.vmem [shape: f32[2,16,16,3], index: 0, kind: input, shape index: {}]   ;;  %s8793_s1 = inlined_call_operand.vmem [shape: bf16[27,64], index: 1, kind: input, shape index: {}]   ;;  %s8794_s2 = inlined_call_operand.vmem [shape: f32[1,64], index: 2, kind: input, shape index: {}]   ;;  %s8795_s3 = inlined_call_operand.vmem [shape: f32[896,10], index: 3, kind: input, shape index: {}]   ;;  %s8796_s4 = inlined_call_operand.vmem [shape: f32[1,10], index: 4, kind: input, shape index: {}]   ;;  %s8797_s5 = inlined_call_operand.hbm [shape: f32[2,1,10], index: 5, kind: output, shape index: {}]  }
   0x1   :  { %12 = vsyncpa [#allocation3 + $0x1], 0  ;;  %s5827_s18 = smov 0   ;;  %s5829_s19 = smov 0  }
   0x2   :  { %s5831_s20 = smov 0   ;;  %s5833_s21 = smov 0  }
   0x3 LB: > { %s5848_s22 = sadd.s32 4294967295, %s5781_s21   ;;  %s4958_s23 = sadd.s32 4294967294, %s5781_s21   ;;  %s5781_s21 = sphi %s5833_s21, %s8889_s21   ;;  %s5777_s20 = sphi %s5831_s20, %s8888_s20   ;;  %s5773_s19 = sphi %s5829_s19, %s8887_s19   ;;  %s5769_s18 = sphi %s5827_s18, %s8886_s18  }
   0x4   : > { %s5852_s24 = sadd.s32 1, %s5781_s21   ;;  %s135_s25 = sadd.s32 1, %s5777_s20 }
   0x5   : > { %s132_s26 = ssub.s32 %s5781_s21, %s5852_s24  ;;  %p145_p0 = scmp.ne.s32.totalorder %s5777_s20, %s5773_s19 }
   0x6   : > { %p133_p1 = scmp.eq.s32.totalorder %s132_s26, 0  ;;  %p146_p2 = scmp.eq.s32.totalorder %s5848_s22, 1 }
   0x7   : > { %p151_p3 = scmp.ne.s32.totalorder %s5773_s19, %s5769_s18  ;;  %p152_p4 = scmp.eq.s32.totalorder %s4958_s23, 1 }
   0x8   : > { %s5863_s27 = scalar_select %p133_p1, %s5777_s20, %s135_s25  }
   0x9   : > { %p5865_p5 = por %p146_p2, %p145_p0  ;;  %p5869_p6 = por %p152_p4, %p151_p3 }
   0xa   : > { %p4961_p7 = scmp.ge.s32.totalorder %s5781_s21, 1  ;;  %p190_p8 = scmp.lt.s32.totalorder %s5781_s21, 3 }
   0xc   : > { %p191_p9 = pnand %p4961_p7, %p190_p8 }
   0xe   : > { %194 = sbr.rel (%p191_p9) target bundleno = 1190 (0x4a6), region = 40 }
  0x15   : > { %p217_p10 = scmp.lt.s32.totalorder %s5848_s22, 1  ;;  %s5783_s10 = smov 9   ;;  %vm283_vm0 = vcmask 1046528   ;;  %vm410_vm1 = vcmask 1045504   ;;  %v5707_v26 = vld [vmem:[%s8793_s1] sm:$0xff]   ;;  %v8800_v27 = vmov 0.0  }
  0x16   : > { %s5784_s11 = smov 6   ;;  %s5785_s12 = smov 3   ;;  %5139 = vmatprep.subr.bf16.mxu0 %v8800_v27  ;;  %vm2295_vm2 = vcmask 1044480   ;;  %v5708_v30 = vld [vmem:[%s8793_s1 + $0x8] sm:$0x3f]   ;;  %v5792_v31 = vmov 65535  }
  0x17   : > { %s218_s30 = scalar_select %p217_p10, %s5848_s22, 1  ;;  %5140 = vmatpush3.bf16.msra.mxu0 %v5707_v26  ;;  %v2296_v32 = vsel %vm2295_vm2, 4294967295, %v5792_v31  ;;  %vm5793_vm3 = vmmov 0   ;;  %vm1057_vm4 = vcmask 23552   ;;  %vm1086_vm5 = vcmask 48128  }
  0x18   : > { %s5786_s13 = smov 12   ;;  %s5787_s14 = smov 15   ;;  %5141 = vmatprep.subr.bf16.mxu0 %v8800_v27  ;;  %v2297_v33 = vsel %vm410_vm1, %v2296_v32, 0  ;;  %5143 = vmatprep.mubr.msk.bf16.mxu0 %vm5793_vm3, %v8800_v27  ;;  %vm1115_vm6 = vcmask 72704   ;;  %vm1144_vm7 = vcmask 97280   ;;  %vm1173_vm8 = vcmask 121856  }
  0x19   : > { %s4997_s6 = sshll.u32 %s218_s30, 8  ;;  %s5788_s15 = smov 18   ;;  %v2299_v36 = vand.u32 %v5708_v30, %v2297_v33  ;;  %5287 = vmatprep.mubr.msk.f32.mxu1 %vm5793_vm3, %v8800_v27  ;;  %vm1202_vm9 = vcmask 146432   ;;  %vm1231_vm10 = vcmask 171008   ;;  %v5794_v32 = vmov 1983009808  }
  0x1a   : > { %s5880_s9 = scalar_lea.vmem %s8792_s0, %s4997_s6  ;;  %s5789_s16 = smov 21   ;;  %v1319_v33 = vunpack.c.l.s4 %v5794_v32  ;;  %vm1260_vm11 = vcmask 195584   ;;  %vm2255_vm12 = vcmask 220160   ;;  %vm3001_vm13 = vcmask 517120  }
  0x1b   : > { %v5883_v0 = vld [vmem:[%s5880_s9 + $0x10] sm:$0xff]  ;;  %v5886_v1 = vld [vmem:[%s5880_s9 + $0x8] sm:$0xff]  ;;  %v5889_v2 = vld [vmem:[%s5880_s9] sm:$0xff]  ;;  %s5790_s17 = smov 24   ;;  %5142 = vmatpush3.bf16.msra.mxu0 %v2299_v36  ;;  %vm3020_vm14 = vcmask 516096   ;;  %vm3113_vm15 = vcmask 517121  }
  0x1c   : > { %539 = vrot.lane.b32.xlu1 %v5883_v0, %s5783_s10  ;;  %v412_v3 = vrot.slane %v5886_v1, 2  ;;  %v285_v4 = vrot.slane %v5886_v1, 1  ;;  %v284_v5 = vrot.slane %v5889_v2, 1  ;;  %v5897_v6 = vld [vmem:[%s5880_s9 + $0x18] sm:$0xff]  ;;  %v287_v7 = vrot.slane %v5883_v0, 1  ;;  %v5921_v16 = vld [vmem:[%s5880_s9 + $0x20] sm:$0xff] }
  0x1d   : > { %v5901_v8 = vrot.slane %v5897_v6, 1  ;;  %v411_v10 = vrot.slane %v5889_v2, 2  ;;  %v414_v13 = vrot.slane %v5883_v0, 2  ;;  %v415_v14 = vrot.slane %v5897_v6, 2  ;;  %v5925_v17 = vld [vmem:[%s5880_s9 + $0x28] sm:$0xff]  ;;  %v5955_v24 = vld [vmem:[%s5880_s9 + $0x30] sm:$0xff] }
  0x1e   : > { %455 = vrot.lane.b32.xlu0 %v412_v3, %s5784_s11  ;;  %v286_v9 = vsel %vm283_vm0, %v284_v5, %v285_v4  ;;  %v290_v18 = vrot.slane %v5921_v16, 1  ;;  %v5931_v19 = vrot.slane %v5925_v17, 1  ;;  %v417_v21 = vrot.slane %v5921_v16, 2  ;;  %v5960_v25 = vld [vmem:[%s5880_s9 + $0x38] sm:$0xff]  ;;  %v6004_v39 = vld [vmem:[%s5880_s9 + $0x40] sm:$0xff]  ;;  %v6007_v40 = vld [vmem:[%s5880_s9 + $0x48] sm:$0xff] }
  0x1f   : > { %v289_v11 = vsel %vm283_vm0, %v287_v7, %v5901_v8  ;;  %v413_v12 = vsel %vm410_vm1, %v411_v10, %v412_v3  ;;  %v416_v15 = vsel %vm410_vm1, %v414_v13, %v415_v14  ;;  %v5940_v22 = vrot.slane %v5925_v17, 2  ;;  %v6049_v47 = vld [vmem:[%s5880_s9 + $0x50] sm:$0xff]  ;;  %v6056_v48 = vld [vmem:[%s5880_s9 + $0x58] sm:$0xff]  ;;  %v6088_v60 = vld [vmem:[%s5880_s9 + $0x60] sm:$0xff]  ;;  %s5796_s7 = smov [#allocation2]  }
  0x20   : > { %328 = vrot.lane.b32.xlu1 %v285_v4, %s5785_s12  ;;  %v292_v20 = vsel %vm283_vm0, %v290_v18, %v5931_v19  ;;  %v293_v28 = vrot.slane %v5955_v24, 1  ;;  %v5970_v29 = vrot.slane %v5960_v25, 1  ;;  %v420_v34 = vrot.slane %v5955_v24, 2  ;;  %v6091_v61 = vld [vmem:[%s5880_s9 + $0x68] sm:$0xff]  ;;  %s5723_s8 = sshll.u32 %s5796_s7, 4  ;;  %s5724_s8 = int_to_ptr.vmem [resolvable:$false] %s5723_s8 }
  0x21   : > { %v419_v23 = vsel %vm410_vm1, %v417_v21, %v5940_v22  ;;  %v5980_v35 = vrot.slane %v5960_v25, 2  ;;  %v296_v41 = vrot.slane %v6004_v39, 1  ;;  %v6012_v42 = vrot.slane %v6007_v40, 1 }
  0x22   : > { %326 = vrot.lane.b32.xlu0 %v286_v9, %s5785_s12  ;;  %v295_v37 = vsel %vm283_vm0, %v293_v28, %v5970_v29  ;;  %v423_v44 = vrot.slane %v6004_v39, 2  ;;  %v6022_v45 = vrot.slane %v6007_v40, 2  ;;  %v299_v49 = vrot.slane %v6049_v47, 1 }
  0x23   : > { %v422_v38 = vsel %vm410_vm1, %v420_v34, %v5980_v35  ;;  %v298_v43 = vsel %vm283_vm0, %v296_v41, %v6012_v42  ;;  %v6062_v50 = vrot.slane %v6056_v48, 1  ;;  %v426_v51 = vrot.slane %v6049_v47, 2 }
  0x24   : > { %626 = vrot.lane.b32.xlu1 %v289_v11, %s5786_s13  ;;  %v425_v46 = vsel %vm410_vm1, %v423_v44, %v6022_v45  ;;  %v6068_v52 = vrot.slane %v6056_v48, 2  ;;  %v302_v63 = vrot.slane %v6088_v60, 1  ;;  %v6096_v3 = vrot.slane %v6091_v61, 1 }
  0x25   : > { %v301_v53 = vsel %vm283_vm0, %v299_v49, %v6062_v50  ;;  %v6108_v9 = vrot.slane %v6091_v61, 2  ;;  %v1320_v44 = vunpack.c.0.s8 %v1319_v33  ;;  %vm3747_vm2 = vcmask 523264  }
  0x26   : > { %453 = vrot.lane.b32.xlu0 %v413_v12, %s5784_s11  ;;  %v428_v54 = vsel %vm410_vm1, %v426_v51, %v6068_v52  ;;  %v6104_v7 = vsel %vm283_vm0, %v302_v63, %v6096_v3 }
  0x28   : > { %541 = vrot.lane.b32.xlu1 %v5897_v6, %s5783_s10 }
  0x2a   : > { %330 = vrot.lane.b32.xlu0 %v289_v11, %s5785_s12 }
  0x2c   : > { %457 = vrot.lane.b32.xlu1 %v416_v15, %s5784_s11 }
  0x2e   : > { %713 = vrot.lane.b32.xlu0 %v416_v15, %s5787_s14 }
  0x30   : > { %799 = vrot.lane.b32.xlu1 %v5921_v16, %s5788_s15 }
  0x32   : > { %628 = vrot.lane.b32.xlu0 %v5901_v8, %s5786_s13 }
  0x34   : > { %715 = vrot.lane.b32.xlu1 %v415_v14, %s5787_s14 }
  0x36   : > { %543 = vrot.lane.b32.xlu0 %v5921_v16, %s5783_s10 }
  0x38   : > { %630 = vrot.lane.b32.xlu1 %v292_v20, %s5786_s13 }
  0x3a   : > { %886 = vrot.lane.b32.xlu0 %v292_v20, %s5789_s16 }
  0x3c   : > { %973 = vrot.lane.b32.xlu1 %v419_v23, %s5790_s17 }
  0x3e   : > { %801 = vrot.lane.b32.xlu0 %v5925_v17, %s5788_s15 }
  0x40   : > { %888 = vrot.lane.b32.xlu1 %v5931_v19, %s5789_s16 }
  0x42   : > { %717 = vrot.lane.b32.xlu0 %v419_v23, %s5787_s14 }
  0x44   : > { %975 = vrot.lane.b32.xlu1 %v5940_v22, %s5790_s17 }
  0x46   : > { %803 = vrot.lane.b32.xlu0 %v5955_v24, %s5788_s15 }
  0x48   : > { %334 = vrot.lane.b32.xlu1 %v292_v20, %s5785_s12 }
  0x4a   : > { %332 = vrot.lane.b32.xlu0 %v5901_v8, %s5785_s12  ;;  %v429_v8 = vrot.slane %v6088_v60, 2 }
  0x4c   : > { %459 = vrot.lane.b32.xlu1 %v415_v14, %s5784_s11  ;;  %v6116_v12 = vsel %vm410_vm1, %v429_v8, %v6108_v9  ;;  %v6172_v8 = vld [vmem:[%s5880_s9 + $0x70] sm:$0xff] }
  0x4e   : > { %890 = vrot.lane.b32.xlu0 %v295_v37, %s5789_s16 }
  0x50   : > { %977 = vrot.lane.b32.xlu1 %v422_v38, %s5790_s17 }
  0x52   : > { %461 = vrot.lane.b32.xlu0 %v419_v23, %s5784_s11 }
  0x54   : > { %547 = vrot.lane.b32.xlu1 %v5955_v24, %s5783_s10 }
  0x56   : > { %545 = vrot.lane.b32.xlu0 %v5925_v17, %s5783_s10 }
  0x58   : > { %634 = vrot.lane.b32.xlu1 %v295_v37, %s5786_s13 }
  0x5a   : > { %632 = vrot.lane.b32.xlu0 %v5931_v19, %s5786_s13 }
  0x5c   : > { %721 = vrot.lane.b32.xlu1 %v422_v38, %s5787_s14 }
  0x5e   : > { %719 = vrot.lane.b32.xlu0 %v5940_v22, %s5787_s14 }
  0x60   : > { %807 = vrot.lane.b32.xlu1 %v6004_v39, %s5788_s15 }
  0x62   : > { %805 = vrot.lane.b32.xlu0 %v5960_v25, %s5788_s15 }
  0x64   : > { %894 = vrot.lane.b32.xlu1 %v298_v43, %s5789_s16 }
  0x66   : > { %892 = vrot.lane.b32.xlu0 %v5970_v29, %s5789_s16 }
  0x68   : > { %981 = vrot.lane.b32.xlu1 %v425_v46, %s5790_s17 }
  0x6a   : > { %979 = vrot.lane.b32.xlu0 %v5980_v35, %s5790_s17 }
  0x6c   : > { %338 = vrot.lane.b32.xlu1 %v295_v37, %s5785_s12 }
  0x6e   : > { %336 = vrot.lane.b32.xlu0 %v5931_v19, %s5785_s12 }
  0x70   : > { %465 = vrot.lane.b32.xlu1 %v422_v38, %s5784_s11 }
  0x72   : > { %463 = vrot.lane.b32.xlu0 %v5940_v22, %s5784_s11 }
  0x74   : > { %551 = vrot.lane.b32.xlu1 %v6004_v39, %s5783_s10 }
  0x76   : > { %549 = vrot.lane.b32.xlu0 %v5960_v25, %s5783_s10 }
  0x78   : > { %638 = vrot.lane.b32.xlu1 %v298_v43, %s5786_s13 }
  0x7a   : > { %636 = vrot.lane.b32.xlu0 %v5970_v29, %s5786_s13 }
  0x7c   : > { %725 = vrot.lane.b32.xlu1 %v425_v46, %s5787_s14 }
  0x7e   : > { %723 = vrot.lane.b32.xlu0 %v5980_v35, %s5787_s14 }
  0x80   : > { %811 = vrot.lane.b32.xlu1 %v6049_v47, %s5788_s15 }
  0x82   : > { %809 = vrot.lane.b32.xlu0 %v6007_v40, %s5788_s15 }
  0x84   : > { %896 = vrot.lane.b32.xlu1 %v6012_v42, %s5789_s16 }
  0x86   : > { %342 = vrot.lane.b32.xlu0 %v298_v43, %s5785_s12 }
  0x88   : > { %469 = vrot.lane.b32.xlu1 %v425_v46, %s5784_s11 }
  0x8a   : > { %898 = vrot.lane.b32.xlu0 %v301_v53, %s5789_s16 }
  0x8c   : > { %985 = vrot.lane.b32.xlu1 %v428_v54, %s5790_s17 }
  0x8e   : > { %v540_v55 = vpop.permute.xlu1 %539  ;;  %983 = vrot.lane.b32.xlu0 %v6022_v45, %s5790_s17 }
  0x90   : > { %v456_v56 = vpop.permute.xlu0 %455  ;;  %555 = vrot.lane.b32.xlu1 %v6049_v47, %s5783_s10 }
  0x92   : > { %v329_v57 = vpop.permute.xlu1 %328  ;;  %340 = vrot.lane.b32.xlu0 %v5970_v29, %s5785_s12 }
  0x93   : > { %v1059_v23 = vsel %vm1057_vm4, %v5886_v1, %v329_v57 }
  0x94   : > { %642 = vrot.lane.b32.xlu1 %v301_v53, %s5786_s13  ;;  %v327_v58 = vpop.permute.xlu0 %326  ;;  %v1088_v30 = vsel %vm1086_vm5, %v1059_v23, %v456_v56 }
  0x95   : > { %v1058_v14 = vsel %vm1057_vm4, %v5889_v2, %v327_v58 }
  0x96   : > { %v627_v59 = vpop.permute.xlu1 %626  ;;  %467 = vrot.lane.b32.xlu0 %v5980_v35, %s5784_s11  ;;  %v1321_v35 = vlaneseq }
  0x98   : > { %729 = vrot.lane.b32.xlu1 %v428_v54, %s5787_s14  ;;  %v454_v62 = vpop.permute.xlu0 %453  ;;  %v1322_v46 = vshrl.u32 %v1321_v35, 7 }
  0x99   : > { %v1087_v18 = vsel %vm1086_vm5, %v1058_v14, %v454_v62 }
  0x9a   : > { %v542_v4 = vpop.permute.xlu1 %541  ;;  %553 = vrot.lane.b32.xlu0 %v6007_v40, %s5783_s10  ;;  %v1116_v20 = vsel %vm1115_vm6, %v1087_v18, %v540_v55  ;;  %v6156_v55 = vsub.s32 %v1320_v44, %v1322_v46 }
  0x9b   : > { %v1145_v22 = vsel %vm1144_vm7, %v1116_v20, %v627_v59  ;;  %v1117_v34 = vsel %vm1115_vm6, %v1088_v30, %v542_v4 }
  0x9c   : > { %815 = vrot.lane.b32.xlu1 %v6088_v60, %s5788_s15  ;;  %v331_v5 = vpop.permute.xlu0 %330 }
  0x9e   : > { %v458_v10 = vpop.permute.xlu1 %457  ;;  %640 = vrot.lane.b32.xlu0 %v6012_v42, %s5786_s13 }
  0xa0   : > { %902 = vrot.lane.b32.xlu1 %v6104_v7, %s5789_s16  ;;  %v714_v11 = vpop.permute.xlu0 %713 }
  0xa1   : > { %v1174_v26 = vsel %vm1173_vm8, %v1145_v22, %v714_v11  ;;  %v6182_v22 = vld [vmem:[%s5880_s9 + $0x78] sm:$0xff] }
  0xa2   : > { %v800_v13 = vpop.permute.xlu1 %799  ;;  %727 = vrot.lane.b32.xlu0 %v6022_v45, %s5787_s14  ;;  %v6190_v30 = vrot.slane %v6182_v22, 1  ;;  %v6200_v35 = vrot.slane %v6182_v22, 2 }
  0xa3   : > { %v1203_v31 = vsel %vm1202_vm9, %v1174_v26, %v800_v13 }
  0xa4   : > { %989 = vrot.lane.b32.xlu1 %v6116_v12, %s5790_s17  ;;  %v629_v15 = vpop.permute.xlu0 %628 }
  0xa5   : > { %v1146_v37 = vsel %vm1144_vm7, %v1117_v34, %v629_v15 }
  0xa6   : > { %v716_v19 = vpop.permute.xlu1 %715  ;;  %813 = vrot.lane.b32.xlu0 %v6056_v48, %s5788_s15 }
  0xa7   : > { %v1175_v43 = vsel %vm1173_vm8, %v1146_v37, %v716_v19 }
  0xa8   : > { %900 = vrot.lane.b32.xlu1 %v6062_v50, %s5789_s16  ;;  %v544_v21 = vpop.permute.xlu0 %543 }
  0xaa   : > { %v631_v2 = vpop.permute.xlu1 %630  ;;  %346 = vrot.lane.b32.xlu0 %v301_v53, %s5785_s12 }
  0xac   : > { %987 = vrot.lane.b32.xlu1 %v6068_v52, %s5790_s17  ;;  %v887_v28 = vpop.permute.xlu0 %886 }
  0xad   : > { %v1232_v1 = vsel %vm1231_vm10, %v1203_v31, %v887_v28 }
  0xae   : > { %v974_v29 = vpop.permute.xlu1 %973  ;;  %473 = vrot.lane.b32.xlu0 %v428_v54, %s5784_s11 }
  0xaf   : > { %v1261_v41 = vsel %vm1260_vm11, %v1232_v1, %v974_v29  ;;  %v305_v29 = vrot.slane %v6172_v8, 1 }
  0xb0   : > { %559 = vrot.lane.b32.xlu1 %v6088_v60, %s5783_s10  ;;  %v802_v36 = vpop.permute.xlu0 %801  ;;  %v1317_v53 = vcombine.high %v1261_v41, %v1261_v41 }
  0xb1   : > { %v1204_v51 = vsel %vm1202_vm9, %v1175_v43, %v802_v36 }
  0xb2   : > { %v889_v38 = vpop.permute.xlu1 %888  ;;  %344 = vrot.lane.b32.xlu0 %v6012_v42, %s5785_s12  ;;  %v1060_v42 = vsel %vm1057_vm4, %v5883_v0, %v331_v5  ;;  %v1331_v62 = vrot.slane %v1317_v53, %v6156_v55 }
  0xb3   : > { %v1233_v56 = vsel %vm1231_vm10, %v1204_v51, %v889_v38  ;;  %v1089_v59 = vsel %vm1086_vm5, %v1060_v42, %v458_v10 }
  0xb4   : > { %646 = vrot.lane.b32.xlu1 %v6104_v7, %s5786_s13  ;;  %v718_v49 = vpop.permute.xlu0 %717  ;;  %v1118_v0 = vsel %vm1115_vm6, %v1089_v59, %v544_v21  ;;  %v1333_v11 = vcombine.high %v1331_v62, %v1331_v62 }
  0xb5   : > { %v1147_v10 = vsel %vm1144_vm7, %v1118_v0, %v631_v2 }
  0xb6   : > { %v976_v54 = vpop.permute.xlu1 %975  ;;  %471 = vrot.lane.b32.xlu0 %v6022_v45, %s5784_s11  ;;  %v1324_v45 = vrot.slane %v1261_v41, %v6156_v55  ;;  %v1176_v14 = vsel %vm1173_vm8, %v1147_v10, %v718_v49  ;;  %v1780_v23 = vcombine.low %v1331_v62, %v1333_v11  ;;  %v6208_v41 = vsel %vm283_vm0, %v305_v29, %v6190_v30 }
  0xb7   : > { %v1262_v58 = vsel %vm1260_vm11, %v1233_v56, %v976_v54 }
  0xb8   : > { %557 = vrot.lane.b32.xlu1 %v6056_v48, %s5783_s10  ;;  %v804_v57 = vpop.permute.xlu0 %803  ;;  %v1341_v4 = vrot.slane %v1262_v58, %v6156_v55  ;;  %v1332_v15 = vcombine.high %v1324_v45, %v1324_v45  ;;  %v1334_v18 = vcombine.high %v1262_v58, %v1262_v58  ;;  %v1794_v36 = vrot.slane %v1780_v23, %v6156_v55 }
  0xb9   : > { %v1205_v20 = vsel %vm1202_vm9, %v1176_v14, %v804_v57 }
  0xba   : > { %v335_v63 = vpop.permute.xlu1 %334  ;;  %348 = vrot.lane.b32.xlu0 %v6062_v50, %s5785_s12  ;;  %v1349_v19 = vcombine.high %v1341_v4, %v1341_v4  ;;  %v1779_v31 = vcombine.low %v1324_v45, %v1332_v15  ;;  %v1348_v32 = vrot.slane %v1334_v18, %v6156_v55 }
  0xbb   : > { %v1062_v59 = vsel %vm1057_vm4, %v5921_v16, %v335_v63 }
  0xbc   : > { %475 = vrot.lane.b32.xlu1 %v6068_v52, %s5784_s11  ;;  %v333_v5 = vpop.permute.xlu0 %332  ;;  %v1796_v33 = vcombine.low %v1341_v4, %v1349_v19 }
  0xbd   : > { %v1061_v45 = vsel %vm1057_vm4, %v5897_v6, %v333_v5 }
  0xbe   : > { %v460_v13 = vpop.permute.xlu1 %459  ;;  %733 = vrot.lane.b32.xlu0 %v6116_v12, %s5787_s14  ;;  %v1804_v43 = vrot.slane %v1796_v33, %v6156_v55 }
  0xbf   : > { %v1090_v16 = vsel %vm1086_vm5, %v1061_v45, %v460_v13 }
  0xc0   : > { %819 = vrot.lane.b32.xlu1 %v6172_v8, %s5788_s15  ;;  %v891_v21 = vpop.permute.xlu0 %890 }
  0xc1   : > { %v1234_v2 = vsel %vm1231_vm10, %v1205_v20, %v891_v21 }
  0xc2   : > { %v978_v26 = vpop.permute.xlu1 %977  ;;  %644 = vrot.lane.b32.xlu0 %v6062_v50, %s5786_s13  ;;  %v432_v50 = vrot.slane %v6172_v8, 2 }
  0xc3   : > { %v1263_v28 = vsel %vm1260_vm11, %v1234_v2, %v978_v26 }
  0xc4   : > { %v6194_v34 = vrot.slane %v1263_v28, %v6156_v55  ;;  %731 = vrot.lane.b32.xlu1 %v6068_v52, %s5787_s14  ;;  %v462_v1 = vpop.permute.xlu0 %461  ;;  %v1787_v52 = vrot.slane %v1779_v31, %v6156_v55  ;;  %v6217_v49 = vsel %vm410_vm1, %v432_v50, %v6200_v35  ;;  %v1350_v63 = vcombine.high %v1263_v28, %v1263_v28 }
  0xc5   : > { %v1091_v0 = vsel %vm1086_vm5, %v1062_v59, %v462_v1  ;;  %v6284_v59 = vld [vmem:[%s5880_s9 + $0x80] sm:$0xff] }
  0xc6   : > { %v1797_v37 = vcombine.low %v1348_v32, %v6194_v34  ;;  %v548_v38 = vpop.permute.xlu1 %547  ;;  %561 = vrot.lane.b32.xlu0 %v6091_v61, %s5783_s10  ;;  %v1795_v51 = vcombine.low %v1787_v52, %v1794_v36  ;;  %v1364_v20 = vrot.slane %v1350_v63, %v6156_v55  ;;  %v1365_v23 = vcombine.high %v6194_v34, %v6194_v34 }
  0xc7   : > { %v1120_v10 = vsel %vm1115_vm6, %v1091_v0, %v548_v38 }
  0xc8   : > { %v1811_v44 = vrot.slane %v1797_v37, %v6156_v55  ;;  %648 = vrot.lane.b32.xlu1 %v6096_v3, %s5786_s13  ;;  %v546_v46 = vpop.permute.xlu0 %545  ;;  %v1366_v34 = vcombine.high %v1364_v20, %v1364_v20  ;;  %v1813_v36 = vcombine.low %v1365_v23, %v1364_v20 }
  0xc9   : > { %v1119_v14 = vsel %vm1115_vm6, %v1090_v16, %v546_v46 }
  0xca   : > { %v1812_v53 = vcombine.low %v1804_v43, %v1811_v44  ;;  %v635_v54 = vpop.permute.xlu1 %634  ;;  %906 = vrot.lane.b32.xlu0 %v6208_v41, %s5789_s16 }
  0xcc   : > { %993 = vrot.lane.b32.xlu1 %v6217_v49, %s5790_s17  ;;  %v633_v42 = vpop.permute.xlu0 %632  ;;  %v2220_v56 = vpack.c.bf16 %v1812_v53, %v1795_v51  ;;  %v1821_v53 = vrot.slane %v1813_v36, %v6156_v55 }
  0xce   : > { %v722_v57 = vpop.permute.xlu1 %721  ;;  %817 = vrot.lane.b32.xlu0 %v6091_v61, %s5788_s15  ;;  %5144 = vmatmul.mubr.msk.bf16.vlgmr.msra.gmra.mrb[0].mxu0 %vm2255_vm12, %v2220_v56 }
  0xcf   : > { %5147 = vmatprep.mubr.msk.bf16.mxu0 %vm5793_vm3, %v8800_v27 }
  0xd0   : > { %735 = vrot.lane.b32.xlu1 %v6108_v9, %s5787_s14  ;;  %v720_v58 = vpop.permute.xlu0 %719 }
  0xd2   : > { %v808_v62 = vpop.permute.xlu1 %807  ;;  %350 = vrot.lane.b32.xlu0 %v6104_v7, %s5785_s12  ;;  %v1149_v7 = vsel %vm1144_vm7, %v1120_v10, %v635_v54 }
  0xd3   : > { %v1178_v15 = vsel %vm1173_vm8, %v1149_v7, %v722_v57  ;;  %v435_v7 = vrot.slane %v6284_v59, 2 }
  0xd4   : > { %477 = vrot.lane.b32.xlu1 %v6116_v12, %s5784_s11  ;;  %v806_v4 = vpop.permute.xlu0 %805  ;;  %v1148_v12 = vsel %vm1144_vm7, %v1119_v14, %v633_v42  ;;  %v1207_v5 = vsel %vm1202_vm9, %v1178_v15, %v808_v62  ;;  %v6287_v62 = vld [vmem:[%s5880_s9 + $0x88] sm:$0xff] }
  0xd5   : > { %v1177_v18 = vsel %vm1173_vm8, %v1148_v12, %v720_v58  ;;  %v6293_v10 = vrot.slane %v6287_v62, 1  ;;  %v6308_v14 = vrot.slane %v6287_v62, 2 }
  0xd6   : > { %v895_v11 = vpop.permute.xlu1 %894  ;;  %904 = vrot.lane.b32.xlu0 %v6096_v3, %s5789_s16  ;;  %v1206_v21 = vsel %vm1202_vm9, %v1177_v18, %v806_v4  ;;  %v308_v4 = vrot.slane %v6284_v59, 1 }
  0xd7   : > { %v1236_v19 = vsel %vm1231_vm10, %v1207_v5, %v895_v11  ;;  %v6316_v12 = vsel %vm410_vm1, %v435_v7, %v6308_v14  ;;  %v6373_v7 = vld [vmem:[%s5880_s9 + $0x90] sm:$0xff] }
  0xd8   : > { %991 = vrot.lane.b32.xlu1 %v6108_v9, %s5790_s17  ;;  %v893_v6 = vpop.permute.xlu0 %892  ;;  %v6304_v63 = vsel %vm283_vm0, %v308_v4, %v6293_v10 }
  0xd9   : > { %v1235_v26 = vsel %vm1231_vm10, %v1206_v21, %v893_v6 }
  0xda   : > { %v982_v13 = vpop.permute.xlu1 %981  ;;  %821 = vrot.lane.b32.xlu0 %v6182_v22, %s5788_s15 }
  0xdb   : > { %v6257_v2 = vsel %vm1260_vm11, %v1236_v19, %v982_v13 }
  0xdc   : > { %v1390_v28 = vrot.slane %v6257_v2, %v6156_v55  ;;  %563 = vrot.lane.b32.xlu1 %v6172_v8, %s5783_s10  ;;  %v980_v29 = vpop.permute.xlu0 %979  ;;  %v1383_v20 = vcombine.high %v6257_v2, %v6257_v2 }
  0xdd   : > { %v1264_v31 = vsel %vm1260_vm11, %v1235_v26, %v980_v29 }
  0xde   : > { %v1398_v32 = vcombine.high %v1390_v28, %v1390_v28  ;;  %v1367_v33 = vcombine.high %v1264_v31, %v1264_v31  ;;  %v1374_v1 = vrot.slane %v1264_v31, %v6156_v55  ;;  %v339_v50 = vpop.permute.xlu1 %338  ;;  %352 = vrot.lane.b32.xlu0 %v6096_v3, %s5785_s12 }
  0xdf   : > { %v1064_v19 = vsel %vm1057_vm4, %v5955_v24, %v339_v50 }
  0xe0   : > { %v1831_v37 = vcombine.low %v1390_v28, %v1398_v32  ;;  %v1381_v38 = vrot.slane %v1367_v33, %v6156_v55  ;;  %v1382_v52 = vcombine.high %v1374_v1, %v1374_v1  ;;  %479 = vrot.lane.b32.xlu1 %v6108_v9, %s5784_s11  ;;  %v337_v43 = vpop.permute.xlu0 %336  ;;  %v1814_v44 = vcombine.low %v1366_v34, %v1374_v1 }
  0xe1   : > { %v1063_v21 = vsel %vm1057_vm4, %v5925_v17, %v337_v43  ;;  %v1397_v33 = vrot.slane %v1383_v20, %v6156_v55 }
  0xe2   : > { %v1830_v46 = vcombine.low %v1382_v52, %v1381_v38  ;;  %v466_v51 = vpop.permute.xlu1 %465  ;;  %908 = vrot.lane.b32.xlu0 %v6190_v30, %s5789_s16  ;;  %v1828_v3 = vrot.slane %v1814_v44, %v6156_v55  ;;  %v1845_v54 = vrot.slane %v1831_v37, %v6156_v55 }
  0xe3   : > { %v1093_v23 = vsel %vm1086_vm5, %v1064_v19, %v466_v51  ;;  %v1399_v52 = vcombine.high %v1397_v33, %v1397_v33 }
  0xe4   : > { %v1838_v42 = vrot.slane %v1830_v46, %v6156_v55  ;;  %995 = vrot.lane.b32.xlu1 %v6200_v35, %s5790_s17  ;;  %v464_v9 = vpop.permute.xlu0 %463  ;;  %v1829_v56 = vcombine.low %v1821_v53, %v1828_v3 }
  0xe5   : > { %v1092_v28 = vsel %vm1086_vm5, %v1063_v21, %v464_v9 }
  0xe6   : > { %v552_v57 = vpop.permute.xlu1 %551  ;;  %650 = vrot.lane.b32.xlu0 %v6208_v41, %s5786_s13  ;;  %v1846_v58 = vcombine.low %v1838_v42, %v1845_v54 }
  0xe7   : > { %v1122_v24 = vsel %vm1115_vm6, %v1093_v23, %v552_v57 }
  0xe8   : > { %737 = vrot.lane.b32.xlu1 %v6217_v49, %s5787_s14  ;;  %v550_v0 = vpop.permute.xlu0 %549  ;;  %v2221_v45 = vpack.c.bf16 %v1846_v58, %v1829_v56  ;;  %v1847_v56 = vcombine.low %v1397_v33, %v1399_v52 }
  0xe9   : > { %v1121_v29 = vsel %vm1115_vm6, %v1092_v28, %v550_v0 }
  0xea   : > { %v639_v11 = vpop.permute.xlu1 %638  ;;  %565 = vrot.lane.b32.xlu0 %v6182_v22, %s5783_s10  ;;  %5148 = vmatmul.mubr.msk.bf16.gmra.mrb[4].mxu0 %vm2255_vm12, %v2221_v45 }
  0xeb   : > { %5151 = vmatprep.mubr.msk.bf16.mxu0 %vm5793_vm3, %v8800_v27  ;;  %v1151_v31 = vsel %vm1144_vm7, %v1122_v24, %v639_v11 }
  0xec   : > { %823 = vrot.lane.b32.xlu1 %v6284_v59, %s5788_s15  ;;  %v637_v16 = vpop.permute.xlu0 %636 }
  0xed   : > { %v1150_v17 = vsel %vm1144_vm7, %v1121_v29, %v637_v16 }
  0xee   : > { %v726_v15 = vpop.permute.xlu1 %725  ;;  %652 = vrot.lane.b32.xlu0 %v6190_v30, %s5786_s13 }
  0xef   : > { %v1180_v2 = vsel %vm1173_vm8, %v1151_v31, %v726_v15  ;;  %v6376_v15 = vld [vmem:[%s5880_s9 + $0x98] sm:$0xff]  ;;  %v438_v31 = vrot.slane %v6373_v7, 2 }
  0xf0   : > { %910 = vrot.lane.b32.xlu1 %v6304_v63, %s5789_s16  ;;  %v724_v6 = vpop.permute.xlu0 %723 }
  0xf1   : > { %v1179_v1 = vsel %vm1173_vm8, %v1150_v17, %v724_v6  ;;  %v6398_v17 = vrot.slane %v6376_v15, 2 }
  0xf2   : > { %v812_v5 = vpop.permute.xlu1 %811  ;;  %739 = vrot.lane.b32.xlu0 %v6200_v35, %s5787_s14 }
  0xf3   : > { %v1209_v50 = vsel %vm1202_vm9, %v1180_v2, %v812_v5 }
  0xf4   : > { %997 = vrot.lane.b32.xlu1 %v6316_v12, %s5790_s17  ;;  %v810_v18 = vpop.permute.xlu0 %809 }
  0xf5   : > { %v1208_v36 = vsel %vm1202_vm9, %v1179_v1, %v810_v18 }
  0xf6   : > { %v897_v13 = vpop.permute.xlu1 %896  ;;  %825 = vrot.lane.b32.xlu0 %v6287_v62, %s5788_s15 }
  0xf7   : > { %v1237_v43 = vsel %vm1231_vm10, %v1208_v36, %v897_v13  ;;  %v311_v13 = vrot.slane %v6373_v7, 1 }
  0xf8   : > { %912 = vrot.lane.b32.xlu1 %v6293_v10, %s5789_s16  ;;  %v6333_v26 = vpop.permute.xlu0 %342 }
  0xf9   : > { %v1066_v2 = vsel %vm1057_vm4, %v6004_v39, %v6333_v26 }
  0xfa   : > { %v6339_v32 = vpop.permute.xlu1 %469  ;;  %354 = vrot.lane.b32.xlu0 %v6208_v41, %s5785_s12 }
  0xfc   : > { %999 = vrot.lane.b32.xlu1 %v6308_v14, %s5790_s17  ;;  %v899_v34 = vpop.permute.xlu0 %898 }
  0xfd   : > { %v1238_v37 = vsel %vm1231_vm10, %v1209_v50, %v899_v34  ;;  %v1095_v50 = vsel %vm1086_vm5, %v1066_v2, %v6339_v32  ;;  %v6414_v34 = vsel %vm410_vm1, %v438_v31, %v6398_v17 }
  0xfe   : > { %v986_v38 = vpop.permute.xlu1 %985  ;;  %481 = vrot.lane.b32.xlu0 %v6217_v49, %s5784_s11 }
  0xff   : > { %v1267_v41 = vsel %vm1260_vm11, %v1238_v37, %v986_v38 }
 0x100   : > { %v1416_v44 = vcombine.high %v1267_v41, %v1267_v41  ;;  %v1423_v46 = vrot.slane %v1267_v41, %v6156_v55  ;;  %567 = vrot.lane.b32.xlu1 %v6284_v59, %s5783_s10  ;;  %v984_v51 = vpop.permute.xlu0 %983 }
 0x101   : > { %v1266_v3 = vsel %vm1260_vm11, %v1237_v43, %v984_v51 }
 0x102   : > { %v6361_v53 = vrot.slane %v1416_v44, %v6156_v55  ;;  %v1431_v54 = vcombine.high %v1423_v46, %v1423_v46  ;;  %v1400_v49 = vcombine.high %v1266_v3, %v1266_v3  ;;  %v1407_v42 = vrot.slane %v1266_v3, %v6156_v55  ;;  %v556_v9 = vpop.permute.xlu1 %555  ;;  %356 = vrot.lane.b32.xlu0 %v6190_v30, %s5785_s12 }
 0x103   : > { %v1855_v30 = vrot.slane %v1847_v56, %v6156_v55  ;;  %v1124_v39 = vsel %vm1115_vm6, %v1095_v50, %v556_v9 }
 0x104   : > { %v1865_v57 = vcombine.low %v1431_v54, %v6361_v53  ;;  %v1414_v58 = vrot.slane %v1400_v49, %v6156_v55  ;;  %v1415_v0 = vcombine.high %v1407_v42, %v1407_v42  ;;  %654 = vrot.lane.b32.xlu1 %v6304_v63, %s5786_s13  ;;  %v341_v45 = vpop.permute.xlu0 %340 }
 0x105   : > { %v1065_v41 = vsel %vm1057_vm4, %v5960_v25, %v341_v45 }
 0x106   : > { %v1848_v4 = vcombine.low %v1407_v42, %v1415_v0  ;;  %v1864_v11 = vcombine.low %v1414_v58, %v1423_v46  ;;  %v643_v16 = vpop.permute.xlu1 %642  ;;  %483 = vrot.lane.b32.xlu0 %v6200_v35, %s5784_s11  ;;  %v1879_v6 = vrot.slane %v1865_v57, %v6156_v55  ;;  %v6386_v35 = vrot.slane %v6376_v15, 1 }
 0x107   : > { %v1153_v36 = vsel %vm1144_vm7, %v1124_v39, %v643_v16 }
 0x108   : > { %v1862_v5 = vrot.slane %v1848_v4, %v6156_v55  ;;  %v1872_v18 = vrot.slane %v1864_v11, %v6156_v55  ;;  %741 = vrot.lane.b32.xlu1 %v6316_v12, %s5787_s14  ;;  %v468_v19 = vpop.permute.xlu0 %467  ;;  %v6394_v29 = vsel %vm283_vm0, %v311_v13, %v6386_v35 }
 0x109   : > { %v1094_v44 = vsel %vm1086_vm5, %v1065_v41, %v468_v19 }
 0x10a   : > { %v1863_v20 = vcombine.low %v1855_v30, %v1862_v5  ;;  %v730_v21 = vpop.permute.xlu1 %729  ;;  %569 = vrot.lane.b32.xlu0 %v6287_v62, %s5783_s10  ;;  %v1880_v23 = vcombine.low %v1872_v18, %v1879_v6 }
 0x10b   : > { %v1182_v37 = vsel %vm1173_vm8, %v1153_v36, %v730_v21 }
 0x10c   : > { %827 = vrot.lane.b32.xlu1 %v6373_v7, %s5788_s15  ;;  %v554_v28 = vpop.permute.xlu0 %553  ;;  %v2222_v24 = vpack.c.bf16 %v1880_v23, %v1863_v20 }
 0x10d   : > { %v1123_v51 = vsel %vm1115_vm6, %v1094_v44, %v554_v28 }
 0x10e   : > { %v816_v33 = vpop.permute.xlu1 %815  ;;  %656 = vrot.lane.b32.xlu0 %v6293_v10, %s5786_s13  ;;  %5152 = vmatmul.mubr.msk.bf16.gmra.mrb[8].mxu0 %vm2255_vm12, %v2222_v24 }
 0x10f   : > { %5155 = vmatprep.mubr.msk.bf16.mxu0 %vm5793_vm3, %v8800_v27  ;;  %v1211_v32 = vsel %vm1202_vm9, %v1182_v37, %v816_v33  ;;  %v6473_v37 = vld [vmem:[%s5880_s9 + $0xa0] sm:$0xff] }
 0x110   : > { %914 = vrot.lane.b32.xlu1 %v6394_v29, %s5789_s16  ;;  %v641_v1 = vpop.permute.xlu0 %640 }
 0x111   : > { %v1152_v49 = vsel %vm1144_vm7, %v1123_v51, %v641_v1 }
 0x112   : > { %v903_v26 = vpop.permute.xlu1 %902  ;;  %743 = vrot.lane.b32.xlu0 %v6308_v14, %s5787_s14 }
 0x113   : > { %v1240_v52 = vsel %vm1231_vm10, %v1211_v32, %v903_v26 }
 0x114   : > { %1001 = vrot.lane.b32.xlu1 %v6414_v34, %s5790_s17  ;;  %v728_v38 = vpop.permute.xlu0 %727 }
 0x115   : > { %v1181_v25 = vsel %vm1173_vm8, %v1152_v49, %v728_v38  ;;  %v314_v38 = vrot.slane %v6473_v37, 1 }
 0x116   : > { %v990_v43 = vpop.permute.xlu1 %989  ;;  %829 = vrot.lane.b32.xlu0 %v6376_v15, %s5788_s15 }
 0x117   : > { %v1269_v46 = vsel %vm1260_vm11, %v1240_v52, %v990_v43  ;;  %v441_v43 = vrot.slane %v6473_v37, 2 }
 0x118   : > { %v1449_v3 = vcombine.high %v1269_v46, %v1269_v46  ;;  %916 = vrot.lane.b32.xlu1 %v6386_v35, %s5789_s16  ;;  %v814_v54 = vpop.permute.xlu0 %813  ;;  %v1456_v42 = vrot.slane %v1269_v46, %v6156_v55 }
 0x119   : > { %v1210_v57 = vsel %vm1202_vm9, %v1181_v25, %v814_v54 }
 0x11a   : > { %v1463_v9 = vrot.slane %v1449_v3, %v6156_v55  ;;  %v901_v56 = vpop.permute.xlu1 %900  ;;  %358 = vrot.lane.b32.xlu0 %v6304_v63, %s5785_s12  ;;  %v1464_v45 = vcombine.high %v1456_v42, %v1456_v42  ;;  %v1432_v63 = vcombine.high %v6361_v53, %v6361_v53 }
 0x11b   : > { %v1239_v4 = vsel %vm1231_vm10, %v1210_v57, %v901_v56 }
 0x11c   : > { %v1465_v58 = vcombine.high %v1463_v9, %v1463_v9  ;;  %1003 = vrot.lane.b32.xlu1 %v6398_v17, %s5790_s17  ;;  %v6443_v0 = vpop.permute.xlu0 %346  ;;  %v1898_v19 = vcombine.low %v1456_v42, %v1464_v45 }
 0x11e   : > { %v988_v11 = vpop.permute.xlu1 %987  ;;  %485 = vrot.lane.b32.xlu0 %v6316_v12, %s5784_s11  ;;  %v1899_v30 = vcombine.low %v1463_v9, %v1465_v58  ;;  %v1906_v24 = vrot.slane %v1898_v19, %v6156_v55  ;;  %v1068_v9 = vsel %vm1057_vm4, %v6049_v47, %v6443_v0  ;;  %v6528_v0 = vld [vmem:[%s5880_s9 + $0xb8] sm:$0xff] }
 0x11f   : > { %v1268_v16 = vsel %vm1260_vm11, %v1239_v4, %v988_v11  ;;  %v245_v11 = vld [vmem:[%s5880_s9 + $0xb0] sm:$0xff]  ;;  %v6537_v19 = vrot.slane %v6528_v0, 1 }
 0x120   : > { %v1433_v6 = vcombine.high %v1268_v16, %v1268_v16  ;;  %v1440_v5 = vrot.slane %v1268_v16, %v6156_v55  ;;  %571 = vrot.lane.b32.xlu1 %v6373_v7, %s5783_s10  ;;  %v474_v18 = vpop.permute.xlu0 %473  ;;  %v1913_v12 = vrot.slane %v1899_v30, %v6156_v55 }
 0x121   : > { %v1097_v58 = vsel %vm1086_vm5, %v1068_v9, %v474_v18  ;;  %v317_v18 = vrot.slane %v245_v11, 1 }
 0x122   : > { %v1447_v13 = vrot.slane %v1433_v6, %v6156_v55  ;;  %v1448_v20 = vcombine.high %v1440_v5, %v1440_v5  ;;  %v1881_v21 = vcombine.low %v1432_v63, %v1440_v5  ;;  %v560_v23 = vpop.permute.xlu1 %559  ;;  %360 = vrot.lane.b32.xlu0 %v6293_v10, %s5785_s12  ;;  %v1914_v10 = vcombine.low %v1906_v24, %v1913_v12 }
 0x123   : > { %v444_v12 = vrot.slane %v245_v11, 2 }
 0x124   : > { %v1882_v28 = vcombine.low %v1448_v20, %v1447_v13  ;;  %658 = vrot.lane.b32.xlu1 %v6394_v29, %s5786_s13  ;;  %v345_v53 = vpop.permute.xlu0 %344  ;;  %v1889_v31 = vrot.slane %v1881_v21, %v6156_v55 }
 0x125   : > { %v1067_v42 = vsel %vm1057_vm4, %v6007_v40, %v345_v53  ;;  %v1126_v40 = vsel %vm1115_vm6, %v1097_v58, %v560_v23 }
 0x126   : > { %v1896_v2 = vrot.slane %v1882_v28, %v6156_v55  ;;  %v647_v33 = vpop.permute.xlu1 %646  ;;  %487 = vrot.lane.b32.xlu0 %v6308_v14, %s5784_s11  ;;  %v6544_v28 = vrot.slane %v6528_v0, 2 }
 0x127   : > { %v1155_v30 = vsel %vm1144_vm7, %v1126_v40, %v647_v33  ;;  %v6554_v33 = vsel %vm283_vm0, %v317_v18, %v6537_v19 }
 0x128   : > { %v1897_v1 = vcombine.low %v1889_v31, %v1896_v2  ;;  %573 = vrot.lane.b32.xlu1 %v6376_v15, %s5783_s10  ;;  %v472_v50 = vpop.permute.xlu0 %471  ;;  %v6482_v15 = vld [vmem:[%s5880_s9 + $0xa8] sm:$0xff] }
 0x129   : > { %v6488_v32 = vrot.slane %v6482_v15, 1  ;;  %v6498_v44 = vrot.slane %v6482_v15, 2  ;;  %v1096_v56 = vsel %vm1086_vm5, %v1067_v42, %v472_v50  ;;  %v6561_v50 = vsel %vm410_vm1, %v444_v12, %v6544_v28 }
 0x12a   : > { %v558_v39 = vpop.permute.xlu1 %557  ;;  %362 = vrot.lane.b32.xlu0 %v6394_v29, %s5785_s12  ;;  %v2223_v26 = vpack.c.bf16 %v1914_v10, %v1897_v1 }
 0x12b   : > { %v443_v3 = vsel %vm410_vm1, %v441_v43, %v6498_v44  ;;  %v1125_v4 = vsel %vm1115_vm6, %v1096_v56, %v558_v39 }
 0x12c   : > { %489 = vrot.lane.b32.xlu1 %v6414_v34, %s5784_s11  ;;  %5156 = vmatmul.mubr.msk.bf16.gmra.mrb[12].mxu0 %vm2255_vm12, %v2223_v26  ;;  %v349_v36 = vpop.permute.xlu0 %348 }
 0x12d   : > { %5159 = vmatprep.mubr.msk.bf16.mxu0 %vm5793_vm3, %v8800_v27  ;;  %v1069_v31 = vsel %vm1057_vm4, %v6056_v48, %v349_v36 }
 0x12e   : > { %v6477_v14 = vpop.permute.xlu1 %475  ;;  %745 = vrot.lane.b32.xlu0 %v6414_v34, %s5787_s14  ;;  %v316_v34 = vsel %vm283_vm0, %v314_v38, %v6488_v32 }
 0x130   : > { %831 = vrot.lane.b32.xlu1 %v6473_v37, %s5788_s15  ;;  %v734_v29 = vpop.permute.xlu0 %733 }
 0x131   : > { %v1184_v63 = vsel %vm1173_vm8, %v1155_v30, %v734_v29  ;;  %v6597_v30 = vld [vmem:[%s5880_s9 + $0xc0] sm:$0xff] }
 0x132   : > { %v820_v41 = vpop.permute.xlu1 %819  ;;  %660 = vrot.lane.b32.xlu0 %v6386_v35, %s5786_s13 }
 0x133   : > { %v1213_v21 = vsel %vm1202_vm9, %v1184_v63, %v820_v41  ;;  %v6600_v63 = vld [vmem:[%s5880_s9 + $0xc8] sm:$0xff] }
 0x134   : > { %747 = vrot.lane.b32.xlu1 %v6398_v17, %s5787_s14  ;;  %v645_v52 = vpop.permute.xlu0 %644 }
 0x135   : > { %v1154_v16 = vsel %vm1144_vm7, %v1125_v4, %v645_v52 }
 0x136   : > { %v732_v46 = vpop.permute.xlu1 %731  ;;  %575 = vrot.lane.b32.xlu0 %v6473_v37, %s5783_s10 }
 0x137   : > { %v1183_v5 = vsel %vm1173_vm8, %v1154_v16, %v732_v46 }
 0x138   : > { %662 = vrot.lane.b32.xlu1 %v316_v34, %s5786_s13  ;;  %v562_v51 = vpop.permute.xlu0 %561 }
 0x13a   : > { %v649_v54 = vpop.permute.xlu1 %648  ;;  %918 = vrot.lane.b32.xlu0 %v316_v34, %s5789_s16 }
 0x13c   : > { %1005 = vrot.lane.b32.xlu1 %v443_v3, %s5790_s17  ;;  %v907_v49 = vpop.permute.xlu0 %906 }
 0x13d   : > { %v1242_v53 = vsel %vm1231_vm10, %v1213_v21, %v907_v49  ;;  %v320_v21 = vrot.slane %v6597_v30, 1 }
 0x13e   : > { %v994_v25 = vpop.permute.xlu1 %993  ;;  %833 = vrot.lane.b32.xlu0 %v6482_v15, %s5788_s15 }
 0x13f   : > { %v1271_v1 = vsel %vm1260_vm11, %v1242_v53, %v994_v25 }
 0x140   : > { %920 = vrot.lane.b32.xlu1 %v6488_v32, %s5789_s16  ;;  %v818_v57 = vpop.permute.xlu0 %817  ;;  %v1489_v29 = vrot.slane %v1271_v1, %v6156_v55 }
 0x141   : > { %v1212_v13 = vsel %vm1202_vm9, %v1183_v5, %v818_v57 }
 0x142   : > { %v736_v45 = vpop.permute.xlu1 %735  ;;  %749 = vrot.lane.b32.xlu0 %v443_v3, %s5787_s14 }
 0x144   : > { %1007 = vrot.lane.b32.xlu1 %v6498_v44, %s5790_s17  ;;  %v6525_v47 = vpop.permute.xlu0 %350 }
 0x145   : > { %v1070_v18 = vsel %vm1057_vm4, %v6088_v60, %v6525_v47 }
 0x146   : > { %v6532_v6 = vpop.permute.xlu1 %477  ;;  %835 = vrot.lane.b32.xlu0 %v245_v11, %s5788_s15 }
 0x147   : > { %v1099_v60 = vsel %vm1086_vm5, %v1070_v18, %v6532_v6 }
 0x148   : > { %366 = vrot.lane.b32.xlu1 %v316_v34, %s5785_s12  ;;  %v905_v20 = vpop.permute.xlu0 %904 }
 0x149   : > { %v1241_v23 = vsel %vm1231_vm10, %v1212_v13, %v905_v20 }
 0x14a   : > { %v992_v24 = vpop.permute.xlu1 %991  ;;  %364 = vrot.lane.b32.xlu0 %v6386_v35, %s5785_s12  ;;  %v1098_v35 = vsel %vm1086_vm5, %v1069_v31, %v6477_v14 }
 0x14b   : > { %v1270_v2 = vsel %vm1260_vm11, %v1241_v23, %v992_v24  ;;  %v1127_v36 = vsel %vm1115_vm6, %v1098_v35, %v562_v51  ;;  %v1497_v51 = vcombine.high %v1489_v29, %v1489_v29  ;;  %v6611_v23 = vrot.slane %v6600_v63, 1 }
 0x14c   : > { %491 = vrot.lane.b32.xlu1 %v6398_v17, %s5784_s11  ;;  %v822_v10 = vpop.permute.xlu0 %821  ;;  %v1466_v48 = vcombine.high %v1270_v2, %v1270_v2  ;;  %v1473_v39 = vrot.slane %v1270_v2, %v6156_v55  ;;  %v1482_v17 = vcombine.high %v1271_v1, %v1271_v1  ;;  %v1156_v41 = vsel %vm1144_vm7, %v1127_v36, %v649_v54 }
 0x14d   : > { %v1185_v43 = vsel %vm1173_vm8, %v1156_v41, %v736_v45  ;;  %v6623_v1 = vsel %vm283_vm0, %v320_v21, %v6611_v23  ;;  %v447_v35 = vrot.slane %v6597_v30, 2 }
 0x14e   : > { %v564_v26 = vpop.permute.xlu1 %563  ;;  %922 = vrot.lane.b32.xlu0 %v6554_v33, %s5789_s16  ;;  %v1480_v14 = vrot.slane %v1466_v48, %v6156_v55  ;;  %v1481_v52 = vcombine.high %v1473_v39, %v1473_v39  ;;  %v1496_v46 = vrot.slane %v1482_v17, %v6156_v55  ;;  %v1214_v49 = vsel %vm1202_vm9, %v1185_v43, %v822_v10 }
 0x14f   : > { %v1128_v47 = vsel %vm1115_vm6, %v1099_v60, %v564_v26  ;;  %v6627_v48 = vrot.slane %v6600_v63, 2 }
 0x150   : > { %1009 = vrot.lane.b32.xlu1 %v6561_v50, %s5790_s17  ;;  %v353_v38 = vpop.permute.xlu0 %352  ;;  %v1915_v54 = vcombine.low %v1473_v39, %v1481_v52  ;;  %v1916_v9 = vcombine.low %v1480_v14, %v1489_v29  ;;  %v1932_v57 = vcombine.low %v1497_v51, %v1496_v46  ;;  %v1498_v58 = vcombine.high %v1496_v46, %v1496_v46 }
 0x151   : > { %v1071_v6 = vsel %vm1057_vm4, %v6091_v61, %v353_v38  ;;  %v6642_v29 = vsel %vm410_vm1, %v447_v35, %v6627_v48  ;;  %v249_v35 = vld [vmem:[%s5880_s9 + $0xd0] sm:$0xff] }
 0x152   : > { %v480_v34 = vpop.permute.xlu1 %479  ;;  %493 = vrot.lane.b32.xlu0 %v443_v3, %s5784_s11  ;;  %v1930_v40 = vrot.slane %v1916_v9, %v6156_v55  ;;  %v1940_v5 = vrot.slane %v1932_v57, %v6156_v55 }
 0x153   : > { %v1100_v61 = vsel %vm1086_vm5, %v1071_v6, %v480_v34 }
 0x154   : > { %579 = vrot.lane.b32.xlu1 %v245_v11, %s5783_s10  ;;  %v909_v25 = vpop.permute.xlu0 %908  ;;  %v1923_v11 = vrot.slane %v1915_v54, %v6156_v55 }
 0x155   : > { %v1243_v42 = vsel %vm1231_vm10, %v1214_v49, %v909_v25 }
 0x156   : > { %v996_v56 = vpop.permute.xlu1 %995  ;;  %577 = vrot.lane.b32.xlu0 %v6482_v15, %s5783_s10  ;;  %v1931_v12 = vcombine.low %v1923_v11, %v1930_v40 }
 0x157   : > { %v6583_v3 = vsel %vm1260_vm11, %v1243_v42, %v996_v56 }
 0x158   : > { %v6587_v45 = vrot.slane %v6583_v3, %v6156_v55  ;;  %666 = vrot.lane.b32.xlu1 %v6554_v33, %s5786_s13  ;;  %v651_v4 = vpop.permute.xlu0 %650  ;;  %v1499_v25 = vcombine.high %v6583_v3, %v6583_v3 }
 0x159   : > { %v1157_v10 = vsel %vm1144_vm7, %v1128_v47, %v651_v4 }
 0x15a   : > { %v1933_v16 = vcombine.low %v1498_v58, %v6587_v45  ;;  %v738_v15 = vpop.permute.xlu1 %737  ;;  %664 = vrot.lane.b32.xlu0 %v6488_v32, %s5786_s13  ;;  %v1513_v58 = vrot.slane %v1499_v25, %v6156_v55  ;;  %v1514_v3 = vcombine.high %v6587_v45, %v6587_v45 }
 0x15b   : > { %v1186_v26 = vsel %vm1173_vm8, %v1157_v10, %v738_v15 }
 0x15c   : > { %v1947_v13 = vrot.slane %v1933_v16, %v6156_v55  ;;  %753 = vrot.lane.b32.xlu1 %v6561_v50, %s5787_s14  ;;  %v566_v20 = vpop.permute.xlu0 %565  ;;  %v1949_v18 = vcombine.low %v1514_v3, %v1513_v58 }
 0x15d   : > { %v1129_v52 = vsel %vm1115_vm6, %v1100_v61, %v566_v20 }
 0x15e   : > { %v1948_v53 = vcombine.low %v1940_v5, %v1947_v13  ;;  %v824_v24 = vpop.permute.xlu1 %823  ;;  %751 = vrot.lane.b32.xlu0 %v6498_v44, %s5787_s14 }
 0x15f   : > { %v1215_v17 = vsel %vm1202_vm9, %v1186_v26, %v824_v24 }
 0x160   : > { %839 = vrot.lane.b32.xlu1 %v6597_v30, %s5788_s15  ;;  %v653_v31 = vpop.permute.xlu0 %652  ;;  %v2224_v2 = vpack.c.bf16 %v1948_v53, %v1931_v12  ;;  %v1957_v53 = vrot.slane %v1949_v18, %v6156_v55 }
 0x161   : > { %v1158_v49 = vsel %vm1144_vm7, %v1129_v52, %v653_v31 }
 0x162   : > { %v911_v39 = vpop.permute.xlu1 %910  ;;  %837 = vrot.lane.b32.xlu0 %v6528_v0, %s5788_s15  ;;  %5160 = vmatmul.mubr.msk.bf16.gmra.mrb[16].mxu0 %vm2255_vm12, %v2224_v2 }
 0x163   : > { %5163 = vmatprep.mubr.msk.bf16.mxu0 %vm5793_vm3, %v8800_v27  ;;  %v1244_v41 = vsel %vm1231_vm10, %v1215_v17, %v911_v39 }
 0x164   : > { %926 = vrot.lane.b32.xlu1 %v6623_v1, %s5789_s16  ;;  %v740_v36 = vpop.permute.xlu0 %739 }
 0x165   : > { %v1187_v42 = vsel %vm1173_vm8, %v1158_v49, %v740_v36  ;;  %v6703_v36 = vld [vmem:[%s5880_s9 + $0xd8] sm:$0xff] }
 0x166   : > { %v998_v14 = vpop.permute.xlu1 %997  ;;  %924 = vrot.lane.b32.xlu0 %v6537_v19, %s5789_s16  ;;  %v6710_v61 = vrot.slane %v6703_v36, 1 }
 0x167   : > { %v1273_v38 = vsel %vm1260_vm11, %v1244_v41, %v998_v14 }
 0x168   : > { %v1515_v43 = vcombine.high %v1273_v38, %v1273_v38  ;;  %v1522_v46 = vrot.slane %v1273_v38, %v6156_v55  ;;  %1013 = vrot.lane.b32.xlu1 %v6642_v29, %s5790_s17  ;;  %v826_v51 = vpop.permute.xlu0 %825 }
 0x169   : > { %v1216_v9 = vsel %vm1202_vm9, %v1187_v42, %v826_v51  ;;  %v6717_v51 = vrot.slane %v6703_v36, 2 }
 0x16a   : > { %v1529_v34 = vrot.slane %v1515_v43, %v6156_v55  ;;  %v913_v54 = vpop.permute.xlu1 %912  ;;  %1011 = vrot.lane.b32.xlu0 %v6544_v28, %s5790_s17  ;;  %v1530_v56 = vcombine.high %v1522_v46, %v1522_v46 }
 0x16b   : > { %v1245_v11 = vsel %vm1231_vm10, %v1216_v9, %v913_v54 }
 0x16c   : > { %370 = vrot.lane.b32.xlu1 %v6554_v33, %s5785_s12  ;;  %v355_v57 = vpop.permute.xlu0 %354  ;;  %v1531_v4 = vcombine.high %v1529_v34, %v1529_v34  ;;  %v1950_v15 = vcombine.low %v1522_v46, %v1530_v56  ;;  %v450_v46 = vrot.slane %v249_v35, 2 }
 0x16e   : > { %v1000_v40 = vpop.permute.xlu1 %999  ;;  %368 = vrot.lane.b32.xlu0 %v6488_v32, %s5785_s12  ;;  %v1966_v45 = vcombine.low %v1529_v34, %v1531_v4  ;;  %v1964_v32 = vrot.slane %v1950_v15, %v6156_v55 }
 0x16f   : > { %v6670_v16 = vsel %vm1260_vm11, %v1245_v11, %v1000_v40 }
 0x170   : > { %v1539_v33 = vrot.slane %v6670_v16, %v6156_v55  ;;  %497 = vrot.lane.b32.xlu1 %v6561_v50, %s5784_s11  ;;  %v482_v5 = vpop.permute.xlu0 %481  ;;  %v1974_v50 = vrot.slane %v1966_v45, %v6156_v55  ;;  %v1965_v47 = vcombine.low %v1957_v53, %v1964_v32  ;;  %v1532_v40 = vcombine.high %v6670_v16, %v6670_v16 }
 0x172   : > { %v1547_v13 = vcombine.high %v1539_v33, %v1539_v33  ;;  %v568_v20 = vpop.permute.xlu1 %567  ;;  %495 = vrot.lane.b32.xlu0 %v6498_v44, %s5784_s11 }
 0x174   : > { %v1967_v21 = vcombine.low %v1539_v33, %v1547_v13  ;;  %583 = vrot.lane.b32.xlu1 %v6597_v30, %s5783_s10  ;;  %v357_v12 = vpop.permute.xlu0 %356  ;;  %v1546_v13 = vrot.slane %v1532_v40, %v6156_v55 }
 0x175   : > { %v1073_v49 = vsel %vm1057_vm4, %v6182_v22, %v357_v12 }
 0x176   : > { %v1981_v24 = vrot.slane %v1967_v21, %v6156_v55  ;;  %v655_v60 = vpop.permute.xlu1 %654  ;;  %581 = vrot.lane.b32.xlu0 %v6528_v0, %s5783_s10  ;;  %v1072_v0 = vsel %vm1057_vm4, %v6172_v8, %v355_v57  ;;  %v323_v8 = vrot.slane %v249_v35, 1 }
 0x177   : > { %v1101_v6 = vsel %vm1086_vm5, %v1072_v0, %v482_v5 }
 0x178   : > { %v1982_v44 = vcombine.low %v1974_v50, %v1981_v24  ;;  %670 = vrot.lane.b32.xlu1 %v6623_v1, %s5786_s13  ;;  %v484_v31 = vpop.permute.xlu0 %483  ;;  %v1130_v17 = vsel %vm1115_vm6, %v1101_v6, %v568_v20  ;;  %v6728_v9 = vsel %vm283_vm0, %v323_v8, %v6710_v61  ;;  %v251_v6 = vld [vmem:[%s5880_s9 + $0xe0] sm:$0xff] }
 0x179   : > { %v1159_v14 = vsel %vm1144_vm7, %v1130_v17, %v655_v60  ;;  %v1102_v34 = vsel %vm1086_vm5, %v1073_v49, %v484_v31 }
 0x17a   : > { %v742_v30 = vpop.permute.xlu1 %741  ;;  %668 = vrot.lane.b32.xlu0 %v6537_v19, %s5786_s13  ;;  %v2225_v2 = vpack.c.bf16 %v1982_v44, %v1965_v47 }
 0x17b   : > { %v1188_v38 = vsel %vm1173_vm8, %v1159_v14, %v742_v30  ;;  %v623_v14 = vrot.slane %v251_v6, 1 }
 0x17c   : > { %757 = vrot.lane.b32.xlu1 %v6642_v29, %s5787_s14  ;;  %5164 = vmatmul.mubr.msk.bf16.gmra.mrb[20].mxu0 %vm2255_vm12, %v2225_v2  ;;  %v570_v10 = vpop.permute.xlu0 %569 }
 0x17d   : > { %5167 = vmatprep.mubr.msk.bf16.mxu0 %vm5793_vm3, %v8800_v27  ;;  %v1131_v56 = vsel %vm1115_vm6, %v1102_v34, %v570_v10 }
 0x17e   : > { %v828_v39 = vpop.permute.xlu1 %827  ;;  %755 = vrot.lane.b32.xlu0 %v6544_v28, %s5787_s14 }
 0x17f   : > { %v1217_v43 = vsel %vm1202_vm9, %v1188_v38, %v828_v39 }
 0x180   : > { %843 = vrot.lane.b32.xlu1 %v249_v35, %s5788_s15  ;;  %v657_v26 = vpop.permute.xlu0 %656 }
 0x181   : > { %v1160_v3 = vsel %vm1144_vm7, %v1131_v56, %v657_v26  ;;  %v6770_v26 = vld [vmem:[%s5880_s9 + $0xe8] sm:$0xff] }
 0x182   : > { %v915_v41 = vpop.permute.xlu1 %914  ;;  %841 = vrot.lane.b32.xlu0 %v6600_v63, %s5788_s15  ;;  %v6775_v8 = vrot.slane %v6770_v26, 1  ;;  %v6784_v49 = vrot.slane %v6770_v26, 2 }
 0x183   : > { %v1246_v25 = vsel %vm1231_vm10, %v1217_v43, %v915_v41  ;;  %v710_v43 = vrot.slane %v251_v6, 2 }
 0x184   : > { %928 = vrot.lane.b32.xlu1 %v6611_v23, %s5789_s16  ;;  %v744_v52 = vpop.permute.xlu0 %743 }
 0x185   : > { %v1189_v4 = vsel %vm1173_vm8, %v1160_v3, %v744_v52  ;;  %v6795_v34 = vsel %vm410_vm1, %v710_v43, %v6784_v49 }
 0x186   : > { %v1002_v42 = vpop.permute.xlu1 %1001  ;;  %374 = vrot.lane.b32.xlu0 %v6623_v1, %s5785_s12  ;;  %v6737_v1 = vsel %vm410_vm1, %v450_v46, %v6717_v51  ;;  %v625_v46 = vsel %vm283_vm0, %v623_v14, %v6775_v8 }
 0x187   : > { %v1275_v54 = vsel %vm1260_vm11, %v1246_v25, %v1002_v42 }
 0x188   : > { %v1548_v57 = vcombine.high %v1275_v54, %v1275_v54  ;;  %v1555_v58 = vrot.slane %v1275_v54, %v6156_v55  ;;  %501 = vrot.lane.b32.xlu1 %v6642_v29, %s5784_s11  ;;  %v830_v22 = vpop.permute.xlu0 %829 }
 0x189   : > { %v1218_v15 = vsel %vm1202_vm9, %v1189_v4, %v830_v22  ;;  %v6806_v4 = vld [vmem:[%s8794_s2] ss:$0 sm:$0xff] }
 0x18a   : > { %v917_v11 = vpop.permute.xlu1 %916  ;;  %930 = vrot.lane.b32.xlu0 %v6728_v9, %s5789_s16  ;;  %v1562_v29 = vrot.slane %v1548_v57, %v6156_v55  ;;  %v1563_v33 = vcombine.high %v1555_v58, %v1555_v58  ;;  %v1983_v50 = vcombine.low %v1546_v13, %v1555_v58 }
 0x18b   : > { %v1247_v18 = vsel %vm1231_vm10, %v1218_v15, %v917_v11 }
 0x18c   : > { %1017 = vrot.lane.b32.xlu1 %v6737_v1, %s5790_s17  ;;  %v6748_v5 = vpop.permute.xlu0 %358  ;;  %v1984_v20 = vcombine.low %v1563_v33, %v1562_v29  ;;  %v1564_v32 = vcombine.high %v1562_v29, %v1562_v29  ;;  %v1991_v10 = vrot.slane %v1983_v50, %v6156_v55 }
 0x18d   : > { %v1074_v40 = vsel %vm1057_vm4, %v6284_v59, %v6748_v5 }
 0x18e   : > { %v1004_v45 = vpop.permute.xlu1 %1003  ;;  %1015 = vrot.lane.b32.xlu0 %v6627_v48, %s5790_s17  ;;  %v1998_v31 = vrot.slane %v1984_v20, %v6156_v55 }
 0x18f   : > { %v1276_v16 = vsel %vm1260_vm11, %v1247_v18, %v1004_v45 }
 0x190   : > { %v1565_v21 = vcombine.high %v1276_v16, %v1276_v16  ;;  %v1572_v12 = vrot.slane %v1276_v16, %v6156_v55  ;;  %587 = vrot.lane.b32.xlu1 %v249_v35, %s5783_s10  ;;  %v486_v53 = vpop.permute.xlu0 %485 }
 0x191   : > { %v1103_v15 = vsel %vm1086_vm5, %v1074_v40, %v486_v53 }
 0x192   : > { %v1579_v24 = vrot.slane %v1565_v21, %v6156_v55  ;;  %v1580_v60 = vcombine.high %v1572_v12, %v1572_v12  ;;  %v2000_v47 = vcombine.low %v1564_v32, %v1572_v12  ;;  %v572_v44 = vpop.permute.xlu1 %571  ;;  %372 = vrot.lane.b32.xlu0 %v6537_v19, %s5785_s12  ;;  %v1999_v19 = vcombine.low %v1991_v10, %v1998_v31 }
 0x193   : > { %v1132_v13 = vsel %vm1115_vm6, %v1103_v15, %v572_v44 }
 0x194   : > { %v2001_v30 = vcombine.low %v1580_v60, %v1579_v24  ;;  %674 = vrot.lane.b32.xlu1 %v6728_v9, %s5786_s13  ;;  %v361_v2 = vpop.permute.xlu0 %360  ;;  %v2008_v35 = vrot.slane %v2000_v47, %v6156_v55 }
 0x195   : > { %v1075_v5 = vsel %vm1057_vm4, %v6287_v62, %v361_v2 }
 0x196   : > { %v2015_v0 = vrot.slane %v2001_v30, %v6156_v55  ;;  %v659_v39 = vpop.permute.xlu1 %658  ;;  %499 = vrot.lane.b32.xlu0 %v6544_v28, %s5784_s11 }
 0x197   : > { %v1161_v16 = vsel %vm1144_vm7, %v1132_v13, %v659_v39 }
 0x198   : > { %v2016_v17 = vcombine.low %v2008_v35, %v2015_v0  ;;  %761 = vrot.lane.b32.xlu1 %v6737_v1, %s5787_s14  ;;  %v488_v41 = vpop.permute.xlu0 %487 }
 0x199   : > { %v1104_v32 = vsel %vm1086_vm5, %v1075_v5, %v488_v41 }
 0x19a   : > { %v574_v38 = vpop.permute.xlu1 %573  ;;  %585 = vrot.lane.b32.xlu0 %v6600_v63, %s5783_s10  ;;  %v2226_v52 = vpack.c.bf16 %v2016_v17, %v1999_v19 }
 0x19c   : > { %847 = vrot.lane.b32.xlu1 %v251_v6, %s5788_s15  ;;  %5168 = vmatmul.mubr.msk.bf16.gmra.mrb[24].mxu0 %vm2255_vm12, %v2226_v52  ;;  %v363_v28 = vpop.permute.xlu0 %362 }
 0x19d   : > { %5171 = vmatprep.mubr.msk.bf16.mxu0 %vm5793_vm3, %v8800_v27  ;;  %v1076_v10 = vsel %vm1057_vm4, %v6373_v7, %v363_v28 }
 0x19e   : > { %v6788_v25 = vpop.permute.xlu1 %489  ;;  %672 = vrot.lane.b32.xlu0 %v6611_v23, %s5786_s13 }
 0x19f   : > { %v1105_v14 = vsel %vm1086_vm5, %v1076_v10, %v6788_v25 }
 0x1a0   : > { %934 = vrot.lane.b32.xlu1 %v625_v46, %s5789_s16  ;;  %v746_v63 = vpop.permute.xlu0 %745 }
 0x1a1   : > { %v2335_v42 = vpop.f32.mrb[0].mxu0 }
 0x1a2   : > { %v832_v54 = vpop.permute.xlu1 %831  ;;  %v5145_v56 = vpop.f32.mrb[1].mxu0  ;;  %759 = vrot.lane.b32.xlu0 %v6627_v48, %s5787_s14  ;;  %v2336_v33 = vadd.f32 %v6806_v4, %v2335_v42 }
 0x1a3   : > { %v2338_v57 = vpop.f32.mrb[2].mxu0 }
 0x1a4   : > { %1021 = vrot.lane.b32.xlu1 %v6795_v34, %s5790_s17  ;;  %v5146_v58 = vpop.f32.mrb[3].mxu0  ;;  %v661_v22 = vpop.permute.xlu0 %660  ;;  %v2339_v18 = vadd.f32 %v6806_v4, %v2338_v57  ;;  %v2437_v20 = vmax.f32 %v2336_v33, 0.0 }
 0x1a6   : > { %v748_v3 = vpop.permute.xlu1 %747  ;;  %845 = vrot.lane.b32.xlu0 %v6703_v36, %s5788_s15  ;;  %v2438_v21 = vmax.f32 %v2339_v18, 0.0  ;;  %v2487_v24 = vcombine.high %v2437_v20, %v2437_v20  ;;  %v2494_v31 = vrot.slane %v2437_v20, %v6156_v55 }
 0x1a8   : > { %932 = vrot.lane.b32.xlu1 %v6710_v61, %s5789_s16  ;;  %v576_v11 = vpop.permute.xlu0 %575  ;;  %v2504_v60 = vcombine.high %v2438_v21, %v2438_v21  ;;  %v6848_v35 = vrot.slane %v2487_v24, %v6156_v55  ;;  %v6873_v28 = vrot.slane %v2438_v21, %v6156_v55  ;;  %v6887_v57 = vsel %vm3001_vm13, %v2494_v31, -inf }
 0x1a9   : > { %v1134_v43 = vsel %vm1115_vm6, %v1105_v14, %v576_v11 }
 0x1aa   : > { %v6814_v29 = vpop.permute.xlu1 %662  ;;  %378 = vrot.lane.b32.xlu0 %v6728_v9, %s5785_s12  ;;  %v1190_v9 = vsel %vm1173_vm8, %v1161_v16, %v746_v63  ;;  %v6852_v39 = vrot.slane %v2504_v60, %v6156_v55  ;;  %v6904_v18 = vsel %vm3001_vm13, %v6848_v35, -inf }
 0x1ab   : > { %v1219_v53 = vsel %vm1202_vm9, %v1190_v9, %v832_v54  ;;  %v1163_v40 = vsel %vm1144_vm7, %v1134_v43, %v6814_v29  ;;  %v2519_v29 = vcombine.high %v6873_v28, %v6873_v28 }
 0x1ac   : > { %1019 = vrot.lane.b32.xlu1 %v6717_v51, %s5790_s17  ;;  %v919_v45 = vpop.permute.xlu0 %918  ;;  %v2520_v25 = vcombine.high %v6852_v39, %v6852_v39 }
 0x1ad   : > { %v1248_v62 = vsel %vm1231_vm10, %v1219_v53, %v919_v45  ;;  %v6934_v10 = vsel %vm3001_vm13, %v2519_v29, -inf }
 0x1ae   : > { %v1006_v59 = vpop.permute.xlu1 %1005  ;;  %505 = vrot.lane.b32.xlu0 %v6737_v1, %s5784_s11  ;;  %v1133_v1 = vsel %vm1115_vm6, %v1104_v32, %v574_v38  ;;  %v2502_v38 = vcombine.high %v2494_v31, %v2494_v31  ;;  %v6919_v20 = vsel %vm3001_vm13, %v2520_v25, -inf  ;;  %8817 = vst [vmem:[#allocation5_spill] sm:$0xff] %v6934_v10 }
 0x1af   : > { %v1162_v47 = vsel %vm1144_vm7, %v1133_v1, %v661_v22  ;;  %v1277_v30 = vsel %vm1260_vm11, %v1248_v62, %v1006_v59 }
 0x1b0   : > { %591 = vrot.lane.b32.xlu1 %v251_v6, %s5783_s10  ;;  %v834_v12 = vpop.permute.xlu0 %833  ;;  %v1191_v0 = vsel %vm1173_vm8, %v1162_v47, %v748_v3  ;;  %v1581_v17 = vcombine.high %v1277_v30, %v1277_v30  ;;  %v1588_v58 = vrot.slane %v1277_v30, %v6156_v55  ;;  %v6900_v33 = vsel %vm3001_vm13, %v2502_v38, -inf }
 0x1b1   : > { %v1220_v6 = vsel %vm1202_vm9, %v1191_v0, %v834_v12  ;;  %v3493_v0 = vmax.f32 %v6887_v57, %v6919_v20 }
 0x1b2   : > { %v921_v50 = vpop.permute.xlu1 %920  ;;  %376 = vrot.lane.b32.xlu0 %v6611_v23, %s5785_s12  ;;  %v6843_v23 = vld [vmem:[%s5880_s9 + $0xf8] sm:$0xff]  ;;  %v1595_v22 = vrot.slane %v1581_v17, %v6156_v55  ;;  %v1596_v1 = vcombine.high %v1588_v58, %v1588_v58 }
 0x1b3   : > { %v884_v41 = vrot.slane %v6843_v23, 1  ;;  %v971_v56 = vrot.slane %v6843_v23, 2 }
 0x1b4   : > { %678 = vrot.lane.b32.xlu1 %v625_v46, %s5786_s13  ;;  %v750_v44 = vpop.permute.xlu0 %749  ;;  %v1249_v46 = vsel %vm1231_vm10, %v1220_v6, %v921_v50  ;;  %v1597_v24 = vcombine.high %v1595_v22, %v1595_v22  ;;  %v2017_v38 = vcombine.low %v1588_v58, %v1596_v1 }
 0x1b5   : > { %v1192_v59 = vsel %vm1173_vm8, %v1163_v40, %v750_v44 }
 0x1b6   : > { %v1008_v2 = vpop.permute.xlu1 %1007  ;;  %503 = vrot.lane.b32.xlu0 %v6627_v48, %s5784_s11  ;;  %v6858_v48 = vld [vmem:[%s5880_s9 + $0xf0] sm:$0xff]  ;;  %v2018_v43 = vcombine.low %v1595_v22, %v1597_v24 }
 0x1b7   : > { %v883_v7 = vrot.slane %v6858_v48, 1  ;;  %v1278_v63 = vsel %vm1260_vm11, %v1249_v46, %v1008_v2  ;;  %v970_v54 = vrot.slane %v6858_v48, 2 }
 0x1b8   : > { %589 = vrot.lane.b32.xlu1 %v6703_v36, %s5783_s10  ;;  %v836_v19 = vpop.permute.xlu0 %835  ;;  %v6870_v36 = vcombine.high %v6848_v35, %v6848_v35  ;;  %v1605_v5 = vrot.slane %v1278_v63, %v6156_v55  ;;  %v1598_v60 = vcombine.high %v1278_v63, %v1278_v63  ;;  %v2032_v24 = vrot.slane %v2018_v43, %v6156_v55 }
 0x1b9   : > { %v6894_v11 = vsel %vm283_vm0, %v883_v7, %v884_v41  ;;  %v1221_v32 = vsel %vm1202_vm9, %v1192_v59, %v836_v19  ;;  %vm3050_vm0 = vcmask 520192  }
 0x1ba   : > { %v6864_v52 = vpop.permute.xlu1 %366  ;;  %380 = vrot.lane.b32.xlu0 %v6710_v61, %s5785_s12  ;;  %v6912_v16 = vsel %vm3020_vm14, %v6870_v36, -inf  ;;  %v6927_v50 = vsel %vm3113_vm15, %v6870_v36, -inf  ;;  %v1613_v2 = vcombine.high %v1605_v5, %v1605_v5  ;;  %v1612_v63 = vrot.slane %v1598_v60, %v6156_v55 }
 0x1bc   : > { %507 = vrot.lane.b32.xlu1 %v6717_v51, %s5784_s11  ;;  %v6882_v42 = vpop.permute.xlu0 %364  ;;  %v2034_v59 = vcombine.low %v1605_v5, %v1613_v2  ;;  %v972_v5 = vsel %vm410_vm1, %v970_v54, %v971_v56  ;;  %v2025_v54 = vrot.slane %v2017_v38, %v6156_v55  ;;  %vm3105_vm1 = vcmask 521216  }
 0x1bd   : > { %v2343_v3 = vpop.f32.mrb[4].mxu0 }
 0x1be   : > { %v2344_v15 = vadd.f32 %v6806_v4, %v2343_v3  ;;  %v6906_v45 = vpop.permute.xlu1 %491  ;;  %v5149_v13 = vpop.f32.mrb[5].mxu0  ;;  %765 = vrot.lane.b32.xlu0 %v6795_v34, %s5787_s14  ;;  %v2033_v43 = vcombine.low %v2025_v54, %v2032_v24 }
 0x1bf   : > { %v2346_v9 = vpop.f32.mrb[6].mxu0 }
 0x1c0   : > { %v2439_v21 = vmax.f32 %v2344_v15, 0.0  ;;  %v2347_v34 = vadd.f32 %v6806_v4, %v2346_v9  ;;  %851 = vrot.lane.b32.xlu1 %v6858_v48, %s5788_s15  ;;  %v5150_v12 = vpop.f32.mrb[7].mxu0  ;;  %v923_v53 = vpop.permute.xlu0 %922 }
 0x1c1   : > { %v1250_v62 = vsel %vm1231_vm10, %v1221_v32, %v923_v53 }
 0x1c2   : > { %v2521_v47 = vcombine.high %v2439_v21, %v2439_v21  ;;  %v2528_v44 = vrot.slane %v2439_v21, %v6156_v55  ;;  %v2440_v31 = vmax.f32 %v2347_v34, 0.0  ;;  %v1010_v30 = vpop.permute.xlu1 %1009  ;;  %676 = vrot.lane.b32.xlu0 %v6710_v61, %s5786_s13 }
 0x1c3   : > { %v6939_v6 = vsel %vm1260_vm11, %v1250_v62, %v1010_v30  ;;  %v2042_v30 = vrot.slane %v2034_v59, %v6156_v55 }
 0x1c4   : > { %v6942_v19 = vrot.slane %v2521_v47, %v6156_v55  ;;  %v6944_v17 = vcombine.high %v2528_v44, %v2528_v44  ;;  %v6947_v7 = vsel %vm3001_vm13, %v2528_v44, -inf  ;;  %v2538_v14 = vcombine.high %v2440_v31, %v2440_v31  ;;  %763 = vrot.lane.b32.xlu1 %v6717_v51, %s5787_s14  ;;  %v494_v61 = vpop.permute.xlu0 %493 }
 0x1c5   : > { %v3499_v46 = vmax.f32 %v6900_v33, %v6947_v7  ;;  %v2545_v25 = vrot.slane %v2440_v31, %v6156_v55  ;;  %v6965_v51 = vrot.slane %v6939_v6, %v6156_v55  ;;  %v1614_v24 = vcombine.high %v6939_v6, %v6939_v6 }
 0x1c6   : > { %v6957_v3 = vsel %vm3001_vm13, %v6944_v17, -inf  ;;  %v6961_v40 = vsel %vm3020_vm14, %v6942_v19, -inf  ;;  %v580_v58 = vpop.permute.xlu1 %579  ;;  %593 = vrot.lane.b32.xlu0 %v6770_v26, %s5783_s10  ;;  %v6975_v13 = vsel %vm3113_vm15, %v6942_v19, -inf  ;;  %v2552_v29 = vrot.slane %v2538_v14, %v6156_v55 }
 0x1c7   : > { %v3505_v22 = vmax.f32 %v6904_v18, %v6957_v3  ;;  %v3513_v15 = vmax.f32 %v6912_v16, %v6961_v40  ;;  %v3556_v9 = vmax.f32 %v6927_v50, %v6975_v13  ;;  %v2553_v32 = vcombine.high %v2545_v25, %v2545_v25 }
 0x1c8   : > { %v6981_v21 = vsel %vm3001_vm13, %v2545_v25, -inf  ;;  %680 = vrot.lane.b32.xlu1 %v6775_v8, %s5786_s13  ;;  %v578_v34 = vpop.permute.xlu0 %577  ;;  %v2554_v12 = vcombine.high %v2552_v29, %v2552_v29  ;;  %v6986_v53 = vsel %vm3001_vm13, %v2552_v29, -inf  ;;  %v2035_v47 = vcombine.low %v1612_v63, %v6965_v51  ;;  %s215_s13 = sand.u32 1, %s5773_s19  }
 0x1c9   : > { %v3573_v1 = vmax.f32 %v6934_v10, %v6981_v21  ;;  %v6999_v60 = vmax.f32 %v3493_v0, %v6986_v53  ;;  %v7008_v48 = vsel %vm3001_vm13, %v2553_v32, -inf  ;;  %s4891_s6 = scalar_lea.sflag [#allocation3], %s215_s13 }
 0x1ca   : > { %v667_v44 = vpop.permute.xlu1 %666  ;;  %938 = vrot.lane.b32.xlu0 %v6894_v11, %s5789_s16  ;;  %v7005_v31 = vsel %vm3001_vm13, %v2554_v12, -inf  ;;  %8818 = vst [vmem:[#allocation6_spill] sm:$0xff] %v7008_v48  ;;  %v2049_v0 = vrot.slane %v2035_v47, %v6156_v55  ;;  %v7018_v11 = vsel %vm3001_vm13, %v6852_v39, -inf  ;;  %v1078_v39 = vsel %vm1057_vm4, %v6473_v37, %v6864_v52 }
 0x1cb   : > { %8819 = vst [vmem:[#allocation7_spill] sm:$0xff] %v7018_v11  ;;  %v7023_v38 = vmax.f32 %v3499_v46, %v7005_v31  ;;  %v3579_v29 = vmax.f32 %v7018_v11, %v7008_v48  ;;  %v5709_v46 = vld [vmem:[%s5880_s9 + $0x98] sm:$0xff] }
 0x1cc   : > { %1025 = vrot.lane.b32.xlu1 %v972_v5, %s5790_s17  ;;  %v665_v14 = vpop.permute.xlu0 %664  ;;  %v2050_v25 = vcombine.low %v2042_v30, %v2049_v0 }
 0x1ce   : > { %v754_v63 = vpop.permute.xlu1 %753  ;;  %849 = vrot.lane.b32.xlu0 %v6770_v26, %s5788_s15  ;;  %v2227_v59 = vpack.c.bf16 %v2050_v25, %v2033_v43  ;;  %v1107_v26 = vsel %vm1086_vm5, %v1078_v39, %v494_v61 }
 0x1cf   : > { %v1136_v37 = vsel %vm1115_vm6, %v1107_v26, %v580_v58  ;;  %v7079_v26 = vcombine.high %v6942_v19, %v6942_v19 }
 0x1d0   : > { %936 = vrot.lane.b32.xlu1 %v6775_v8, %s5789_s16  ;;  %v752_v32 = vpop.permute.xlu0 %751  ;;  %5172 = vmatmul.mubr.msk.bf16.gmra.mrb[28].mxu0 %vm2255_vm12, %v2227_v59  ;;  %v1077_v8 = vsel %vm1057_vm4, %v5709_v46, %v6882_v42  ;;  %v1165_v47 = vsel %vm1144_vm7, %v1136_v37, %v667_v44  ;;  %v3739_v37 = vld [vmem:[%s8795_s3] sm:$0xff] }
 0x1d1   : > { %5175 = vmatprep.mubr.msk.bf16.mxu0 %vm5793_vm3, %v8800_v27  ;;  %v1106_v61 = vsel %vm1086_vm5, %v1077_v8, %v6906_v45  ;;  %v1194_v54 = vsel %vm1173_vm8, %v1165_v47, %v754_v63 }
 0x1d2   : > { %v840_v12 = vpop.permute.xlu1 %839  ;;  %767 = vrot.lane.b32.xlu0 %v6784_v49, %s5787_s14  ;;  %v1135_v42 = vsel %vm1115_vm6, %v1106_v61, %v578_v34  ;;  %v1628_v34 = vrot.slane %v1614_v24, %v6156_v55 }
 0x1d3   : > { %v1164_v58 = vsel %vm1144_vm7, %v1135_v42, %v665_v14  ;;  %v1223_v30 = vsel %vm1202_vm9, %v1194_v54, %v840_v12 }
 0x1d4   : > { %1023 = vrot.lane.b32.xlu1 %v6784_v49, %s5790_s17  ;;  %v838_v5 = vpop.permute.xlu0 %837  ;;  %v1193_v45 = vsel %vm1173_vm8, %v1164_v58, %v752_v32  ;;  %v1630_v12 = vcombine.high %v1628_v34, %v1628_v34 }
 0x1d5   : > { %v1222_v44 = vsel %vm1202_vm9, %v1193_v45, %v838_v5  ;;  %v8798_v45 = vmov 0.0|0.0  }
 0x1d6   : > { %v927_v52 = vpop.permute.xlu1 %926  ;;  %853 = vrot.lane.b32.xlu0 %v6843_v23, %s5788_s15  ;;  %5461 = vmatprep.subr.bf16.mxu0 %v8798_v45 }
 0x1d7   : > { %v1252_v0 = vsel %vm1231_vm10, %v1223_v30, %v927_v52  ;;  %v3740_v52 = vld [vmem:[%s8795_s3 + $0x8] sm:$0xff]  ;;  %5509 = vmatprep.subr.bf16.mxu1 %v8798_v45 }
 0x1d8   : > { %v925_v49 = vpop.permute.xlu0 %924  ;;  %1027 = vrot.lane.b32.xlu1 %v971_v56, %s5790_s17  ;;  %v1629_v56 = vcombine.high %v6965_v51, %v6965_v51  ;;  %v5462_v42 = vpack.c.bf16 %v3740_v52, %v3739_v37  ;;  %v7125_v37 = vsel %vm3020_vm14, %v6848_v35, -inf  ;;  %v3745_v35 = vld [vmem:[%s8795_s3 + $0x30] sm:$0xff]  ;;  %s216_s17 = scalar_lea.vmem [#allocation2], %s215_s13 }
 0x1d9   : > { %v1251_v14 = vsel %vm1231_vm10, %v1222_v44, %v925_v49  ;;  %v3741_v44 = vld [vmem:[%s8795_s3 + $0x10] sm:$0xff]  ;;  %s4903_s23 = sshll.u32 %s216_s17, 4  ;;  %s8752_s23 = int_to_ptr.vmem [resolvable:$true] %s4903_s23 }
 0x1da   : > { %v1014_v6 = vpop.permute.xlu1 %1013  ;;  %940 = vrot.lane.b32.xlu0 %v884_v41, %s5789_s16  ;;  %v2051_v51 = vcombine.low %v1629_v56, %v1628_v34  ;;  %5463 = vmatpush3.bf16.msra.mxu0 %v5462_v42  ;;  %v3742_v56 = vld [vmem:[%s8795_s3 + $0x18] sm:$0xff]  ;;  %v7130_v42 = vsel %vm3001_vm13, %v6870_v36, -inf  ;;  %s4994_s16 = sshll.u32 %s5848_s22, 4  ;;  %s5719_s22 = scalar_lea.vmem %s8752_s23, 16 }
 0x1db   : > { %v7066_v43 = vsel %vm1260_vm11, %v1252_v0, %v1014_v6  ;;  %v7096_v0 = vsel %vm3001_vm13, %v6873_v28, -inf  ;;  %5464 = vmatprep.subr.bf16.mxu0 %v8798_v45  ;;  %v5465_v52 = vpack.c.bf16 %v3742_v56, %v3741_v44  ;;  %v3746_v44 = vld [vmem:[%s8795_s3 + $0x38] sm:$0xff]  ;;  %s8750_s30 = scalar_lea.hbm %s8797_s5, %s4994_s16  ;;  %p5720_p11 = scmp.ne.s32.totalorder %s8752_s23, %s5719_s22 }
 0x1dc   : > { %v1654_v25 = vrot.slane %v7066_v43, %v6156_v55  ;;  %v1012_v63 = vpop.permute.xlu0 %1011  ;;  %p5726_p0 = scmp.lt.s32.totalorder %s8752_s23, %s5724_s8 }
 0x1dd   : > { %v1280_v59 = vsel %vm1260_vm11, %v1251_v14, %v1012_v63  ;;  %v7109_v63 = vsel %vm3001_vm13, %v7079_v26, -inf  ;;  %p5721_p12 = pnand %p5720_p11, %p5865_p5 }
 0x1de   : > { %v1662_v23 = vcombine.high %v1654_v25, %v1654_v25  ;;  %v1631_v41 = vcombine.high %v1280_v59, %v1280_v59  ;;  %v1638_v32 = vrot.slane %v1280_v59, %v6156_v55  ;;  %v7075_v39 = vpop.permute.xlu1 %370  ;;  %5466 = vmatpush3.bf16.msra.mxu0 %v5465_v52 }
 0x1df   : > { %5467 = vmatprep.subr.bf16.mxu0 %v8798_v45  ;;  %p5722_p13 = pneg %p5721_p12 }
 0x1e0   : > { %v1645_v46 = vrot.slane %v1631_v41, %v6156_v55  ;;  %v1646_v8 = vcombine.high %v1638_v32, %v1638_v32  ;;  %v7082_v5 = vpop.permute.xlu0 %368  ;;  %v2069_v61 = vcombine.low %v1654_v25, %v1662_v23  ;;  %v2052_v24 = vcombine.low %v1630_v12, %v1638_v32  ;;  %v3743_v32 = vld [vmem:[%s8795_s3 + $0x20] sm:$0xff]  ;;  %v3744_v12 = vld [vmem:[%s8795_s3 + $0x28] sm:$0xff] }
 0x1e1   : > { %v2351_v47 = vpop.f32.mrb[8].mxu0 }
 0x1e2   : > { %v2068_v54 = vcombine.low %v1646_v8, %v1645_v46  ;;  %v2352_v49 = vadd.f32 %v6806_v4, %v2351_v47  ;;  %v7091_v58 = vpop.permute.xlu1 %497  ;;  %v5153_v30 = vpop.f32.mrb[9].mxu0  ;;  %v2066_v6 = vrot.slane %v2052_v24, %v6156_v55  ;;  %v2059_v46 = vrot.slane %v2051_v51, %v6156_v55 }
 0x1e3   : > { %v2354_v34 = vpop.f32.mrb[10].mxu0  ;;  %v2083_v8 = vrot.slane %v2069_v61, %v6156_v55  ;;  %v3567_v51 = vmax.f32 %v7096_v0, %v7109_v63 }
 0x1e4   : > { %v2076_v14 = vrot.slane %v2068_v54, %v6156_v55  ;;  %v2441_v25 = vmax.f32 %v2352_v49, 0.0  ;;  %v2355_v59 = vadd.f32 %v6806_v4, %v2354_v34  ;;  %v5154_v23 = vpop.f32.mrb[11].mxu0  ;;  %v7112_v41 = vpop.permute.xlu0 %495  ;;  %v2067_v30 = vcombine.low %v2059_v46, %v2066_v6 }
 0x1e5   : > { %v5468_v34 = vpack.c.bf16 %v3744_v12, %v3743_v32 }
 0x1e6   : > { %v2555_v24 = vcombine.high %v2441_v25, %v2441_v25  ;;  %v2562_v47 = vrot.slane %v2441_v25, %v6156_v55  ;;  %v2442_v54 = vmax.f32 %v2355_v59, 0.0  ;;  %v7132_v49 = vpop.permute.xlu1 %583  ;;  %v2084_v61 = vcombine.low %v2076_v14, %v2083_v8 }
 0x1e7   : > { %5469 = vmatpush3.bf16.msra.mxu0 %v5468_v34 }
 0x1e8   : > { %v2569_v36 = vrot.slane %v2555_v24, %v6156_v55  ;;  %v2570_v56 = vcombine.high %v2562_v47, %v2562_v47  ;;  %v7144_v25 = vsel %vm3020_vm14, %v2562_v47, -inf  ;;  %v7147_v6 = vsel %vm3001_vm13, %v2562_v47, -inf  ;;  %v7149_v14 = vpop.permute.xlu0 %581  ;;  %5470 = vmatprep.subr.bf16.mxu0 %v8798_v45 }
 0x1e9   : > { %v7160_v32 = vmax.f32 %v3505_v22, %v7147_v6  ;;  %v2572_v12 = vcombine.high %v2442_v54, %v2442_v54  ;;  %v5471_v47 = vpack.c.bf16 %v3746_v44, %v3745_v35  ;;  %v2579_v23 = vrot.slane %v2442_v54, %v6156_v55 }
 0x1ea   : > { %v2571_v46 = vcombine.high %v2569_v36, %v2569_v36  ;;  %v7163_v8 = vsel %vm3001_vm13, %v2570_v56, -inf  ;;  %v7166_v52 = vsel %vm3001_vm13, %v2569_v36, -inf  ;;  %v671_v24 = vpop.permute.xlu1 %670  ;;  %v3514_v2 = vsel %vm3020_vm14, %v2570_v56, -inf }
 0x1eb   : > { %v3557_v22 = vsel %vm3113_vm15, %v2570_v56, -inf  ;;  %v7177_v62 = vmax.f32 %v3513_v15, %v3514_v2  ;;  %v7185_v44 = vmax.f32 %v3567_v51, %v7166_v52  ;;  %v2586_v34 = vrot.slane %v2572_v12, %v6156_v55  ;;  %5472 = vmatpush3.bf16.msra.mxu0 %v5471_v47 }
 0x1ec   : > { %v7182_v35 = vmax.f32 %v3556_v9, %v3557_v22  ;;  %v669_v59 = vpop.permute.xlu0 %668  ;;  %v2228_v56 = vpack.c.bf16 %v2084_v61, %v2067_v30  ;;  %v7191_v16 = vsel %vm3113_vm15, %v2569_v36, -inf  ;;  %v2587_v40 = vcombine.high %v2579_v23, %v2579_v23  ;;  %5473 = vmatprep.subr.bf16.mxu0 %v8798_v45  ;;  %v5710_v61 = vld [vmem:[%s5880_s9 + $0xb0] sm:$0xff] }
 0x1ed   : > { %8820 = vst [vmem:[#allocation8_spill] sm:$0xff] %v7191_v16  ;;  %v7194_v15 = vsel %vm3001_vm13, %v2579_v23, -inf  ;;  %v2588_v13 = vcombine.high %v2586_v34, %v2586_v34  ;;  %v7197_v9 = vsel %vm3001_vm13, %v2586_v34, -inf  ;;  %v7216_v23 = vsel %vm3001_vm13, %v2571_v46, -inf }
 0x1ee   : > { %8821 = vst [vmem:[#allocation9_spill] sm:$0xff] %v7194_v15  ;;  %v758_v50 = vpop.permute.xlu1 %757  ;;  %v7205_v54 = vmax.f32 %v3579_v29, %v7194_v15  ;;  %5176 = vmatmul.mubr.msk.bf16.gmra.mrb[32].mxu0 %vm2255_vm12, %v2228_v56  ;;  %v7209_v30 = vsel %vm3001_vm13, %v2587_v40, -inf  ;;  %8822 = vst [vmem:[#allocation10_spill] sm:$0xff] %v7216_v23  ;;  %v7222_v29 = vsel %vm3020_vm14, %v6944_v17, -inf  ;;  %v7235_v34 = vsel %vm3113_vm15, %v6873_v28, -inf  ;;  %v5711_v56 = vld [vmem:[%s5880_s9 + $0xa8] sm:$0xff] }
 0x1ef   : > { %5179 = vmatprep.mubr.msk.bf16.mxu0 %vm5793_vm3, %v8800_v27  ;;  %v7225_v12 = vsel %vm3020_vm14, %v2588_v13, -inf  ;;  %v7228_v22 = vsel %vm3001_vm13, %v2588_v13, -inf  ;;  %8823 = vst [vmem:[#allocation11_spill] sm:$0xff] %v7235_v34  ;;  %v7249_v45 = vmax.f32 %v3573_v1, %v7216_v23  ;;  %v1080_v46 = vsel %vm1057_vm4, %v5710_v61, %v7075_v39 }
 0x1f0   : > { %v756_v36 = vpop.permute.xlu0 %755  ;;  %v1079_v27 = vsel %vm1057_vm4, %v5711_v56, %v7082_v5  ;;  %v1109_v13 = vsel %vm1086_vm5, %v1080_v46, %v7091_v58  ;;  %v1647_v1 = vcombine.high %v7066_v43, %v7066_v43 }
 0x1f1   : > { %8824 = vst [vmem:[#allocation12_spill] sm:$0xff] %v7249_v45  ;;  %v1108_v28 = vsel %vm1086_vm5, %v1079_v27, %v7112_v41  ;;  %v1138_v51 = vsel %vm1115_vm6, %v1109_v13, %v7132_v49 }
 0x1f2   : > { %v844_v40 = vpop.permute.xlu1 %843  ;;  %v1137_v39 = vsel %vm1115_vm6, %v1108_v28, %v7149_v14  ;;  %v1167_v61 = vsel %vm1144_vm7, %v1138_v51, %v671_v24  ;;  %v1661_v27 = vrot.slane %v1647_v1, %v6156_v55 }
 0x1f3   : > { %v1166_v5 = vsel %vm1144_vm7, %v1137_v39, %v669_v59  ;;  %v1196_v58 = vsel %vm1173_vm8, %v1167_v61, %v758_v50 }
 0x1f4   : > { %v842_v2 = vpop.permute.xlu0 %841  ;;  %v1195_v46 = vsel %vm1173_vm8, %v1166_v5, %v756_v36  ;;  %v1225_v43 = vsel %vm1202_vm9, %v1196_v58, %v844_v40  ;;  %v1663_v39 = vcombine.high %v1661_v27, %v1661_v27 }
 0x1f5   : > { %v1224_v41 = vsel %vm1202_vm9, %v1195_v46, %v842_v2 }
 0x1f6   : > { %v929_v17 = vpop.permute.xlu1 %928 }
 0x1f7   : > { %v1253_v13 = vsel %vm1231_vm10, %v1224_v41, %v929_v17  ;;  %v7288_v17 = vsel %vm3001_vm13, %v6942_v19, -inf  ;;  %v7302_v19 = vsel %vm3113_vm15, %v7079_v26, -inf }
 0x1f8   : > { %v375_v47 = vpop.permute.xlu0 %374 }
 0x1fa   : > { %v7270_v15 = vpop.permute.xlu1 %501 }
 0x1fc   : > { %v931_v56 = vpop.permute.xlu0 %930 }
 0x1fd   : > { %v1254_v49 = vsel %vm1231_vm10, %v1225_v43, %v931_v56 }
 0x1fe   : > { %v1018_v14 = vpop.permute.xlu1 %1017 }
 0x1ff   : > { %v1283_v24 = vsel %vm1260_vm11, %v1254_v49, %v1018_v14  ;;  %v2359_v51 = vpop.f32.mrb[12].mxu0 }
 0x200   : > { %v1680_v59 = vcombine.high %v1283_v24, %v1283_v24  ;;  %v1687_v50 = vrot.slane %v1283_v24, %v6156_v55  ;;  %v2360_v36 = vadd.f32 %v6806_v4, %v2359_v51  ;;  %v5157_v28 = vpop.f32.mrb[13].mxu0  ;;  %v1016_v40 = vpop.permute.xlu0 %1015 }
 0x201   : > { %v1282_v1 = vsel %vm1260_vm11, %v1253_v13, %v1016_v40  ;;  %v2362_v2 = vpop.f32.mrb[14].mxu0  ;;  %v2085_v13 = vcombine.low %v1661_v27, %v1663_v39  ;;  %v8825_v27 = vmax.f32 %v6887_v57, %v6986_v53  ;;  %v8827_v57 = vmax.f32 %v6904_v18, %v7147_v6 }
 0x202   : > { %v2443_v61 = vmax.f32 %v2360_v36, 0.0  ;;  %v1664_v5 = vcombine.high %v1282_v1, %v1282_v1  ;;  %v7284_v58 = vpop.permute.xlu1 %587  ;;  %v5158_v46 = vpop.f32.mrb[15].mxu0  ;;  %v1671_v43 = vrot.slane %v1282_v1, %v6156_v55  ;;  %v2363_v56 = vadd.f32 %v6806_v4, %v2362_v2  ;;  %v5712_v36 = vld [vmem:[%s5880_s9 + $0xc0] sm:$0xff] }
 0x203   : > { %v7293_v41 = vrot.slane %v1680_v59, %v6156_v55  ;;  %v1695_v49 = vcombine.high %v1687_v50, %v1687_v50  ;;  %v1082_v28 = vsel %vm1057_vm4, %v5712_v36, %v375_v47 }
 0x204   : > { %v2589_v14 = vcombine.high %v2443_v61, %v2443_v61  ;;  %v2596_v24 = vrot.slane %v2443_v61, %v6156_v55  ;;  %v7296_v51 = vpop.permute.xlu0 %372  ;;  %v1679_v40 = vcombine.high %v1671_v43, %v1671_v43  ;;  %v1678_v2 = vrot.slane %v1664_v5, %v6156_v55 }
 0x205   : > { %v2444_v46 = vmax.f32 %v2363_v56, 0.0  ;;  %v2103_v26 = vcombine.low %v1695_v49, %v7293_v41 }
 0x206   : > { %v2603_v1 = vrot.slane %v2589_v14, %v6156_v55  ;;  %v7306_v59 = vsel %vm3001_vm13, %v2596_v24, -inf  ;;  %v675_v61 = vpop.permute.xlu1 %674  ;;  %v3516_v39 = vsel %vm3020_vm14, %v2596_v24, -inf  ;;  %v3559_v47 = vsel %vm3113_vm15, %v2596_v24, -inf }
 0x207   : > { %v2086_v36 = vcombine.low %v1671_v43, %v1679_v40  ;;  %v3517_v23 = vmax.f32 %v7177_v62, %v3516_v39  ;;  %v3560_v56 = vmax.f32 %v7182_v35, %v3559_v47  ;;  %v2102_v49 = vcombine.low %v1678_v2, %v1687_v50 }
 0x208   : > { %v2605_v11 = vcombine.high %v2603_v1, %v2603_v1  ;;  %v7315_v14 = vsel %vm3001_vm13, %v2603_v1, -inf  ;;  %v500_v10 = vpop.permute.xlu0 %499  ;;  %v2606_v40 = vcombine.high %v2444_v46, %v2444_v46  ;;  %v2613_v1 = vrot.slane %v2444_v46, %v6156_v55 }
 0x209   : > { %v2100_v16 = vrot.slane %v2086_v36, %v6156_v55  ;;  %v2093_v62 = vrot.slane %v2085_v13, %v6156_v55  ;;  %v2604_v39 = vcombine.high %v2596_v24, %v2596_v24  ;;  %v2110_v47 = vrot.slane %v2102_v49, %v6156_v55 }
 0x20a   : > { %v7325_v43 = vsel %vm3001_vm13, %v2605_v11, -inf  ;;  %v762_v34 = vpop.permute.xlu1 %761  ;;  %v2620_v36 = vrot.slane %v2606_v40, %v6156_v55  ;;  %v2621_v11 = vcombine.high %v2613_v1, %v2613_v1  ;;  %v7336_v50 = vsel %vm3001_vm13, %v2613_v1, -inf }
 0x20b   : > { %v3007_v46 = vmax.f32 %v6919_v20, %v7209_v30  ;;  %v1111_v24 = vsel %vm1086_vm5, %v1082_v28, %v7270_v15  ;;  %v2117_v13 = vrot.slane %v2103_v26, %v6156_v55  ;;  %v3009_v49 = vmax.f32 %v8825_v27, %v7336_v50 }
 0x20c   : > { %v586_v2 = vpop.permute.xlu0 %585  ;;  %v2101_v5 = vcombine.low %v2093_v62, %v2100_v16  ;;  %v2622_v40 = vcombine.high %v2620_v36, %v2620_v36  ;;  %v7348_v35 = vsel %vm3001_vm13, %v2621_v11, -inf  ;;  %v7351_v1 = vsel %vm3001_vm13, %v2620_v36, -inf }
 0x20d   : > { %v7354_v20 = vsel %vm3113_vm15, %v2604_v39, -inf  ;;  %v3010_v15 = vmax.f32 %v3009_v49, %v3007_v46  ;;  %v8826_v28 = vmax.f32 %v6900_v33, %v7005_v31  ;;  %v3065_v53 = vmax.f32 %v8827_v57, %v7351_v1 }
 0x20e   : > { %v848_v45 = vpop.permute.xlu1 %847  ;;  %v3518_v16 = vsel %vm3020_vm14, %v2622_v40, -inf  ;;  %v3561_v27 = vsel %vm3113_vm15, %v2622_v40, -inf  ;;  %v2118_v62 = vcombine.low %v2110_v47, %v2117_v13  ;;  %v7367_v48 = vsel %vm3001_vm13, %v2604_v39, -inf }
 0x20f   : > { %v3018_v26 = vmax.f32 %v8826_v28, %v7348_v35  ;;  %v8828_v46 = vmax.f32 %v6947_v7, %v7197_v9  ;;  %v8829_v33 = vmax.f32 %v6957_v3, %v7228_v22  ;;  %v7377_v18 = vmax.f32 %v3517_v23, %v3518_v16 }
 0x210   : > { %v673_v11 = vpop.permute.xlu0 %672  ;;  %v7379_v6 = vmax.f32 %v3560_v56, %v3561_v27  ;;  %v1140_v47 = vsel %vm1115_vm6, %v1111_v24, %v7284_v58  ;;  %v2229_v13 = vpack.c.bf16 %v2118_v62, %v2101_v5  ;;  %v3119_v28 = vmax.f32 %v7302_v19, %v7354_v20  ;;  %v5713_v5 = vld [vmem:[%s5880_s9 + $0xb8] sm:$0xff] }
 0x211   : > { %v3019_v49 = vmax.f32 %v3018_v26, %v8828_v46  ;;  %v7375_v31 = vmax.f32 %v3065_v53, %v8829_v33  ;;  %v1169_v26 = vsel %vm1144_vm7, %v1140_v47, %v675_v61  ;;  %v3569_v3 = vmax.f32 %v7185_v44, %v7367_v48  ;;  %v8843_v44 = vld [vmem:[#allocation10_spill] sm:$0xff] }
 0x212   : > { %v935_v39 = vpop.permute.xlu1 %934  ;;  %v1198_v57 = vsel %vm1173_vm8, %v1169_v26, %v762_v34  ;;  %5180 = vmatmul.mubr.msk.bf16.gmra.mrb[36].mxu0 %vm2255_vm12, %v2229_v13  ;;  %v7391_v56 = vsel %vm3020_vm14, %v2620_v36, -inf  ;;  %v7394_v58 = vsel %vm3001_vm13, %v2622_v40, -inf  ;;  %v1081_v24 = vsel %vm1057_vm4, %v5713_v5, %v7296_v51 }
 0x213   : > { %v3033_v7 = vcombine.low %v3010_v15, %v3019_v49  ;;  %v1227_v61 = vsel %vm1202_vm9, %v1198_v57, %v848_v45  ;;  %v8830_v15 = vmov 0.0   ;;  %v8831_v34 = vmax.f32 %v7125_v37, %v7144_v25 }
 0x214   : > { %v760_v23 = vpop.permute.xlu0 %759  ;;  %5183 = vmatprep.mubr.msk.bf16.mxu0 %vm5793_vm3, %v8830_v15  ;;  %v8832_v36 = vmax.f32 %v7130_v42, %v7163_v8  ;;  %v1110_v16 = vsel %vm1086_vm5, %v1081_v24, %v500_v10  ;;  %v1256_v27 = vsel %vm1231_vm10, %v1227_v61, %v935_v39  ;;  %v8833_v46 = vmax.f32 %v7222_v29, %v7225_v12 }
 0x215   : > { %v3028_v53 = vmax.f32 %v8831_v34, %v7391_v56  ;;  %v3040_v45 = vrot.slane %v3033_v7, %v6156_v55  ;;  %v8834_v37 = vmax.f32 %v7288_v17, %v7306_v59  ;;  %v1139_v42 = vsel %vm1115_vm6, %v1110_v16, %v586_v2 }
 0x216   : > { %v3074_v40 = vmax.f32 %v8832_v36, %v7394_v58  ;;  %v1022_v51 = vpop.permute.xlu1 %1021  ;;  %v1168_v33 = vsel %vm1144_vm7, %v1139_v42, %v673_v11 }
 0x217   : > { %v1285_v62 = vsel %vm1260_vm11, %v1256_v27, %v1022_v51  ;;  %v3029_v49 = vmax.f32 %v3028_v53, %v8833_v46  ;;  %v1197_v39 = vsel %vm1173_vm8, %v1168_v33, %v760_v23  ;;  %v1696_v23 = vcombine.high %v7293_v41, %v7293_v41 }
 0x218   : > { %v7420_v25 = vmax.f32 %v3074_v40, %v8834_v37  ;;  %v1713_v8 = vcombine.high %v1285_v62, %v1285_v62  ;;  %v846_v10 = vpop.permute.xlu0 %845  ;;  %v1720_v29 = vrot.slane %v1285_v62, %v6156_v55 }
 0x219   : > { %v3047_v47 = vrot.slane %v3029_v49, %v6156_v55  ;;  %v1226_v59 = vsel %vm1202_vm9, %v1197_v39, %v846_v10 }
 0x21a   : > { %v3088_v13 = vcombine.low %v7375_v31, %v7420_v25  ;;  %v1727_v12 = vrot.slane %v1713_v8, %v6156_v55  ;;  %v933_v17 = vpop.permute.xlu1 %932  ;;  %v1728_v57 = vcombine.high %v1720_v29, %v1720_v29 }
 0x21b   : > { %v7431_v7 = vcombine.low %v3040_v45, %v3047_v47  ;;  %v1255_v11 = vsel %vm1231_vm10, %v1226_v59, %v933_v17 }
 0x21c   : > { %v1729_v2 = vcombine.high %v1727_v12, %v1727_v12  ;;  %v379_v26 = vpop.permute.xlu0 %378  ;;  %v2136_v40 = vcombine.low %v1720_v29, %v1728_v57 }
 0x21e   : > { %v1020_v5 = vpop.permute.xlu1 %1019  ;;  %v2137_v61 = vcombine.low %v1727_v12, %v1729_v2  ;;  %v2144_v37 = vrot.slane %v2136_v40, %v6156_v55  ;;  %v5714_v2 = vld [vmem:[%s5880_s9 + $0xd0] sm:$0xff] }
 0x21f   : > { %v1284_v24 = vsel %vm1260_vm11, %v1255_v11, %v1020_v5  ;;  %v1084_v57 = vsel %vm1057_vm4, %v5714_v2, %v379_v26  ;;  %v5716_v26 = vld [vmem:[%s5880_s9 + $0xd8] sm:$0xff] }
 0x220   : > { %v1697_v34 = vcombine.high %v1284_v24, %v1284_v24  ;;  %v1704_v53 = vrot.slane %v1284_v24, %v6156_v55  ;;  %v506_v36 = vpop.permute.xlu0 %505  ;;  %v2151_v62 = vrot.slane %v2137_v61, %v6156_v55 }
 0x221   : > { %v1113_v5 = vsel %vm1086_vm5, %v1084_v57, %v506_v36 }
 0x222   : > { %v1711_v16 = vrot.slane %v1697_v34, %v6156_v55  ;;  %v1712_v27 = vcombine.high %v1704_v53, %v1704_v53  ;;  %v2119_v51 = vcombine.low %v1696_v23, %v1704_v53  ;;  %v592_v45 = vpop.permute.xlu1 %591  ;;  %v2152_v10 = vcombine.low %v2144_v37, %v2151_v62  ;;  %v5715_v34 = vld [vmem:[%s5880_s9 + $0xc8] sm:$0xff]  ;;  %s5725_s9 = scalar_lea.vmem %s5724_s8, 32 }
 0x223   : > { %v1142_v23 = vsel %vm1115_vm6, %v1113_v5, %v592_v45  ;;  %p5727_p1 = scmp.lt.s32.totalorder %s5725_s9, %s5719_s22 }
 0x224   : > { %v2120_v46 = vcombine.low %v1712_v27, %v1711_v16  ;;  %v377_v49 = vpop.permute.xlu0 %376  ;;  %v2127_v42 = vrot.slane %v2119_v51, %v6156_v55 }
 0x225   : > { %v1083_v53 = vsel %vm1057_vm4, %v5715_v34, %v377_v49  ;;  %v8835_v49 = vmax.f32 %v6999_v60, %v7209_v30  ;;  %v8839_v34 = vld [vmem:[#allocation11_spill] sm:$0xff]  ;;  %p5728_p2 = por %p5727_p1, %p5726_p0 }
 0x226   : > { %v2134_v41 = vrot.slane %v2120_v46, %v6156_v55  ;;  %v679_v8 = vpop.permute.xlu1 %678 }
 0x227   : > { %v1171_v51 = vsel %vm1144_vm7, %v1142_v23, %v679_v8  ;;  %v3081_v8 = vmax.f32 %v7109_v63, %v7367_v48  ;;  %v8842_v48 = vld [vmem:[#allocation5_spill] sm:$0xff]  ;;  %p5729_p3 = pnand %p5728_p2, %p5722_p13 }
 0x228   : > { %v2135_v33 = vcombine.low %v2127_v42, %v2134_v41  ;;  %v504_v47 = vpop.permute.xlu0 %503 }
 0x229   : > { %v1112_v62 = vsel %vm1086_vm5, %v1083_v53, %v504_v47  ;;  %v8836_v47 = vmax.f32 %v7023_v38, %v7197_v9  ;;  %v8837_v38 = vmax.f32 %v7160_v32, %v7228_v22  ;;  %v8840_v32 = vld [vmem:[#allocation8_spill] sm:$0xff] }
 0x22a   : > { %v590_v39 = vpop.permute.xlu1 %589  ;;  %v2230_v29 = vpack.c.bf16 %v2152_v10, %v2135_v33  ;;  %v7463_v33 = vmax.f32 %v8835_v49, %v7336_v50  ;;  %v8841_v22 = vmax.f32 %v8839_v34, %v8840_v32 }
 0x22b   : > { %v7484_v9 = vmax.f32 %v8837_v38, %v7351_v1 }
 0x22c   : > { %5184 = vmatmul.mubr.msk.bf16.gmra.mrb[40].mxu0 %vm2255_vm12, %v2230_v29  ;;  %v381_v12 = vpop.permute.xlu0 %380  ;;  %v7471_v29 = vmax.f32 %v8836_v47, %v7348_v35  ;;  %v8848_v47 = vmax.f32 %v7205_v54, %v7325_v43 }
 0x22d   : > { %5187 = vmatprep.mubr.msk.bf16.mxu0 %vm5793_vm3, %v8830_v15  ;;  %v1085_v37 = vsel %vm1057_vm4, %v5716_v26, %v381_v12  ;;  %v1141_v12 = vsel %vm1115_vm6, %v1112_v62, %v590_v39  ;;  %vm3161_vm4 = vcmask 521217  }
 0x22e   : > { %v508_v17 = vpop.permute.xlu1 %507 }
 0x22f   : > { %v1114_v60 = vsel %vm1086_vm5, %v1085_v37, %v508_v17  ;;  %vm3546_vm5 = vcmask 522240  }
 0x230   : > { %v766_v59 = vpop.permute.xlu0 %765 }
 0x231   : > { %v1200_v36 = vsel %vm1173_vm8, %v1171_v51, %v766_v59 }
 0x232   : > { %v852_v11 = vpop.permute.xlu1 %851 }
 0x233   : > { %v1229_v30 = vsel %vm1202_vm9, %v1200_v36, %v852_v11  ;;  %v8838_v11 = vmax.f32 %v7096_v0, %v7166_v52 }
 0x234   : > { %v677_v24 = vpop.permute.xlu0 %676 }
 0x235   : > { %v2367_v61 = vpop.f32.mrb[16].mxu0  ;;  %v1170_v63 = vsel %vm1144_vm7, %v1141_v12, %v677_v24 }
 0x236   : > { %v2368_v40 = vadd.f32 %v6806_v4, %v2367_v61  ;;  %v764_v16 = vpop.permute.xlu1 %763  ;;  %v5161_v27 = vpop.f32.mrb[17].mxu0 }
 0x237   : > { %v2370_v46 = vpop.f32.mrb[18].mxu0  ;;  %v1199_v19 = vsel %vm1173_vm8, %v1170_v63, %v764_v16 }
 0x238   : > { %v2445_v42 = vmax.f32 %v2368_v40, 0.0  ;;  %v2371_v45 = vadd.f32 %v6806_v4, %v2370_v46  ;;  %v5162_v41 = vpop.f32.mrb[19].mxu0  ;;  %v594_v10 = vpop.permute.xlu0 %593 }
 0x23a   : > { %v2623_v4 = vcombine.high %v2445_v42, %v2445_v42  ;;  %v2630_v59 = vrot.slane %v2445_v42, %v6156_v55  ;;  %v2446_v2 = vmax.f32 %v2371_v45, 0.0  ;;  %v7475_v57 = vpop.permute.xlu1 %680  ;;  %v8845_v42 = vld [vmem:[#allocation7_spill] sm:$0xff]  ;;  %v8846_v45 = vld [vmem:[#allocation9_spill] sm:$0xff] }
 0x23b   : > { %v8847_v41 = vmax.f32 %v8845_v42, %v8846_v45 }
 0x23c   : > { %v2637_v39 = vrot.slane %v2623_v4, %v6156_v55  ;;  %v2638_v5 = vcombine.high %v2630_v59, %v2630_v59  ;;  %v7488_v61 = vsel %vm3001_vm13, %v2630_v59, -inf  ;;  %v7491_v23 = vsel %vm3113_vm15, %v2630_v59, -inf  ;;  %v939_v17 = vpop.permute.xlu0 %938 }
 0x23d   : > { %v3083_v24 = vmax.f32 %v8838_v11, %v7488_v61  ;;  %v3121_v53 = vmax.f32 %v8841_v22, %v7491_v23  ;;  %v7505_v40 = vmax.f32 %v3569_v3, %v7488_v61  ;;  %v2640_v27 = vcombine.high %v2446_v2, %v2446_v2 }
 0x23e   : > { %v2639_v51 = vcombine.high %v2637_v39, %v2637_v39  ;;  %v7508_v62 = vsel %vm3001_vm13, %v2638_v5, -inf  ;;  %v7511_v46 = vsel %vm3001_vm13, %v2637_v39, -inf  ;;  %v2647_v0 = vrot.slane %v2446_v2, %v6156_v55  ;;  %v1026_v52 = vpop.permute.xlu1 %1025  ;;  %v8850_v2 = vld [vmem:[#allocation6_spill] sm:$0xff] }
 0x23f   : > { %v3084_v26 = vmax.f32 %v3083_v24, %v3081_v8  ;;  %v3122_v37 = vmax.f32 %v3121_v53, %v3119_v28  ;;  %v8844_v3 = vmax.f32 %v8842_v48, %v8843_v44  ;;  %v3139_v49 = vmax.f32 %v8847_v41, %v7511_v46  ;;  %v8852_v41 = vld [vmem:[#allocation12_spill] sm:$0xff] }
 0x240   : > { %v7529_v8 = vmax.f32 %v8848_v47, %v7511_v46  ;;  %v7533_v20 = vrot.slane %v2640_v27, %v6156_v55  ;;  %v7535_v28 = vcombine.high %v2647_v0, %v2647_v0  ;;  %v850_v12 = vpop.permute.xlu0 %849  ;;  %v8849_v4 = vmax.f32 %v6981_v21, %v7315_v14 }
 0x241   : > { %v3130_v36 = vmax.f32 %v8844_v3, %v7508_v62  ;;  %v8851_v38 = vmax.f32 %v8850_v2, %v7325_v43  ;;  %v7544_v54 = vsel %vm3001_vm13, %v2647_v0, -inf  ;;  %v1143_v5 = vsel %vm1115_vm6, %v1114_v60, %v594_v10 }
 0x242   : > { %v3102_v16 = vrot.slane %v3084_v26, %v6156_v55  ;;  %v7549_v63 = vsel %vm3001_vm13, %v2639_v51, -inf  ;;  %v7553_v11 = vsel %vm3001_vm13, %v7535_v28, -inf  ;;  %v3503_v21 = vmax.f32 %v7471_v29, %v7544_v54  ;;  %v937_v24 = vpop.permute.xlu1 %936 }
 0x243   : > { %v3131_v59 = vmax.f32 %v3130_v36, %v8849_v4  ;;  %v3140_v39 = vmax.f32 %v3139_v49, %v8851_v38  ;;  %v7559_v34 = vcombine.high %v7533_v20, %v7533_v20  ;;  %v3509_v10 = vmax.f32 %v7484_v9, %v7553_v11 }
 0x244   : > { %v7565_v60 = vsel %vm3020_vm14, %v7533_v20, -inf  ;;  %v7571_v22 = vsel %vm3113_vm15, %v7533_v20, -inf  ;;  %v1258_v53 = vsel %vm1231_vm10, %v1229_v30, %v939_v17  ;;  %v1228_v27 = vsel %vm1202_vm9, %v1199_v19, %v850_v12  ;;  %v768_v51 = vpop.permute.xlu0 %767 }
 0x245   : > { %v3144_v43 = vcombine.low %v3122_v37, %v3131_v59  ;;  %v3521_v32 = vmax.f32 %v7377_v18, %v7565_v60  ;;  %v3158_v26 = vrot.slane %v3140_v39, %v6156_v55  ;;  %v3564_v37 = vmax.f32 %v7379_v6, %v7571_v22  ;;  %v4068_v22 = vld [vmem:[%s8795_s3 + $0x100] sm:$0xff] }
 0x246   : > { %v1287_v48 = vsel %vm1260_vm11, %v1258_v53, %v1026_v52  ;;  %v1257_v36 = vsel %vm1231_vm10, %v1228_v27, %v937_v24  ;;  %v1024_v42 = vpop.permute.xlu1 %1023  ;;  %v3497_v30 = vmax.f32 %v7463_v33, %v7549_v63  ;;  %v8853_v49 = vmax.f32 %v8852_v41, %v7315_v14 }
 0x247   : > { %v3151_v0 = vrot.slane %v3144_v43, %v6156_v55  ;;  %v1746_v44 = vcombine.high %v1287_v48, %v1287_v48  ;;  %v1753_v3 = vrot.slane %v1287_v48, %v6156_v55  ;;  %v1286_v45 = vsel %vm1260_vm11, %v1257_v36, %v1024_v42 }
 0x248   : > { %v7591_v47 = vmax.f32 %v8853_v49, %v7508_v62  ;;  %v7595_v52 = vsel %vm3001_vm13, %v7559_v34, -inf  ;;  %v1730_v19 = vcombine.high %v1286_v45, %v1286_v45  ;;  %v1737_v12 = vrot.slane %v1286_v45, %v6156_v55  ;;  %v854_v4 = vpop.permute.xlu0 %853 }
 0x249   : > { %v7584_v17 = vcombine.low %v3151_v0, %v3158_v26  ;;  %v3571_v59 = vmax.f32 %v7505_v40, %v7595_v52  ;;  %v3095_v2 = vrot.slane %v3088_v13, %v6156_v55  ;;  %v1172_v14 = vsel %vm1144_vm7, %v1143_v5, %v7475_v57 }
 0x24a   : > { %v1744_v38 = vrot.slane %v1730_v19, %v6156_v55  ;;  %v1745_v39 = vcombine.high %v1737_v12, %v1737_v12  ;;  %v3051_v24 = vsel %vm3050_vm0, %v7431_v7, -inf  ;;  %v1760_v43 = vrot.slane %v1746_v44, %v6156_v55  ;;  %v1028_v0 = vpop.permute.xlu1 %1027 }
 0x24b   : > { %v1761_v53 = vcombine.high %v1753_v3, %v1753_v3  ;;  %v1201_v27 = vsel %vm1173_vm8, %v1172_v14, %v768_v51  ;;  %v3103_v26 = vcombine.low %v3095_v2, %v3102_v16  ;;  %v3052_v5 = vrot.slane %v3051_v24, 4  ;;  %v7618_v16 = vld [vmem:[%s8794_s2] ss:$0 sm:$0xff] }
 0x24c   : > { %v1230_v48 = vsel %vm1202_vm9, %v1201_v27, %v854_v4  ;;  %v941_v31 = vpop.permute.xlu0 %940  ;;  %v2153_v25 = vcombine.low %v1737_v12, %v1745_v39  ;;  %v2154_v13 = vcombine.low %v1744_v38, %v1753_v3  ;;  %v1762_v45 = vcombine.high %v1760_v43, %v1760_v43 }
 0x24d   : > { %v1259_v57 = vsel %vm1231_vm10, %v1230_v48, %v941_v31  ;;  %v2170_v42 = vcombine.low %v1761_v53, %v1760_v43  ;;  %v3053_v2 = vmax.f32 %v3051_v24, %v3052_v5  ;;  %vm3607_vm6 = vcmask 523265  }
 0x24e   : > { %v1288_v36 = vsel %vm1260_vm11, %v1259_v57, %v1028_v0  ;;  %v2161_v3 = vrot.slane %v2153_v25, %v6156_v55  ;;  %v2168_v19 = vrot.slane %v2154_v13, %v6156_v55 }
 0x24f   : > { %v1763_v7 = vcombine.high %v1288_v36, %v1288_v36  ;;  %v1770_v44 = vrot.slane %v1288_v36, %v6156_v55  ;;  %v2375_v41 = vpop.f32.mrb[20].mxu0  ;;  %v2178_v27 = vrot.slane %v2170_v42, %v6156_v55  ;;  %v3054_v36 = vrot.slane %v3053_v2, 2 }
 0x250   : > { %v2376_v51 = vadd.f32 %v7618_v16, %v2375_v41  ;;  %v5165_v49 = vpop.f32.mrb[21].mxu0  ;;  %v2169_v57 = vcombine.low %v2161_v3, %v2168_v19 }
 0x251   : > { %v2171_v12 = vcombine.low %v1762_v45, %v1770_v44  ;;  %v2378_v4 = vpop.f32.mrb[22].mxu0  ;;  %v1777_v14 = vrot.slane %v1763_v7, %v6156_v55  ;;  %v1778_v38 = vcombine.high %v1770_v44, %v1770_v44 }
 0x252   : > { %v2447_v39 = vmax.f32 %v2376_v51, 0.0  ;;  %v2379_v43 = vadd.f32 %v7618_v16, %v2378_v4  ;;  %v5166_v53 = vpop.f32.mrb[23].mxu0 }
 0x253   : > { %v2185_v0 = vrot.slane %v2171_v12, %v6156_v55  ;;  %v2187_v45 = vcombine.low %v1778_v38, %v1777_v14  ;;  %v3055_v53 = vmax.f32 %v3053_v2, %v3054_v36 }
 0x254   : > { %v2657_v48 = vcombine.high %v2447_v39, %v2447_v39  ;;  %v2664_v31 = vrot.slane %v2447_v39, %v6156_v55  ;;  %v2448_v25 = vmax.f32 %v2379_v43, 0.0 }
 0x255   : > { %v2186_v13 = vcombine.low %v2178_v27, %v2185_v0  ;;  %v2194_v33 = vrot.slane %v2187_v45, %v6156_v55 }
 0x256   : > { %v2671_v24 = vrot.slane %v2657_v48, %v6156_v55  ;;  %v7630_v5 = vsel %vm3001_vm13, %v2664_v31, -inf  ;;  %v2674_v7 = vcombine.high %v2448_v25, %v2448_v25  ;;  %v2672_v44 = vcombine.high %v2664_v31, %v2664_v31 }
 0x257   : > { %v3577_v42 = vmax.f32 %v7591_v47, %v7630_v5  ;;  %v7635_v41 = vrot.slane %v2448_v25, %v6156_v55  ;;  %v2231_v51 = vpack.c.bf16 %v2186_v13, %v2169_v57  ;;  %v3106_v31 = vsel %vm3105_vm1, %v3103_v26, -inf }
 0x258   : > { %v2673_v49 = vcombine.high %v2671_v24, %v2671_v24  ;;  %v7638_v3 = vsel %vm3001_vm13, %v2671_v24, -inf  ;;  %v2688_v19 = vrot.slane %v2674_v7, %v6156_v55  ;;  %v2232_v26 = vpack.c.bf16 %v2194_v33, %v2194_v33  ;;  %v4070_v24 = vld [vmem:[%s8795_s3 + $0x110] sm:$0xff]  ;;  %v4071_v7 = vld [vmem:[%s8795_s3 + $0x118] sm:$0xff] }
 0x259   : > { %v3498_v12 = vmax.f32 %v3497_v30, %v7638_v3  ;;  %v7647_v4 = vcombine.high %v7635_v41, %v7635_v41  ;;  %v7651_v47 = vsel %vm3001_vm13, %v7635_v41, -inf  ;;  %5188 = vmatmul.mubr.msk.bf16.gmra.mrb[44].mxu0 %vm2255_vm12, %v2231_v51  ;;  %v7661_v30 = vsel %vm3001_vm13, %v2672_v44, -inf }
 0x25a   : > { %v7655_v14 = vsel %vm3001_vm13, %v2673_v49, -inf  ;;  %v2690_v38 = vcombine.high %v2688_v19, %v2688_v19  ;;  %5191 = vmatprep.mubr.msk.bf16.mxu0 %vm5793_vm3, %v8830_v15  ;;  %v7668_v43 = vsel %vm3001_vm13, %v2688_v19, -inf  ;;  %v3510_v27 = vmax.f32 %v3509_v10, %v7651_v47  ;;  %v3822_v49 = vld [vmem:[%s8795_s3 + $0x40] sm:$0xff] }
 0x25b   : > { %v3504_v39 = vmax.f32 %v3503_v21, %v7655_v14  ;;  %v3522_v0 = vsel %vm3020_vm14, %v7647_v4, -inf  ;;  %v3565_v48 = vsel %vm3113_vm15, %v7647_v4, -inf  ;;  %v7691_v9 = vmax.f32 %v3571_v59, %v7668_v43 }
 0x25c   : > { %v3523_v29 = vmax.f32 %v3521_v32, %v3522_v0  ;;  %v7685_v21 = vmax.f32 %v3564_v37, %v3565_v48  ;;  %v7694_v10 = vsel %vm3113_vm15, %v2688_v19, -inf  ;;  %v7697_v2 = vsel %vm3001_vm13, %v2690_v38, -inf  ;;  %v4069_v37 = vld [vmem:[%s8795_s3 + $0x108] sm:$0xff] }
 0x25d   : > { %v3528_v25 = vcombine.low %v3498_v12, %v3504_v39  ;;  %v3583_v18 = vmax.f32 %v7529_v8, %v7661_v30  ;;  %v3295_v40 = vmax.f32 %v7508_v62, %v7697_v2  ;;  %v7715_v59 = vmax.f32 %v3577_v42, %v7697_v2  ;;  %v3823_v19 = vld [vmem:[%s8795_s3 + $0x48] sm:$0xff]  ;;  %v4072_v39 = vld [vmem:[%s8795_s3 + $0x120] sm:$0xff] }
 0x25e   : > { %v3529_v60 = vcombine.low %v3510_v27, %v3523_v29  ;;  %v3589_v32 = vcombine.low %v7685_v21, %v7691_v9  ;;  %v3107_v13 = vrot.slane %v3106_v31, 4  ;;  %v3248_v36 = vmax.f32 %v7488_v61, %v7668_v43  ;;  %v4073_v27 = vld [vmem:[%s8795_s3 + $0x128] sm:$0xff] }
 0x25f   : > { %v7702_v6 = vrot.slane %v3528_v25, %v6156_v55  ;;  %v3285_v45 = vmax.f32 %v7491_v23, %v7694_v10  ;;  %v5510_v44 = vpack.c.bf16 %v4069_v37, %v4068_v22  ;;  %v3056_v51 = vrot.slane %v3055_v53, 1  ;;  %v3824_v25 = vld [vmem:[%s8795_s3 + $0x50] sm:$0xff]  ;;  %v3826_v37 = vld [vmem:[%s8795_s3 + $0x60] sm:$0xff] }
 0x260   : > { %v3543_v57 = vrot.slane %v3529_v60, %v6156_v55  ;;  %v5513_v12 = vpack.c.bf16 %v4071_v7, %v4070_v24  ;;  %v3108_v38 = vmax.f32 %v3106_v31, %v3107_v13  ;;  %v8854_v33 = vmov 0.0|0.0   ;;  %v3825_v31 = vld [vmem:[%s8795_s3 + $0x58] sm:$0xff] }
 0x261   : > { %5192 = vmatmul.mubr.msk.bf16.gmra.mrb[48].mxu0 %vm2255_vm12, %v2232_v26  ;;  %5511 = vmatpush3.bf16.msra.mxu1 %v5510_v44  ;;  %v5474_v0 = vpack.c.bf16 %v3823_v19, %v3822_v49  ;;  %v3057_v48 = vmax.f32 %v3055_v53, %v3056_v51  ;;  %v5516_v29 = vpack.c.bf16 %v4073_v27, %v4072_v39  ;;  %v4074_v53 = vld [vmem:[%s8795_s3 + $0x130] sm:$0xff]  ;;  %v3162_v22 = vsel %vm3161_vm4, %v7584_v17, -inf  ;;  %v3829_v49 = vld [vmem:[%s8795_s3 + $0x78] sm:$0xff]  ;;  %v3904_v19 = vld [vmem:[%s8795_s3 + $0x80] sm:$0xff] }
 0x262   : > { %5211 = vmatprep.mubr.msk.f32.mxu0 %vm5793_vm3, %v8830_v15  ;;  %v3544_v42 = vcombine.low %v7702_v6, %v3543_v57  ;;  %5512 = vmatprep.subr.bf16.mxu1 %v8854_v33  ;;  %v3109_v26 = vrot.slane %v3108_v38, 2  ;;  %v4075_v6 = vld [vmem:[%s8795_s3 + $0x138] sm:$0xff]  ;;  %v5477_v60 = vpack.c.bf16 %v3825_v31, %v3824_v25  ;;  %v3827_v57 = vld [vmem:[%s8795_s3 + $0x68] sm:$0xff]  ;;  %v3163_v7 = vrot.slane %v3162_v22, 4  ;;  %v3828_v51 = vld [vmem:[%s8795_s3 + $0x70] sm:$0xff] }
 0x263   : > { %v5519_v13 = vpack.c.bf16 %v4075_v6, %v4074_v53  ;;  %v5480_v44 = vpack.c.bf16 %v3827_v57, %v3826_v37  ;;  %v3905_v39 = vld [vmem:[%s8795_s3 + $0x88] sm:$0xff]  ;;  %v7788_v27 = vld [vmem:[%s8795_s3 + $0x90] sm:$0xff] }
 0x264   : > { %v3110_v24 = vmax.f32 %v3108_v38, %v3109_v26  ;;  %v5486_v37 = vpack.c.bf16 %v3905_v39, %v3904_v19 }
 0x265   : > { %5514 = vmatpush3.bf16.msra.mxu1 %v5513_v12 }
 0x266   : > { %5515 = vmatprep.subr.bf16.mxu1 %v8854_v33  ;;  %v3111_v31 = vrot.slane %v3110_v24, 1 }
 0x269   : > { %5212 = vmatmul.mubr.msk.f32.vlgmr.msra.gmra.mrb[52].mxu0 %vm3747_vm2, %v3057_v48  ;;  %5517 = vmatpush3.bf16.msra.mxu1 %v5516_v29  ;;  %v3547_v48 = vsel %vm3546_vm5, %v3544_v42, -inf  ;;  %v7796_v29 = vmax.f32 %v3162_v22, %v3163_v7  ;;  %v7806_v7 = vsel %vm3001_vm13, %v7533_v20, -inf }
 0x26a   : > { %5475 = vmatpush3.bf16.msra.mxu0 %v5474_v0  ;;  %5230 = vmatprep.mubr.msk.f32.mxu0 %vm5793_vm3, %v8830_v15  ;;  %v7793_v0 = vld [vmem:[%s8795_s3 + $0x98] sm:$0xff] }
 0x26b   : > { %5476 = vmatprep.subr.bf16.mxu0 %v8854_v33  ;;  %5518 = vmatprep.subr.bf16.mxu1 %v8854_v33  ;;  %v5489_v57 = vpack.c.bf16 %v7793_v0, %v7788_v27  ;;  %v3165_v19 = vrot.slane %v7796_v29, 2 }
 0x26d   : > { %5520 = vmatpush3.bf16.msra.mxu1 %v5519_v13  ;;  %v3548_v13 = vrot.slane %v3547_v48, 4 }
 0x26e   : > { %5478 = vmatpush3.bf16.msra.mxu0 %v5477_v60  ;;  %5521 = vmatprep.subr.bf16.mxu1 %v8854_v33  ;;  %v5483_v60 = vpack.c.bf16 %v3829_v49, %v3828_v51  ;;  %v7814_v51 = vsel %vm3113_vm15, %v7559_v34, -inf  ;;  %v3112_v49 = vmax.f32 %v3110_v24, %v3111_v31 }
 0x26f   : > { %v2383_v17 = vpop.f32.mrb[24].mxu0  ;;  %5479 = vmatprep.subr.bf16.mxu0 %v8854_v33  ;;  %v3549_v9 = vmax.f32 %v3547_v48, %v3548_v13  ;;  %v3986_v13 = vld [vmem:[%s8795_s3 + $0xc0] sm:$0xff] }
 0x270   : > { %v2384_v12 = vadd.f32 %v7618_v16, %v2383_v17  ;;  %v5169_v38 = vpop.f32.mrb[25].mxu0 }
 0x271   : > { %v2386_v25 = vpop.f32.mrb[26].mxu0 }
 0x272   : > { %v2449_v26 = vmax.f32 %v2384_v12, 0.0  ;;  %v2387_v53 = vadd.f32 %v7618_v16, %v2386_v25  ;;  %5481 = vmatpush3.bf16.msra.mxu0 %v5480_v44  ;;  %v5170_v6 = vpop.f32.mrb[27].mxu0  ;;  %v3597_v44 = vrot.slane %v3589_v32, %v6156_v55 }
 0x273   : > { %5482 = vmatprep.subr.bf16.mxu0 %v8854_v33 }
 0x274   : > { %v2691_v42 = vcombine.high %v2449_v26, %v2449_v26  ;;  %v2698_v17 = vrot.slane %v2449_v26, %v6156_v55  ;;  %v2450_v22 = vmax.f32 %v2387_v53, 0.0  ;;  %v3908_v26 = vld [vmem:[%s8795_s3 + $0xa0] sm:$0xff]  ;;  %v3909_v53 = vld [vmem:[%s8795_s3 + $0xa8] sm:$0xff] }
 0x276   : > { %v2705_v12 = vrot.slane %v2691_v42, %v6156_v55  ;;  %v2706_v38 = vcombine.high %v2698_v17, %v2698_v17  ;;  %v7819_v39 = vsel %vm3001_vm13, %v2698_v17, -inf  ;;  %v2708_v20 = vcombine.high %v2450_v22, %v2450_v22  ;;  %5484 = vmatpush3.bf16.msra.mxu0 %v5483_v60  ;;  %v3987_v42 = vld [vmem:[%s8795_s3 + $0xc8] sm:$0xff] }
 0x277   : > { %v3305_v27 = vmax.f32 %v7511_v46, %v7819_v39  ;;  %v3584_v34 = vmax.f32 %v3583_v18, %v7819_v39  ;;  %v7828_v21 = vrot.slane %v2450_v22, %v6156_v55  ;;  %5485 = vmatprep.subr.bf16.mxu0 %v8854_v33  ;;  %v5498_v31 = vpack.c.bf16 %v3987_v42, %v3986_v13 }
 0x278   : > { %v2707_v32 = vcombine.high %v2705_v12, %v2705_v12  ;;  %v7832_v24 = vsel %vm3001_vm13, %v2705_v12, -inf  ;;  %v2722_v0 = vrot.slane %v2708_v20, %v6156_v55  ;;  %v7836_v25 = vsel %vm3001_vm13, %v2706_v38, -inf }
 0x279   : > { %v3590_v8 = vcombine.low %v7715_v59, %v3584_v34  ;;  %v2723_v18 = vcombine.high %v7828_v21, %v7828_v21  ;;  %v7845_v48 = vsel %vm3001_vm13, %v7828_v21, -inf  ;;  %5231 = vmatmul.mubr.msk.f32.vlgmr.msra.gmra.mrb[52].mxu0 %vm3747_vm2, %v3112_v49  ;;  %v7876_v12 = vsel %vm3020_vm14, %v7535_v28, -inf }
 0x27a   : > { %v7855_v6 = vsel %vm3020_vm14, %v2707_v32, -inf  ;;  %v7858_v59 = vsel %vm3001_vm13, %v2707_v32, -inf  ;;  %v2724_v60 = vcombine.high %v2722_v0, %v2722_v0  ;;  %5487 = vmatpush3.bf16.msra.mxu0 %v5486_v37  ;;  %5249 = vmatprep.mubr.msk.f32.mxu0 %vm5793_vm3, %v8830_v15  ;;  %v7871_v49 = vsel %vm3001_vm13, %v2722_v0, -inf }
 0x27b   : > { %v3604_v17 = vrot.slane %v3590_v8, %v6156_v55  ;;  %v7868_v22 = vsel %vm3113_vm15, %v2723_v18, -inf  ;;  %5488 = vmatprep.subr.bf16.mxu0 %v8854_v33  ;;  %v5492_v20 = vpack.c.bf16 %v3909_v53, %v3908_v26  ;;  %v3173_v32 = vmax.f32 %v7549_v63, %v7836_v25 }
 0x27c   : > { %v7885_v0 = vsel %vm3001_vm13, %v2723_v18, -inf  ;;  %v7888_v8 = vsel %vm3001_vm13, %v2724_v60, -inf  ;;  %v3910_v18 = vld [vmem:[%s8795_s3 + $0xb0] sm:$0xff]  ;;  %v3166_v60 = vmax.f32 %v7796_v29, %v3165_v19 }
 0x27d   : > { %v3605_v34 = vcombine.low %v3597_v44, %v3604_v17  ;;  %v3550_v44 = vrot.slane %v3549_v9, 2 }
 0x27e   : > { %5490 = vmatpush3.bf16.msra.mxu0 %v5489_v57  ;;  %v3911_v57 = vld [vmem:[%s8795_s3 + $0xb8] sm:$0xff] }
 0x27f   : > { %v3608_v53 = vsel %vm3607_vm6, %v3605_v34, -inf  ;;  %5491 = vmatprep.subr.bf16.mxu0 %v8854_v33  ;;  %v5495_v38 = vpack.c.bf16 %v3911_v57, %v3910_v18  ;;  %v3551_v28 = vmax.f32 %v3549_v9, %v3550_v44  ;;  %v3167_v34 = vrot.slane %v3166_v60, 1  ;;  %v3988_v9 = vld [vmem:[%s8795_s3 + $0xd0] sm:$0xff]  ;;  %v3993_v57 = vld [vmem:[%s8795_s3 + $0xf8] sm:$0xff] }
 0x280   : > { %v3609_v17 = vrot.slane %v3608_v53, 4 }
 0x281   : > { %v3552_v29 = vrot.slane %v3551_v28, 1 }
 0x282   : > { %v3610_v37 = vmax.f32 %v3608_v53, %v3609_v17  ;;  %5493 = vmatpush3.bf16.msra.mxu0 %v5492_v20  ;;  %v3168_v53 = vmax.f32 %v3166_v60, %v3167_v34  ;;  %v3989_v20 = vld [vmem:[%s8795_s3 + $0xd8] sm:$0xff]  ;;  %v3190_v34 = vsel %vm3020_vm14, %v7635_v41, -inf }
 0x283   : > { %5494 = vmatprep.subr.bf16.mxu0 %v8854_v33  ;;  %v5501_v18 = vpack.c.bf16 %v3989_v20, %v3988_v9  ;;  %v7922_v13 = vmax.f32 %v3551_v28, %v3552_v29  ;;  %v3992_v28 = vld [vmem:[%s8795_s3 + $0xf0] sm:$0xff]  ;;  %v3237_v9 = vsel %vm3001_vm13, %v7647_v4, -inf  ;;  %v3171_v4 = vmax.f32 %v7336_v50, %v7638_v3 }
 0x284   : > { %v3611_v26 = vrot.slane %v3610_v37, 2  ;;  %v5507_v60 = vpack.c.bf16 %v3993_v57, %v3992_v28  ;;  %v3238_v57 = vmax.f32 %v7394_v58, %v3237_v9 }
 0x285   : > { %8855 = vst [vmem:[#allocation11_spill] sm:$0xff] %v7922_v13 }
 0x286   : > { %5496 = vmatpush3.bf16.msra.mxu0 %v5495_v38  ;;  %v3612_v19 = vmax.f32 %v3610_v37, %v3611_v26  ;;  %v3990_v37 = vld [vmem:[%s8795_s3 + $0xe0] sm:$0xff]  ;;  %v3991_v38 = vld [vmem:[%s8795_s3 + $0xe8] sm:$0xff] }
 0x287   : > { %5497 = vmatprep.subr.bf16.mxu0 %v8854_v33  ;;  %v5504_v26 = vpack.c.bf16 %v3991_v38, %v3990_v37  ;;  %v3191_v37 = vmax.f32 %v7391_v56, %v3190_v34  ;;  %v3228_v38 = vmax.f32 %v7351_v1, %v7651_v47  ;;  %v7964_v56 = vsel %vm3113_vm15, %v7828_v21, -inf }
 0x288   : > { %v3613_v44 = vrot.slane %v3612_v19, 1 }
 0x289   : > { %5250 = vmatmul.mubr.msk.f32.vlgmr.msra.gmra.mrb[52].mxu0 %vm3747_vm2, %v3168_v53 }
 0x28a   : > { %5499 = vmatpush3.bf16.msra.mxu0 %v5498_v31  ;;  %5268 = vmatprep.mubr.msk.f32.mxu0 %vm5793_vm3, %v8830_v15  ;;  %v7924_v42 = vmax.f32 %v3612_v19, %v3613_v44 }
 0x28b   : > { %5500 = vmatprep.subr.bf16.mxu0 %v8854_v33 }
 0x28c   : > { %8856 = vst [vmem:[#allocation8_spill] sm:$0xff] %v7924_v42 }
 0x28e   : > { %5502 = vmatpush3.bf16.msra.mxu0 %v5501_v18 }
 0x28f   : > { %5503 = vmatprep.subr.bf16.mxu0 %v8854_v33 }
 0x292   : > { %5505 = vmatpush3.bf16.msra.mxu0 %v5504_v26 }
 0x293   : > { %5506 = vmatprep.subr.bf16.mxu0 %v8854_v33 }
 0x296   : > { %5508 = vmatpush3.bf16.msra.mxu0 %v5507_v60  ;;  %v7956_v60 = vsel %vm3020_vm14, %v7828_v21, -inf }
 0x2a3   : > { %v2391_v17 = vpop.f32.mrb[28].mxu0 }
 0x2a4   : > { %v2392_v29 = vadd.f32 %v7618_v16, %v2391_v17  ;;  %v5173_v19 = vpop.f32.mrb[29].mxu0  ;;  %v3181_v17 = vmax.f32 %v7348_v35, %v7655_v14 }
 0x2a5   : > { %v2394_v53 = vpop.f32.mrb[30].mxu0 }
 0x2a6   : > { %v2451_v20 = vmax.f32 %v2392_v29, 0.0  ;;  %v2395_v44 = vadd.f32 %v7618_v16, %v2394_v53  ;;  %v5174_v18 = vpop.f32.mrb[31].mxu0 }
 0x2a8   : > { %v2725_v26 = vcombine.high %v2451_v20, %v2451_v20  ;;  %v2732_v28 = vrot.slane %v2451_v20, %v6156_v55  ;;  %v2452_v41 = vmax.f32 %v2395_v44, 0.0 }
 0x2aa   : > { %v2739_v1 = vrot.slane %v2725_v26, %v6156_v55  ;;  %v2740_v47 = vcombine.high %v2732_v28, %v2732_v28  ;;  %v3174_v34 = vsel %vm3001_vm13, %v2732_v28, -inf  ;;  %v2742_v19 = vcombine.high %v2452_v41, %v2452_v41 }
 0x2ab   : > { %v7968_v58 = vmax.f32 %v3171_v4, %v3174_v34  ;;  %v3615_v29 = vmax.f32 %v7836_v25, %v3174_v34  ;;  %v2749_v53 = vrot.slane %v2452_v41, %v6156_v55 }
 0x2ac   : > { %v2741_v50 = vcombine.high %v2739_v1, %v2739_v1  ;;  %v3184_v3 = vsel %vm3001_vm13, %v2740_v47, -inf  ;;  %v3194_v35 = vsel %vm3020_vm14, %v2739_v1, -inf  ;;  %v3231_v14 = vsel %vm3001_vm13, %v2739_v1, -inf }
 0x2ad   : > { %v3185_v21 = vmax.f32 %v3181_v17, %v3184_v3  ;;  %v7975_v9 = vmax.f32 %v3191_v37, %v3194_v35  ;;  %v7977_v20 = vmax.f32 %v3228_v38, %v3231_v14  ;;  %v3621_v44 = vmax.f32 %v7832_v24, %v3184_v3 }
 0x2ae   : > { %v3241_v18 = vsel %vm3001_vm13, %v2741_v50, -inf  ;;  %v3627_v26 = vmax.f32 %v7858_v59, %v3231_v14  ;;  %v3634_v28 = vsel %vm3020_vm14, %v2741_v50, -inf  ;;  %v7984_v41 = vsel %vm3113_vm15, %v2741_v50, -inf }
 0x2af   : > { %v3242_v4 = vmax.f32 %v3238_v57, %v3241_v18  ;;  %v3635_v47 = vmax.f32 %v7956_v60, %v3634_v28  ;;  %v3677_v37 = vmax.f32 %v7964_v56, %v7984_v41  ;;  %v2756_v38 = vrot.slane %v2742_v19, %v6156_v55 }
 0x2b0   : > { %v2757_v17 = vcombine.high %v2749_v53, %v2749_v53  ;;  %v7991_v1 = vsel %vm3001_vm13, %v2749_v53, -inf  ;;  %v3288_v34 = vsel %vm3113_vm15, %v2749_v53, -inf }
 0x2b1   : > { %v2758_v3 = vcombine.high %v2756_v38, %v2756_v38  ;;  %v7998_v50 = vmax.f32 %v3248_v36, %v7991_v1  ;;  %v8003_v57 = vmax.f32 %v3285_v45, %v3288_v34  ;;  %v8006_v60 = vsel %vm3001_vm13, %v2756_v38, -inf }
 0x2b2   : > { %v3298_v56 = vsel %vm3001_vm13, %v2757_v17, -inf  ;;  %v8013_v19 = vmax.f32 %v3305_v27, %v8006_v60  ;;  %v3688_v61 = vmax.f32 %v7885_v0, %v7991_v1  ;;  %v3700_v43 = vmax.f32 %v7888_v8, %v8006_v60 }
 0x2b3   : > { %v8020_v23 = vsel %vm3001_vm13, %v2758_v3, -inf  ;;  %v8025_v10 = vmax.f32 %v3295_v40, %v3298_v56  ;;  %v3694_v36 = vmax.f32 %v7871_v49, %v3298_v56 }
 0x2b4   : > { %v3177_v46 = vmax.f32 %v3173_v32, %v8020_v23  ;;  %v8033_v45 = vmax.f32 %v3615_v29, %v8020_v23 }
 0x2b6   : > { %v3178_v39 = vmax.f32 %v7968_v58, %v3177_v46  ;;  %v8857_v58 = vmax.f32 %v7544_v54, %v7832_v24  ;;  %v8858_v54 = vmax.f32 %v7876_v12, %v7855_v6 }
 0x2c1   : > { %v2399_v27 = vpop.f32.mrb[32].mxu0 }
 0x2c2   : > { %v2400_v53 = vadd.f32 %v7618_v16, %v2399_v27  ;;  %v5177_v35 = vpop.f32.mrb[33].mxu0 }
 0x2c3   : > { %v2402_v14 = vpop.f32.mrb[34].mxu0 }
 0x2c4   : > { %v2453_v62 = vmax.f32 %v2400_v53, 0.0  ;;  %v2403_v2 = vadd.f32 %v7618_v16, %v2402_v14  ;;  %v5178_v40 = vpop.f32.mrb[35].mxu0  ;;  %v8860_v14 = vmax.f32 %v7806_v7, %v7845_v48  ;;  %v8861_v7 = vmax.f32 %v7595_v52, %v7885_v0 }
 0x2c5   : > { %v8862_v52 = vmax.f32 %v7814_v51, %v7868_v22 }
 0x2c6   : > { %v2759_v18 = vcombine.high %v2453_v62, %v2453_v62  ;;  %v2766_v28 = vrot.slane %v2453_v62, %v6156_v55  ;;  %v2454_v41 = vmax.f32 %v2403_v2, 0.0 }
 0x2c8   : > { %v2773_v63 = vrot.slane %v2759_v18, %v6156_v55  ;;  %v2774_v25 = vcombine.high %v2766_v28, %v2766_v28  ;;  %v8041_v32 = vsel %vm3001_vm13, %v2766_v28, -inf  ;;  %v2776_v17 = vcombine.high %v2454_v41, %v2454_v41 }
 0x2c9   : > { %v3187_v29 = vmax.f32 %v8857_v58, %v8041_v32  ;;  %v8048_v38 = vmax.f32 %v3621_v44, %v8041_v32  ;;  %v2783_v34 = vrot.slane %v2454_v41, %v6156_v55  ;;  %v8859_v44 = vmax.f32 %v7553_v11, %v7858_v59 }
 0x2ca   : > { %v2775_v3 = vcombine.high %v2773_v63, %v2773_v63  ;;  %v8052_v56 = vsel %vm3020_vm14, %v2774_v25, -inf  ;;  %v8055_v46 = vsel %vm3001_vm13, %v2774_v25, -inf  ;;  %v8058_v27 = vsel %vm3001_vm13, %v2773_v63, -inf }
 0x2cb   : > { %v3188_v53 = vmax.f32 %v3185_v21, %v3187_v29  ;;  %v3197_v24 = vmax.f32 %v8858_v54, %v8052_v56  ;;  %v3234_v35 = vmax.f32 %v8859_v44, %v8055_v46  ;;  %v3244_v62 = vmax.f32 %v8860_v14, %v8058_v27 }
 0x2cc   : > { %v8073_v2 = vsel %vm3001_vm13, %v2775_v3, -inf  ;;  %v8076_v21 = vsel %vm3113_vm15, %v2775_v3, -inf  ;;  %v8079_v40 = vmax.f32 %v3627_v26, %v8055_v46  ;;  %v3636_v6 = vsel %vm3020_vm14, %v2773_v63, -inf }
 0x2cd   : > { %v3198_v12 = vmax.f32 %v7975_v9, %v3197_v24  ;;  %v3202_v11 = vcombine.low %v3178_v39, %v3188_v53  ;;  %v3235_v59 = vmax.f32 %v7977_v20, %v3234_v35  ;;  %v3245_v18 = vmax.f32 %v3242_v4, %v3244_v62 }
 0x2ce   : > { %v3254_v48 = vmax.f32 %v8861_v7, %v8073_v2  ;;  %v8088_v28 = vmax.f32 %v3635_v47, %v3636_v6  ;;  %v3678_v41 = vsel %vm3113_vm15, %v2773_v63, -inf  ;;  %v2790_v26 = vrot.slane %v2776_v17, %v6156_v55 }
 0x2cf   : > { %v3209_v25 = vrot.slane %v3202_v11, %v6156_v55  ;;  %v3216_v58 = vrot.slane %v3198_v12, %v6156_v55  ;;  %v3259_v9 = vcombine.low %v3235_v59, %v3245_v18  ;;  %v8094_v39 = vmax.f32 %v3677_v37, %v3678_v41 }
 0x2d0   : > { %v2791_v20 = vcombine.high %v2783_v34, %v2783_v34  ;;  %v2792_v4 = vcombine.high %v2790_v26, %v2790_v26  ;;  %v3291_v29 = vmax.f32 %v8862_v52, %v8076_v21  ;;  %v8101_v47 = vsel %vm3001_vm13, %v2783_v34, -inf }
 0x2d1   : > { %v3217_v63 = vcombine.low %v3209_v25, %v3216_v58  ;;  %v3266_v17 = vrot.slane %v3259_v9, %v6156_v55  ;;  %v8863_v3 = vmax.f32 %v7630_v5, %v7871_v49  ;;  %v8109_v37 = vmax.f32 %v3694_v36, %v8101_v47  ;;  %v4150_v58 = vld [vmem:[%s8795_s3 + $0x140] sm:$0xff]  ;;  %v4151_v9 = vld [vmem:[%s8795_s3 + $0x148] sm:$0xff] }
 0x2d2   : > { %v3292_v54 = vmax.f32 %v8003_v57, %v3291_v29  ;;  %v8113_v24 = vsel %vm3001_vm13, %v2791_v20, -inf  ;;  %v8116_v51 = vsel %vm3001_vm13, %v2792_v4, -inf  ;;  %v3255_v22 = vmax.f32 %v7998_v50, %v3254_v48 }
 0x2d3   : > { %v3301_v53 = vmax.f32 %v8863_v3, %v8101_v47  ;;  %v3219_v34 = vsel %vm3050_vm0, %v3217_v63, -inf  ;;  %v8864_v5 = vmax.f32 %v7661_v30, %v7888_v8  ;;  %v3623_v57 = vmax.f32 %v8048_v38, %v8116_v51  ;;  %v4152_v63 = vld [vmem:[%s8795_s3 + $0x150] sm:$0xff]  ;;  %v4235_v38 = vld [vmem:[%s8795_s3 + $0x198] sm:$0xff] }
 0x2d4   : > { %v3220_v36 = vrot.slane %v3219_v34, 4  ;;  %v3273_v35 = vrot.slane %v3255_v22, %v6156_v55  ;;  %v8132_v50 = vmax.f32 %v3700_v43, %v8113_v24  ;;  %v8135_v14 = vsel %vm3001_vm13, %v2790_v26, -inf }
 0x2d5   : > { %v3302_v44 = vmax.f32 %v8025_v10, %v3301_v53  ;;  %v3311_v49 = vmax.f32 %v8864_v5, %v8113_v24  ;;  %v3617_v30 = vmax.f32 %v8033_v45, %v8135_v14  ;;  %v8144_v6 = vmax.f32 %v3688_v61, %v8073_v2  ;;  %v4155_v5 = vld [vmem:[%s8795_s3 + $0x168] sm:$0xff] }
 0x2d6   : > { %v3221_v12 = vmax.f32 %v3219_v34, %v3220_v36  ;;  %v3274_v11 = vcombine.low %v3266_v17, %v3273_v35  ;;  %v5522_v52 = vpack.c.bf16 %v4151_v9, %v4150_v58  ;;  %v4153_v17 = vld [vmem:[%s8795_s3 + $0x158] sm:$0xff] }
 0x2d7   : > { %v3312_v10 = vmax.f32 %v8013_v19, %v3311_v49  ;;  %v3316_v62 = vcombine.low %v3292_v54, %v3302_v44  ;;  %v5525_v54 = vpack.c.bf16 %v4153_v17, %v4152_v63  ;;  %v4154_v44 = vld [vmem:[%s8795_s3 + $0x160] sm:$0xff] }
 0x2d8   : > { %v3222_v43 = vrot.slane %v3221_v12, 2  ;;  %v3276_v59 = vsel %vm3105_vm1, %v3274_v11, -inf }
 0x2d9   : > { %v3323_v8 = vrot.slane %v3316_v62, %v6156_v55  ;;  %v3330_v60 = vrot.slane %v3312_v10, %v6156_v55  ;;  %v3277_v18 = vrot.slane %v3276_v59, 4 }
 0x2da   : > { %v3223_v7 = vmax.f32 %v3221_v12, %v3222_v43  ;;  %v5528_v12 = vpack.c.bf16 %v4155_v5, %v4154_v44  ;;  %v4156_v43 = vld [vmem:[%s8795_s3 + $0x170] sm:$0xff] }
 0x2db   : > { %v3331_v19 = vcombine.low %v3323_v8, %v3330_v60  ;;  %v3278_v48 = vmax.f32 %v3276_v59, %v3277_v18  ;;  %v4157_v59 = vld [vmem:[%s8795_s3 + $0x178] sm:$0xff]  ;;  %v4233_v18 = vld [vmem:[%s8795_s3 + $0x188] sm:$0xff] }
 0x2dc   : > { %v3224_v26 = vrot.slane %v3223_v7, 1 }
 0x2dd   : > { %v3333_v41 = vsel %vm3161_vm4, %v3331_v19, -inf  ;;  %v3279_v25 = vrot.slane %v3278_v48, 2  ;;  %v4232_v19 = vld [vmem:[%s8795_s3 + $0x180] sm:$0xff] }
 0x2de   : > { %v3334_v0 = vrot.slane %v3333_v41, 4  ;;  %v3225_v1 = vmax.f32 %v3223_v7, %v3224_v26 }
 0x2df   : > { %v3280_v61 = vmax.f32 %v3278_v48, %v3279_v25 }
 0x2e0   : > { %5269 = vmatmul.mubr.msk.f32.vlgmr.msra.gmra.mrb[52].mxu0 %vm3747_vm2, %v3225_v1  ;;  %v3335_v4 = vmax.f32 %v3333_v41, %v3334_v0 }
 0x2e1   : > { %v3281_v20 = vrot.slane %v3280_v61, 1 }
 0x2e2   : > { %v3336_v3 = vrot.slane %v3335_v4, 2 }
 0x2e3   : > { %v3282_v29 = vmax.f32 %v3280_v61, %v3281_v20  ;;  %v5531_v61 = vpack.c.bf16 %v4157_v59, %v4156_v43  ;;  %v4236_v43 = vld [vmem:[%s8795_s3 + $0x1a0] sm:$0xff]  ;;  %v4237_v59 = vld [vmem:[%s8795_s3 + $0x1a8] sm:$0xff] }
 0x2e4   : > { %v3337_v62 = vmax.f32 %v3335_v4, %v3336_v3  ;;  %v5534_v4 = vpack.c.bf16 %v4233_v18, %v4232_v19  ;;  %v5540_v19 = vpack.c.bf16 %v4237_v59, %v4236_v43  ;;  %v4238_v18 = vld [vmem:[%s8795_s3 + $0x1b0] sm:$0xff] }
 0x2e5   : > { %5288 = vmatmul.mubr.msk.f32.vlgmr.msra.gmra.mrb[0].mxu1 %vm3747_vm2, %v3282_v29  ;;  %v2407_v53 = vpop.f32.mrb[36].mxu0 }
 0x2e6   : > { %5523 = vmatpush3.bf16.msra.mxu1 %v5522_v52  ;;  %5306 = vmatprep.mubr.msk.f32.mxu1 %vm5793_vm3, %v8830_v15  ;;  %v2408_v22 = vadd.f32 %v7618_v16, %v2407_v53  ;;  %v5181_v34 = vpop.f32.mrb[37].mxu0  ;;  %v3338_v26 = vrot.slane %v3337_v62, 1 }
 0x2e7   : > { %5524 = vmatprep.subr.bf16.mxu1 %v8854_v33  ;;  %v2410_v49 = vpop.f32.mrb[38].mxu0 }
 0x2e8   : > { %v2455_v36 = vmax.f32 %v2408_v22, 0.0  ;;  %v2411_v35 = vadd.f32 %v7618_v16, %v2410_v49  ;;  %v5182_v10 = vpop.f32.mrb[39].mxu0  ;;  %v3339_v3 = vmax.f32 %v3337_v62, %v3338_v26  ;;  %v4239_v26 = vld [vmem:[%s8795_s3 + $0x1b8] sm:$0xff] }
 0x2e9   : > { %v4234_v10 = vld [vmem:[%s8795_s3 + $0x190] sm:$0xff] }
 0x2ea   : > { %5526 = vmatpush3.bf16.msra.mxu1 %v5525_v54  ;;  %v2793_v11 = vcombine.high %v2455_v36, %v2455_v36  ;;  %v8176_v8 = vrot.slane %v2455_v36, %v6156_v55  ;;  %v2456_v60 = vmax.f32 %v2411_v35, 0.0 }
 0x2eb   : > { %5527 = vmatprep.subr.bf16.mxu1 %v8854_v33 }
 0x2ec   : > { %v8192_v7 = vrot.slane %v2793_v11, %v6156_v55  ;;  %v8196_v48 = vcombine.high %v8176_v8, %v8176_v8  ;;  %v8200_v41 = vsel %vm3001_vm13, %v8176_v8, -inf  ;;  %v2810_v0 = vcombine.high %v2456_v60, %v2456_v60 }
 0x2ed   : > { %v3629_v25 = vmax.f32 %v8079_v40, %v8200_v41  ;;  %v2817_v1 = vrot.slane %v2456_v60, %v6156_v55  ;;  %v5537_v60 = vpack.c.bf16 %v4235_v38, %v4234_v10  ;;  %v8303_v10 = vsel %vm3020_vm14, %v8176_v8, -inf }
 0x2ee   : > { %5529 = vmatpush3.bf16.msra.mxu1 %v5528_v12  ;;  %v2809_v58 = vcombine.high %v8192_v7, %v8192_v7  ;;  %v8209_v9 = vsel %vm3020_vm14, %v8196_v48, -inf  ;;  %v8213_v20 = vsel %vm3113_vm15, %v8196_v48, -inf  ;;  %v2824_v29 = vrot.slane %v2810_v0, %v6156_v55 }
 0x2ef   : > { %5530 = vmatprep.subr.bf16.mxu1 %v8854_v33  ;;  %v3639_v40 = vmax.f32 %v8088_v28, %v8209_v9  ;;  %v3681_v52 = vmax.f32 %v8094_v39, %v8213_v20  ;;  %v2825_v63 = vcombine.high %v2817_v1, %v2817_v1  ;;  %v8222_v17 = vsel %vm3001_vm13, %v2817_v1, -inf }
 0x2f0   : > { %v8225_v53 = vsel %vm3001_vm13, %v2809_v58, -inf  ;;  %v8229_v54 = vsel %vm3001_vm13, %v8192_v7, -inf  ;;  %v2826_v22 = vcombine.high %v2824_v29, %v2824_v29  ;;  %v8235_v34 = vsel %vm3001_vm13, %v2824_v29, -inf }
 0x2f1   : > { %v8232_v28 = vsel %vm3001_vm13, %v2825_v63, -inf  ;;  %v3702_v44 = vmax.f32 %v8132_v50, %v8222_v17  ;;  %v8245_v49 = vmax.f32 %v3623_v57, %v8235_v34  ;;  %v3696_v36 = vmax.f32 %v8109_v37, %v8225_v53 }
 0x2f2   : > { %5532 = vmatpush3.bf16.msra.mxu1 %v5531_v61  ;;  %v8253_v35 = vmax.f32 %v3617_v30, %v8232_v28  ;;  %v8263_v57 = vsel %vm3020_vm14, %v2826_v22, -inf  ;;  %v8266_v37 = vsel %vm3001_vm13, %v2826_v22, -inf  ;;  %v3690_v45 = vmax.f32 %v8144_v6, %v8229_v54 }
 0x2f3   : > { %5533 = vmatprep.subr.bf16.mxu1 %v8854_v33  ;;  %v8273_v62 = vmax.f32 %v3629_v25, %v8266_v37  ;;  %v5543_v0 = vpack.c.bf16 %v4239_v26, %v4238_v18 }
 0x2f5   : > { %5307 = vmatmul.mubr.msk.f32.vlgmr.msra.gmra.mrb[0].mxu1 %vm3747_vm2, %v3339_v3 }
 0x2f6   : > { %5535 = vmatpush3.bf16.msra.mxu1 %v5534_v4  ;;  %5325 = vmatprep.mubr.msk.f32.mxu1 %vm5793_vm3, %v8830_v15 }
 0x2f7   : > { %5536 = vmatprep.subr.bf16.mxu1 %v8854_v33 }
 0x2fa   : > { %5538 = vmatpush3.bf16.msra.mxu1 %v5537_v60 }
 0x2fb   : > { %5539 = vmatprep.subr.bf16.mxu1 %v8854_v33 }
 0x2fe   : > { %5541 = vmatpush3.bf16.msra.mxu1 %v5540_v19 }
 0x2ff   : > { %v2415_v25 = vpop.f32.mrb[40].mxu0  ;;  %5542 = vmatprep.subr.bf16.mxu1 %v8854_v33 }
 0x300   : > { %v2416_v1 = vadd.f32 %v7618_v16, %v2415_v25  ;;  %v5185_v61 = vpop.f32.mrb[41].mxu0 }
 0x301   : > { %v2418_v58 = vpop.f32.mrb[42].mxu0  ;;  %v5718_v61 = vld [vmem:[%s8794_s2] ss:$0 sm:$0xff] }
 0x302   : > { %v2457_v9 = vmax.f32 %v2416_v1, 0.0  ;;  %v2419_v4 = vadd.f32 %v7618_v16, %v2418_v58  ;;  %v5186_v29 = vpop.f32.mrb[43].mxu0  ;;  %5544 = vmatpush3.bf16.msra.mxu1 %v5543_v0 }
 0x303   : > { %5545 = vmatprep.subr.bf16.mxu1 %v8854_v33 }
 0x304   : > { %v2827_v63 = vcombine.high %v2457_v9, %v2457_v9  ;;  %v2834_v3 = vrot.slane %v2457_v9, %v6156_v55  ;;  %v2458_v22 = vmax.f32 %v2419_v4, 0.0  ;;  %v8335_v4 = vsel %vm3001_vm13, %v8196_v48, -inf }
 0x306   : > { %v2841_v38 = vrot.slane %v2827_v63, %v6156_v55  ;;  %v2842_v60 = vcombine.high %v2834_v3, %v2834_v3  ;;  %v8307_v43 = vsel %vm3001_vm13, %v2834_v3, -inf  ;;  %v3640_v16 = vsel %vm3020_vm14, %v2834_v3, -inf }
 0x307   : > { %v8312_v19 = vmax.f32 %v3639_v40, %v3640_v16  ;;  %v3682_v18 = vsel %vm3113_vm15, %v2834_v3, -inf  ;;  %v2844_v26 = vcombine.high %v2458_v22, %v2458_v22  ;;  %v2851_v58 = vrot.slane %v2458_v22, %v6156_v55 }
 0x308   : > { %v2843_v25 = vcombine.high %v2841_v38, %v2841_v38  ;;  %v8316_v8 = vsel %vm3113_vm15, %v2842_v60, -inf  ;;  %v8319_v0 = vsel %vm3001_vm13, %v2841_v38, -inf  ;;  %v8324_v1 = vmax.f32 %v3681_v52, %v3682_v18 }
 0x309   : > { %v8329_v40 = vmax.f32 %v3696_v36, %v8319_v0  ;;  %v2858_v9 = vrot.slane %v2844_v26, %v6156_v55  ;;  %v8341_v39 = vsel %vm3001_vm13, %v2842_v60, -inf  ;;  %v2859_v52 = vcombine.high %v2851_v58, %v2851_v58 }
 0x30a   : > { %v8338_v29 = vsel %vm3001_vm13, %v2843_v25, -inf  ;;  %v8346_v63 = vsel %vm3001_vm13, %v2851_v58, -inf  ;;  %v8383_v20 = vmax.f32 %v3690_v45, %v8341_v39 }
 0x30b   : > { %v2860_v36 = vcombine.high %v2858_v9, %v2858_v9  ;;  %v8349_v3 = vsel %vm3020_vm14, %v2858_v9, -inf  ;;  %v8356_v38 = vsel %vm3001_vm13, %v2858_v9, -inf  ;;  %v3619_v60 = vmax.f32 %v8253_v35, %v8346_v63 }
 0x30c   : > { %v8361_v16 = vsel %vm3001_vm13, %v2859_v52, -inf }
 0x30d   : > { %v3402_v26 = vsel %vm3001_vm13, %v2860_v36, -inf  ;;  %v8367_v25 = vsel %vm3020_vm14, %v2860_v36, -inf  ;;  %v3352_v58 = vmax.f32 %v8116_v51, %v8361_v16  ;;  %v8373_v31 = vsel %vm3113_vm15, %v2860_v36, -inf }
 0x30e   : > { %v3403_v9 = vmax.f32 %v8335_v4, %v3402_v26  ;;  %v8389_v51 = vmax.f32 %v3702_v44, %v8338_v29  ;;  %v3625_v4 = vmax.f32 %v8245_v49, %v8361_v16  ;;  %v3631_v36 = vmax.f32 %v8273_v62, %v8356_v38 }
 0x30f   : > { %v8405_v26 = vsel %vm3113_vm15, %v8192_v7, -inf }
 0x32c   : > { %v2423_v45 = vpop.f32.mrb[44].mxu0 }
 0x32d   : > { %v2424_v50 = vadd.f32 %v5718_v61, %v2423_v45  ;;  %v5189_v44 = vpop.f32.mrb[45].mxu0 }
 0x32e   : > { %v2426_v52 = vpop.f32.mrb[46].mxu0 }
 0x32f   : > { %v2459_v35 = vmax.f32 %v2424_v50, 0.0  ;;  %v2427_v18 = vadd.f32 %v5718_v61, %v2426_v52  ;;  %v5190_v49 = vpop.f32.mrb[47].mxu0 }
 0x331   : > { %v2861_v16 = vcombine.high %v2459_v35, %v2459_v35  ;;  %v2868_v62 = vrot.slane %v2459_v35, %v6156_v55  ;;  %v2460_v22 = vmax.f32 %v2427_v18, 0.0 }
 0x333   : > { %v2875_v6 = vrot.slane %v2861_v16, %v6156_v55  ;;  %v2876_v11 = vcombine.high %v2868_v62, %v2868_v62  ;;  %v3410_v12 = vsel %vm3001_vm13, %v2868_v62, -inf  ;;  %v8410_v45 = vsel %vm3113_vm15, %v2868_v62, -inf }
 0x334   : > { %v3411_v50 = vmax.f32 %v8229_v54, %v3410_v12  ;;  %v3692_v35 = vmax.f32 %v8383_v20, %v3410_v12  ;;  %v2878_v18 = vcombine.high %v2460_v22, %v2460_v22  ;;  %v2431_v44 = vpop.f32.mrb[48].mxu0  ;;  %v2885_v16 = vrot.slane %v2460_v22, %v6156_v55 }
 0x335   : > { %v2877_v49 = vcombine.high %v2875_v6, %v2875_v6  ;;  %v8417_v7 = vsel %vm3001_vm13, %v2875_v6, -inf  ;;  %v2432_v48 = vadd.f32 %v5718_v61, %v2431_v44  ;;  %v5193_v59 = vpop.f32.mrb[49].mxu0  ;;  %v3453_v12 = vsel %vm3001_vm13, %v2876_v11, -inf }
 0x336   : > { %v2892_v52 = vrot.slane %v2878_v18, %v6156_v55  ;;  %v2434_v20 = vpop.f32.mrb[50].mxu0  ;;  %v2893_v5 = vcombine.high %v2885_v16, %v2885_v16  ;;  %v3353_v6 = vsel %vm3001_vm13, %v2885_v16, -inf  ;;  %v8865_v59 = vmax.f32 %v8020_v23, %v8232_v28 }
 0x337   : > { %v3345_v30 = vsel %vm3001_vm13, %v2877_v49, -inf  ;;  %v2461_v42 = vmax.f32 %v2432_v48, 0.0  ;;  %v5194_v22 = vpop.f32.mrb[51].mxu0  ;;  %v8866_v62 = vmax.f32 %v8041_v32, %v8235_v34  ;;  %v8867_v16 = vmax.f32 %v8058_v27, %v8307_v43 }
 0x338   : > { %v3346_v61 = vmax.f32 %v8865_v59, %v3345_v30  ;;  %v2894_v44 = vcombine.high %v2892_v52, %v2892_v52  ;;  %v3404_v18 = vsel %vm3001_vm13, %v2892_v52, -inf  ;;  %v3361_v11 = vsel %vm3020_vm14, %v2893_v5, -inf }
 0x339   : > { %v3354_v54 = vmax.f32 %v8866_v62, %v3353_v6  ;;  %v3396_v49 = vsel %vm3001_vm13, %v2893_v5, -inf  ;;  %v3405_v48 = vmax.f32 %v8867_v16, %v3404_v18  ;;  %v3620_v20 = vmax.f32 %v3619_v60, %v3345_v30 }
 0x33a   : > { %v8868_v23 = vmax.f32 %v8135_v14, %v8346_v63  ;;  %v8869_v32 = vmax.f32 %v8052_v56, %v8263_v57  ;;  %v8870_v62 = vmax.f32 %v8055_v46, %v8266_v37  ;;  %v3412_v5 = vsel %vm3001_vm13, %v2894_v44, -inf }
 0x33b   : > { %v3355_v22 = vmax.f32 %v3354_v54, %v3352_v58  ;;  %v3406_v13 = vmax.f32 %v3405_v48, %v3403_v9  ;;  %v3626_v33 = vmax.f32 %v3625_v4, %v3353_v6  ;;  %v3632_v27 = vmax.f32 %v3631_v36, %v3396_v49 }
 0x33c   : > { %v3347_v28 = vmax.f32 %v3346_v61, %v8868_v23  ;;  %v3362_v34 = vmax.f32 %v8869_v32, %v3361_v11  ;;  %v3397_v59 = vmax.f32 %v8870_v62, %v3396_v49  ;;  %v8871_v30 = vmax.f32 %v8303_v10, %v8349_v3 }
 0x33d   : > { %v8872_v63 = vmax.f32 %v8200_v41, %v8356_v38  ;;  %v8873_v56 = vmax.f32 %v8073_v2, %v8341_v39  ;;  %v3644_v46 = vsel %vm3020_vm14, %v2892_v52, -inf  ;;  %v3650_v37 = vcombine.low %v3620_v20, %v3626_v33 }
 0x33e   : > { %v3363_v43 = vmax.f32 %v3362_v34, %v8871_v30  ;;  %v3367_v14 = vcombine.low %v3347_v28, %v3355_v22  ;;  %v3686_v58 = vsel %vm3113_vm15, %v2892_v52, -inf  ;;  %v3693_v9 = vmax.f32 %v3692_v35, %v3412_v5 }
 0x33f   : > { %v3398_v60 = vmax.f32 %v3397_v59, %v8872_v63  ;;  %v3413_v57 = vmax.f32 %v8873_v56, %v3412_v5  ;;  %v8874_v41 = vmax.f32 %v8312_v19, %v8367_v25  ;;  %v3658_v54 = vrot.slane %v3650_v37, %v6156_v55 }
 0x340   : > { %v3374_v4 = vrot.slane %v3367_v14, %v6156_v55  ;;  %v3381_v10 = vrot.slane %v3363_v43, %v6156_v55  ;;  %v8875_v2 = vmax.f32 %v8324_v1, %v8373_v31  ;;  %v2901_v33 = vrot.slane %v2461_v42, %v6156_v55 }
 0x341   : > { %v3414_v3 = vmax.f32 %v3413_v57, %v3411_v50  ;;  %v3418_v36 = vcombine.low %v3398_v60, %v3406_v13  ;;  %v3645_v38 = vmax.f32 %v8874_v41, %v3644_v46  ;;  %v3447_v50 = vsel %vm3113_vm15, %v2894_v44, -inf  ;;  %v4314_v60 = vld [vmem:[%s8795_s3 + $0x1c0] sm:$0xff] }
 0x342   : > { %v3687_v39 = vmax.f32 %v8875_v2, %v3686_v58  ;;  %v3382_v52 = vcombine.low %v3374_v4, %v3381_v10  ;;  %v2902_v61 = vcombine.high %v2901_v33, %v2901_v33  ;;  %v8876_v19 = vmax.f32 %v8076_v21, %v8316_v8  ;;  %v4316_v10 = vld [vmem:[%s8795_s3 + $0x1d0] sm:$0xff] }
 0x343   : > { %v3425_v35 = vrot.slane %v3418_v36, %v6156_v55  ;;  %v3432_v6 = vrot.slane %v3414_v3, %v6156_v55  ;;  %v3651_v13 = vcombine.low %v3632_v27, %v3645_v38  ;;  %v3454_v18 = vmax.f32 %v8225_v53, %v3453_v12  ;;  %v4317_v3 = vld [vmem:[%s8795_s3 + $0x1d8] sm:$0xff] }
 0x344   : > { %v3448_v25 = vmax.f32 %v8876_v19, %v3447_v50  ;;  %v3384_v31 = vsel %vm3050_vm0, %v3382_v52, -inf  ;;  %v3455_v42 = vsel %vm3001_vm13, %v2901_v33, -inf  ;;  %v3698_v11 = vmax.f32 %v8329_v40, %v3453_v12  ;;  %v4318_v33 = vld [vmem:[%s8795_s3 + $0x1e0] sm:$0xff]  ;;  %v4319_v52 = vld [vmem:[%s8795_s3 + $0x1e8] sm:$0xff]  ;;  %v8883_v19 = vld [vmem:[#allocation11_spill] sm:$0xff] }
 0x345   : > { %v3433_v1 = vcombine.low %v3425_v35, %v3432_v6  ;;  %v3385_v49 = vrot.slane %v3384_v31, 4  ;;  %v3665_v16 = vrot.slane %v3651_v13, %v6156_v55  ;;  %v8877_v44 = vmax.f32 %v8405_v26, %v8410_v45 }
 0x346   : > { %v8878_v21 = vmax.f32 %v8101_v47, %v8319_v0  ;;  %v3463_v53 = vsel %vm3001_vm13, %v2902_v61, -inf  ;;  %v3699_v20 = vmax.f32 %v3698_v11, %v3455_v42  ;;  %v3710_v23 = vcombine.low %v3687_v39, %v3693_v9 }
 0x347   : > { %v3449_v48 = vmax.f32 %v3448_v25, %v8877_v44  ;;  %v3666_v28 = vcombine.low %v3658_v54, %v3665_v16  ;;  %v8879_v40 = vmax.f32 %v8113_v24, %v8338_v29  ;;  %v8880_v32 = vmax.f32 %v8389_v51, %v8417_v7  ;;  %v8884_v25 = vld [vmem:[#allocation8_spill] sm:$0xff] }
 0x348   : > { %v3456_v8 = vmax.f32 %v8878_v21, %v3455_v42  ;;  %v3386_v26 = vmax.f32 %v3384_v31, %v3385_v49  ;;  %v3435_v45 = vsel %vm3105_vm1, %v3433_v1, -inf  ;;  %v8881_v0 = vmax.f32 %v8222_v17, %v8417_v7  ;;  %v4315_v17 = vld [vmem:[%s8795_s3 + $0x1c8] sm:$0xff]  ;;  %v4320_v1 = vld [vmem:[%s8795_s3 + $0x1f0] sm:$0xff]  ;;  %v4321_v42 = vld [vmem:[%s8795_s3 + $0x1f8] sm:$0xff] }
 0x349   : > { %v3464_v12 = vmax.f32 %v8879_v40, %v3463_v53  ;;  %v3705_v34 = vmax.f32 %v8880_v32, %v3463_v53  ;;  %v3668_v47 = vsel %vm3546_vm5, %v3666_v28, -inf  ;;  %v3718_v51 = vrot.slane %v3710_v23, %v6156_v55  ;;  %v4396_v53 = vld [vmem:[%s8795_s3 + $0x200] sm:$0xff]  ;;  %v4398_v40 = vld [vmem:[%s8795_s3 + $0x210] sm:$0xff] }
 0x34a   : > { %v3457_v22 = vmax.f32 %v3456_v8, %v3454_v18  ;;  %v3669_v27 = vrot.slane %v3668_v47, 4  ;;  %v3387_v30 = vrot.slane %v3386_v26, 2  ;;  %v3436_v7 = vrot.slane %v3435_v45, 4 }
 0x34b   : > { %v3465_v62 = vmax.f32 %v3464_v12, %v8881_v0  ;;  %v3711_v5 = vcombine.low %v3699_v20, %v3705_v34  ;;  %v5546_v9 = vpack.c.bf16 %v4315_v17, %v4314_v60  ;;  %v5549_v54 = vpack.c.bf16 %v4317_v3, %v4316_v10  ;;  %v4397_v20 = vld [vmem:[%s8795_s3 + $0x208] sm:$0xff]  ;;  %v4399_v12 = vld [vmem:[%s8795_s3 + $0x218] sm:$0xff]  ;;  %v4482_v17 = vld [vmem:[%s8795_s3 + $0x260] sm:$0xff] }
 0x34c   : > { %v3469_v59 = vcombine.low %v3449_v48, %v3457_v22  ;;  %v3670_v14 = vmax.f32 %v3668_v47, %v3669_v27  ;;  %v3388_v63 = vmax.f32 %v3386_v26, %v3387_v30  ;;  %v3437_v36 = vmax.f32 %v3435_v45, %v3436_v7  ;;  %v4400_v26 = vld [vmem:[%s8795_s3 + $0x220] sm:$0xff]  ;;  %v4401_v45 = vld [vmem:[%s8795_s3 + $0x228] sm:$0xff]  ;;  %v4563_v10 = vld [vmem:[%s8795_s3 + $0x298] sm:$0xff] }
 0x34d   : > { %v3483_v29 = vrot.slane %v3465_v62, %v6156_v55  ;;  %v3725_v43 = vrot.slane %v3711_v5, %v6156_v55  ;;  %v8882_v39 = vmov 0.0|0.0   ;;  %v5552_v61 = vpack.c.bf16 %v4319_v52, %v4318_v33  ;;  %v4402_v62 = vld [vmem:[%s8795_s3 + $0x230] sm:$0xff]  ;;  %v4483_v7 = vld [vmem:[%s8795_s3 + $0x268] sm:$0xff]  ;;  %v4642_v52 = vld [vmem:[%s8795_s3 + $0x2c0] sm:$0xff] }
 0x34e   : > { %v3476_v24 = vrot.slane %v3469_v59, %v6156_v55  ;;  %v3389_v46 = vrot.slane %v3388_v63, 1  ;;  %v3671_v37 = vrot.slane %v3670_v14, 2  ;;  %v3438_v35 = vrot.slane %v3437_v36, 2  ;;  %v4403_v59 = vld [vmem:[%s8795_s3 + $0x238] sm:$0xff] }
 0x34f   : > { %v3726_v57 = vcombine.low %v3718_v51, %v3725_v43  ;;  %v8885_v18 = vmax.f32 %v8883_v19, %v8884_v25  ;;  %v5555_v48 = vpack.c.bf16 %v4321_v42, %v4320_v1  ;;  %v5558_v28 = vpack.c.bf16 %v4397_v20, %v4396_v53  ;;  %v4647_v1 = vld [vmem:[%s8795_s3 + $0x2e8] sm:$0xff]  ;;  %v4727_v53 = vld [vmem:[%s8795_s3 + $0x318] sm:$0xff] }
 0x350   : > { %v3484_v56 = vcombine.low %v3476_v24, %v3483_v29  ;;  %v3390_v55 = vmax.f32 %v3388_v63, %v3389_v46  ;;  %v3672_v41 = vmax.f32 %v3670_v14, %v3671_v37  ;;  %v3439_v11 = vmax.f32 %v3437_v36, %v3438_v35  ;;  %v4478_v24 = vld [vmem:[%s8795_s3 + $0x240] sm:$0xff]  ;;  %v4479_v29 = vld [vmem:[%s8795_s3 + $0x248] sm:$0xff]  ;;  %v4480_v14 = vld [vmem:[%s8795_s3 + $0x250] sm:$0xff] }
 0x351   : > { %v3728_v58 = vsel %vm3607_vm6, %v3726_v57, -inf  ;;  %v5561_v34 = vpack.c.bf16 %v4399_v12, %v4398_v40  ;;  %v5564_v0 = vpack.c.bf16 %v4401_v45, %v4400_v26  ;;  %v5567_v27 = vpack.c.bf16 %v4403_v59, %v4402_v62  ;;  %v4481_v63 = vld [vmem:[%s8795_s3 + $0x258] sm:$0xff]  ;;  %v4484_v57 = vld [vmem:[%s8795_s3 + $0x270] sm:$0xff]  ;;  %v4564_v36 = vld [vmem:[%s8795_s3 + $0x2a0] sm:$0xff] }
 0x352   : > { %v3729_v4 = vrot.slane %v3728_v58, 4  ;;  %5326 = vmatmul.mubr.msk.f32.vlgmr.msra.gmra.mrb[0].mxu1 %vm3747_vm2, %v3390_v55  ;;  %v3673_v2 = vrot.slane %v3672_v41, 1  ;;  %v3486_v16 = vsel %vm3161_vm4, %v3484_v56, -inf  ;;  %v3440_v8 = vrot.slane %v3439_v11, 1  ;;  %v4485_v46 = vld [vmem:[%s8795_s3 + $0x278] sm:$0xff]  ;;  %v4562_v55 = vld [vmem:[%s8795_s3 + $0x290] sm:$0xff] }
 0x353   : > { %5547 = vmatpush3.bf16.msra.mxu1 %v5546_v9  ;;  %5344 = vmatprep.mubr.msk.f32.mxu1 %vm5793_vm3, %v8830_v15  ;;  %v3487_v21 = vrot.slane %v3486_v16, 4  ;;  %v5570_v51 = vpack.c.bf16 %v4479_v29, %v4478_v24  ;;  %v5573_v60 = vpack.c.bf16 %v4481_v63, %v4480_v14  ;;  %v5576_v56 = vpack.c.bf16 %v4483_v7, %v4482_v17  ;;  %v4561_v9 = vld [vmem:[%s8795_s3 + $0x288] sm:$0xff]  ;;  %v4731_v12 = vld [vmem:[%s8795_s3 + $0x338] sm:$0xff]  ;;  %v4810_v59 = vld [vmem:[%s8795_s3 + $0x360] sm:$0xff] }
 0x354   : > { %v3730_v38 = vmax.f32 %v3728_v58, %v3729_v4  ;;  %5548 = vmatprep.subr.bf16.mxu1 %v8882_v39  ;;  %v8527_v50 = vmax.f32 %v3672_v41, %v3673_v2  ;;  %v3441_v22 = vmax.f32 %v3439_v11, %v3440_v8  ;;  %v5579_v37 = vpack.c.bf16 %v4485_v46, %v4484_v57  ;;  %v4560_v58 = vld [vmem:[%s8795_s3 + $0x280] sm:$0xff]  ;;  %v4565_v41 = vld [vmem:[%s8795_s3 + $0x2a8] sm:$0xff]  ;;  %v4567_v2 = vld [vmem:[%s8795_s3 + $0x2b8] sm:$0xff] }
 0x355   : > { %v3488_v32 = vmax.f32 %v3486_v16, %v3487_v21  ;;  %v5582_v4 = vpack.c.bf16 %v4561_v9, %v4560_v58  ;;  %v5585_v3 = vpack.c.bf16 %v4563_v10, %v4562_v55  ;;  %v4643_v35 = vld [vmem:[%s8795_s3 + $0x2c8] sm:$0xff]  ;;  %v4649_v11 = vld [vmem:[%s8795_s3 + $0x2f8] sm:$0xff]  ;;  %v4724_v16 = vld [vmem:[%s8795_s3 + $0x300] sm:$0xff] }
 0x356   : > { %v3731_v6 = vrot.slane %v3730_v38, 2  ;;  %v8533_v31 = vmax.f32 %v8885_v18, %v8527_v50  ;;  %v4646_v18 = vld [vmem:[%s8795_s3 + $0x2e0] sm:$0xff]  ;;  %v4726_v8 = vld [vmem:[%s8795_s3 + $0x310] sm:$0xff]  ;;  %v4807_v26 = vld [vmem:[%s8795_s3 + $0x348] sm:$0xff] }
 0x357   : > { %5550 = vmatpush3.bf16.msra.mxu1 %v5549_v54  ;;  %v3489_v47 = vrot.slane %v3488_v32, 2  ;;  %v4566_v54 = vld [vmem:[%s8795_s3 + $0x2b0] sm:$0xff]  ;;  %v5600_v42 = vpack.c.bf16 %v4647_v1, %v4646_v18  ;;  %v5609_v20 = vpack.c.bf16 %v4727_v53, %v4726_v8  ;;  %v4813_v29 = vld [vmem:[%s8795_s3 + $0x378] sm:$0xff] }
 0x358   : > { %v3732_v13 = vmax.f32 %v3730_v38, %v3731_v6  ;;  %5551 = vmatprep.subr.bf16.mxu1 %v8882_v39  ;;  %v5588_v38 = vpack.c.bf16 %v4565_v41, %v4564_v36  ;;  %v5591_v33 = vpack.c.bf16 %v4567_v2, %v4566_v54  ;;  %v5594_v6 = vpack.c.bf16 %v4643_v35, %v4642_v52 }
 0x359   : > { %v3490_v5 = vmax.f32 %v3488_v32, %v3489_v47  ;;  %v4808_v47 = vld [vmem:[%s8795_s3 + $0x350] sm:$0xff] }
 0x35a   : > { %v3733_v49 = vrot.slane %v3732_v13, 1 }
 0x35b   : > { %5553 = vmatpush3.bf16.msra.mxu1 %v5552_v61  ;;  %v3491_v30 = vrot.slane %v3490_v5, 1  ;;  %v4645_v61 = vld [vmem:[%s8795_s3 + $0x2d8] sm:$0xff] }
 0x35c   : > { %v8543_v44 = vmax.f32 %v3732_v13, %v3733_v49  ;;  %5554 = vmatprep.subr.bf16.mxu1 %v8882_v39  ;;  %v4644_v13 = vld [vmem:[%s8795_s3 + $0x2d0] sm:$0xff] }
 0x35d   : > { %v3492_v43 = vmax.f32 %v3490_v5, %v3491_v30  ;;  %v4811_v5 = vld [vmem:[%s8795_s3 + $0x368] sm:$0xff] }
 0x35e   : > { %v3737_v23 = vmax.f32 %v8533_v31, %v8543_v44  ;;  %v5624_v24 = vpack.c.bf16 %v4811_v5, %v4810_v59 }
 0x35f   : > { %5556 = vmatpush3.bf16.msra.mxu1 %v5555_v48  ;;  %v4725_v48 = vld [vmem:[%s8795_s3 + $0x308] sm:$0xff] }
 0x360   : > { %5557 = vmatprep.subr.bf16.mxu1 %v8882_v39  ;;  %v5606_v21 = vpack.c.bf16 %v4725_v48, %v4724_v16 }
 0x362   : > { %5345 = vmatmul.mubr.msk.f32.vlgmr.msra.gmra.mrb[0].mxu1 %vm3747_vm2, %v3441_v22  ;;  %v4729_v22 = vld [vmem:[%s8795_s3 + $0x328] sm:$0xff] }
 0x363   : > { %5559 = vmatpush3.bf16.msra.mxu1 %v5558_v28  ;;  %5363 = vmatprep.mubr.msk.f32.mxu1 %vm5793_vm3, %v8830_v15  ;;  %v4728_v28 = vld [vmem:[%s8795_s3 + $0x320] sm:$0xff] }
 0x364   : > { %5560 = vmatprep.subr.bf16.mxu1 %v8882_v39  ;;  %v5612_v40 = vpack.c.bf16 %v4729_v22, %v4728_v28 }
 0x367   : > { %5562 = vmatpush3.bf16.msra.mxu1 %v5561_v34  ;;  %v4806_v34 = vld [vmem:[%s8795_s3 + $0x340] sm:$0xff] }
 0x368   : > { %5563 = vmatprep.subr.bf16.mxu1 %v8882_v39  ;;  %v5618_v45 = vpack.c.bf16 %v4807_v26, %v4806_v34 }
 0x36b   : > { %5565 = vmatpush3.bf16.msra.mxu1 %v5564_v0  ;;  %v4809_v0 = vld [vmem:[%s8795_s3 + $0x358] sm:$0xff] }
 0x36c   : > { %5566 = vmatprep.subr.bf16.mxu1 %v8882_v39  ;;  %v5621_v62 = vpack.c.bf16 %v4809_v0, %v4808_v47 }
 0x36f   : > { %5568 = vmatpush3.bf16.msra.mxu1 %v5567_v27 }
 0x370   : > { %5569 = vmatprep.subr.bf16.mxu1 %v8882_v39 }
 0x372   : > { %5364 = vmatmul.mubr.msk.f32.vlgmr.msra.gmra.mrb[0].mxu1 %vm3747_vm2, %v3492_v43  ;;  %v3738_v43 = vld [vmem:[%s8796_s4] sm:$0x1] }
 0x373   : > { %5571 = vmatpush3.bf16.msra.mxu1 %v5570_v51  ;;  %5382 = vmatprep.mubr.msk.f32.mxu1 %vm5793_vm3, %v8830_v15 }
 0x374   : > { %5572 = vmatprep.subr.bf16.mxu1 %v8882_v39 }
 0x377   : > { %5574 = vmatpush3.bf16.msra.mxu1 %v5573_v60 }
 0x378   : > { %5575 = vmatprep.subr.bf16.mxu1 %v8882_v39 }
 0x37b   : > { %5577 = vmatpush3.bf16.msra.mxu1 %v5576_v56 }
 0x37c   : > { %5578 = vmatprep.subr.bf16.mxu1 %v8882_v39 }
 0x37f   : > { %5580 = vmatpush3.bf16.msra.mxu1 %v5579_v37 }
 0x380   : > { %5581 = vmatprep.subr.bf16.mxu1 %v8882_v39 }
 0x382   : > { %5383 = vmatmul.mubr.msk.f32.vlgmr.msra.gmra.mrb[0].mxu1 %vm3747_vm2, %v8883_v19  ;;  %v5597_v19 = vpack.c.bf16 %v4645_v61, %v4644_v13 }
 0x383   : > { %5583 = vmatpush3.bf16.msra.mxu1 %v5582_v4  ;;  %5401 = vmatprep.mubr.msk.f32.mxu1 %vm5793_vm3, %v8830_v15 }
 0x384   : > { %5584 = vmatprep.subr.bf16.mxu1 %v8882_v39 }
 0x387   : > { %5586 = vmatpush3.bf16.msra.mxu1 %v5585_v3 }
 0x388   : > { %5587 = vmatprep.subr.bf16.mxu1 %v8882_v39 }
 0x38b   : > { %5589 = vmatpush3.bf16.msra.mxu1 %v5588_v38 }
 0x38c   : > { %5590 = vmatprep.subr.bf16.mxu1 %v8882_v39 }
 0x38f   : > { %5592 = vmatpush3.bf16.msra.mxu1 %v5591_v33 }
 0x390   : > { %5593 = vmatprep.subr.bf16.mxu1 %v8882_v39 }
 0x392   : > { %5402 = vmatmul.mubr.msk.f32.vlgmr.msra.gmra.mrb[0].mxu1 %vm3747_vm2, %v8884_v25  ;;  %v4648_v25 = vld [vmem:[%s8795_s3 + $0x2f0] sm:$0xff] }
 0x393   : > { %5595 = vmatpush3.bf16.msra.mxu1 %v5594_v6  ;;  %5420 = vmatprep.mubr.msk.f32.mxu1 %vm5793_vm3, %v8830_v15  ;;  %v5603_v49 = vpack.c.bf16 %v4649_v11, %v4648_v25 }
 0x394   : > { %5596 = vmatprep.subr.bf16.mxu1 %v8882_v39 }
 0x397   : > { %5598 = vmatpush3.bf16.msra.mxu1 %v5597_v19 }
 0x398   : > { %5599 = vmatprep.subr.bf16.mxu1 %v8882_v39 }
 0x39b   : > { %5601 = vmatpush3.bf16.msra.mxu1 %v5600_v42 }
 0x39c   : > { %5602 = vmatprep.subr.bf16.mxu1 %v8882_v39 }
 0x39f   : > { %5604 = vmatpush3.bf16.msra.mxu1 %v5603_v49 }
 0x3a0   : > { %5605 = vmatprep.subr.bf16.mxu1 %v8882_v39 }
 0x3a2   : > { %5421 = vmatmul.mubr.msk.f32.vlgmr.msra.gmra.mrb[0].mxu1 %vm3747_vm2, %v8527_v50  ;;  %v4730_v50 = vld [vmem:[%s8795_s3 + $0x330] sm:$0xff] }
 0x3a3   : > { %5607 = vmatpush3.bf16.msra.mxu1 %v5606_v21  ;;  %5439 = vmatprep.mubr.msk.f32.mxu1 %vm5793_vm3, %v8830_v15  ;;  %v5615_v32 = vpack.c.bf16 %v4731_v12, %v4730_v50 }
 0x3a4   : > { %5608 = vmatprep.subr.bf16.mxu1 %v8882_v39 }
 0x3a7   : > { %5610 = vmatpush3.bf16.msra.mxu1 %v5609_v20 }
 0x3a8   : > { %5611 = vmatprep.subr.bf16.mxu1 %v8882_v39 }
 0x3ab   : > { %5613 = vmatpush3.bf16.msra.mxu1 %v5612_v40 }
 0x3ac   : > { %5614 = vmatprep.subr.bf16.mxu1 %v8882_v39 }
 0x3af   : > { %5616 = vmatpush3.bf16.msra.mxu1 %v5615_v32 }
 0x3b0   : > { %5617 = vmatprep.subr.bf16.mxu1 %v8882_v39 }
 0x3b2   : > { %5440 = vmatmul.mubr.msk.f32.vlgmr.msra.gmra.mrb[0].mxu1 %vm3747_vm2, %v8543_v44 }
 0x3b3   : > { %5619 = vmatpush3.bf16.msra.mxu1 %v5618_v45  ;;  %5458 = vmatprep.mubr.msk.f32.mxu1 %vm5793_vm3, %v8830_v15  ;;  %v4063_v27 = vpop.f32.mrb[52].mxu0  ;;  %v4812_v15 = vld [vmem:[%s8795_s3 + $0x370] sm:$0xff]  ;;  %vm4888_vm3 = vcmask 73728  }
 0x3b4   : > { %5620 = vmatprep.subr.bf16.mxu1 %v8882_v39  ;;  %v5270_v30 = vpop.f32.mrb[53].mxu0  ;;  %v5627_v51 = vpack.c.bf16 %v4813_v29, %v4812_v15  ;;  %v5629_v14 = vadd.f32 %v4063_v27, %v3738_v43 }
 0x3b7   : > { %5622 = vmatpush3.bf16.msra.mxu1 %v5621_v62 }
 0x3b8   : > { %5623 = vmatprep.subr.bf16.mxu1 %v8882_v39 }
 0x3bb   : > { %5625 = vmatpush3.bf16.msra.mxu1 %v5624_v24 }
 0x3bc   : > { %5626 = vmatprep.subr.bf16.mxu1 %v8882_v39 }
 0x3bf   : > { %5628 = vmatpush3.bf16.msra.mxu1 %v5627_v51 }
 0x3c2   : > { %5459 = vmatmul.mubr.msk.f32.vlgmr.msra.gmra.mrb[0].mxu1 %vm3747_vm2, %v3737_v23 }
 0x495   : > { %v4883_v63 = vpop.f32.mrb[0].mxu1 }
 0x496   : > { %v5630_v60 = vadd.f32 %v5629_v14, %v4883_v63  ;;  %v5460_v39 = vpop.f32.mrb[1].mxu1 }
 0x498   : > { %4889 = vst.msk [vmem:[%s216_s17] sm:$0x1] %vm4888_vm3, %v5630_v60 }
 0x499   : > { %5732 = shalt.err (!%p5729_p3)
}
 0x49a   : > { %s5733_s10 = scalar_lea.hbm %s8750_s30, 16  ;;  %s5737_s13 = scalar_lea.hbm %s8797_s5, 32 }
 0x49b   : > { %p5734_p4 = scmp.ne.s32.totalorder %s8750_s30, %s5733_s10  ;;  %p5738_p9 = scmp.lt.u32.totalorder %s8750_s30, %s8797_s5 }
 0x49c   : > { %p5739_p10 = scmp.lt.u32.totalorder %s5737_s13, %s5733_s10  ;;  %p5741_p12 = scmp.lt.u32.totalorder %s5733_s10, %s8750_s30 }
 0x49d   : > { %p5735_p7 = pnand %p5734_p4, %p5865_p5 }
 0x49e   : > { %p5740_p11 = por %p5739_p10, %p5738_p9 }
 0x49f   : > { %p5736_p8 = pneg %p5735_p7 }
 0x4a0   : > { %p5742_p13 = por %p5741_p12, %p5740_p11 }
 0x4a2   : > { %p5743_p0 = pnand %p5742_p13, %p5736_p8 }
 0x4a4   : > { %5746 = shalt.err (!%p5743_p0)
}
 0x4a5   : > { %5655 = dma.vmem_to_hbm [thread:$0]  (%p5865_p5), %s8752_s23, 16, %s8750_s30, %s4891_s6  }
 0x4a6 PF: > { %p5661_p1 = scmp.ge.s32.totalorder %s5781_s21, 2  ;;  %s4915_s16 = sand.u32 1, %s5769_s18  }
 0x4a7   : > { %s4916_s17 = scalar_lea.sflag [#allocation3], %s4915_s16 }
 0x4a8   : > { %p5658_p2 = pnand %p5661_p1, %p5869_p6 }
 0x4aa   : > { %5764 = dma.done.wait (!%p5658_p2), %s4916_s17, 16  }
 0x4ab   : > { %5766 = vsyncadd (!%p5658_p2), %s4916_s17, 4294967280  ;;  %p15_p3 = scmp.ge.s32.totalorder %s5852_s24, 4   ;;  %s8886_s18 = smov %s5773_s19 }
 0x4ac   : > { %s8887_s19 = smov %s5777_s20  ;;  %s8888_s20 = smov %s5863_s27 }
 0x4ad   : > { %s8889_s21 = smov %s5852_s24  ;;  %17 = sbr.rel (!%p15_p3) target bundleno = 3 (0x3), region = 75 }
 0x4b4   :  { %4920 = vsyncpa [#allocation3], 1 }
 0x4b5   :  { %4922 = vsyncpa [#allocation3 + $0x1], 1 }

</bundles_post_ra>
